<compile_context>
chip_gen: v7x
topology: tpu7x:2x2x1
jax: 0.10.0
libtpu: 0.0.40
codegen_flags: <defaults>
</compile_context>

<pallas_src>
import numpy as np
import jax
import jax.numpy as jnp
from jax import lax
from jax.experimental import pallas as pl
from jax.experimental.pallas import tpu as pltpu


# ------------------------------ static configuration ------------------------------ #

def _layer_cfg(input_nc, ndf):
    # (cin, cout, kernel, stride, pad, has_bn+lrelu) — mirrors the PyTorch __init__
    # (n_layers=3, use_sigmoid=False, getIntermFeat=False).
    return [
        (input_nc, ndf,     5, 1, 2, True),
        (ndf,      ndf,     5, 1, 2, True),
        (ndf,      2 * ndf, 5, 2, 2, True),
        (2 * ndf,  2 * ndf, 5, 1, 2, True),
        (2 * ndf,  2 * ndf, 5, 2, 2, True),
        (2 * ndf,  2 * ndf, 5, 1, 2, True),
        (2 * ndf,  4 * ndf, 5, 4, 2, True),
        (4 * ndf,  4 * ndf, 5, 1, 2, True),
        (4 * ndf,  1,       3, 1, 1, False),   # final conv: no norm / activation
    ]


def init_params(key, input_nc=4, ndf=8):
    params = []
    for (cin, cout, k, s, p, has_bn) in _layer_cfg(input_nc, ndf):
        key, kw, kb, kg, kbeta = jax.random.split(key, 5)
        w = jax.random.normal(kw, (cout, cin, k, k), jnp.float32) * 0.05
        b = jax.random.normal(kb, (cout,), jnp.float32) * 0.05
        if has_bn:
            gamma = 1.0 + 0.1 * jax.random.normal(kg, (cout,), jnp.float32)
            beta = 0.1 * jax.random.normal(kbeta, (cout,), jnp.float32)
        else:
            gamma = jnp.ones((cout,), jnp.float32)
            beta = jnp.zeros((cout,), jnp.float32)
        params.append((w, b, gamma, beta, k, s, p, has_bn))
    return params


# ------------------------------ host-side packing ---------------------------------- #

def _shape_chain(params, hin, win):
    shapes = []
    h, w = hin, win
    for (wt, b, gamma, beta, k, s, p, bn) in params:
        cout, cin = int(wt.shape[0]), int(wt.shape[1])
        hp = h + 2 * p
        ho = (h + 2 * p - k) // s + 1
        wo = (w + 2 * p - k) // s + 1
        shapes.append(dict(cin=cin, cout=cout, k=k, s=s, p=p, bn=bn,
                           hin=h, win=w, hp=hp, ho=ho, wo=wo,
                           w_cin=w * cin, wo_cout=wo * cout))
        h, w = ho, wo
    return shapes


def pack_params(params, hin, win, n_batch):
    """Ragged, per-layer packing of all kernel operands (host-side, one-time)."""
    shapes = _shape_chain(params, hin, win)
    # Module structure: BN+LeakyReLU on every layer except the final conv.
    assert all(c["bn"] for c in shapes[:-1]) and not shapes[-1]["bn"]

    bands, gbs, sels = [], [], []
    bias_t = None
    for (wt, b, gamma, beta, k, s, p, bn), c in zip(params, shapes):
        wnp = np.asarray(wt, np.float32)                  # (cout, cin, kh, kw)
        cin, cout, wo, win_l = c["cin"], c["cout"], c["wo"], c["win"]

        # Banded weights: fold the dx taps, the W stride, the W zero-padding and the
        # channel mixing into one (w_cin -> wo_cout) matrix per kernel row dy.
        # TODO(synk): at realistic widths (win >= 64) this band is only ~k/win dense;
        # switch to W-tiled bands before scaling up.
        band = np.zeros((k, c["w_cin"], c["wo_cout"]), np.float32)
        for dy in range(k):
            for wo_i in range(wo):
                for dx in range(k):
                    wcol = s * wo_i + dx - p              # unpadded input W coordinate
                    if 0 <= wcol < win_l:                 # W zero-padding folded in
                        band[dy, wcol * cin:(wcol + 1) * cin,
                             wo_i * cout:(wo_i + 1) * cout] = wnp[:, :, dy, dx].T
        bands.append(jnp.asarray(band))

        if bn:
            # Conv bias is intentionally dropped on BN layers: the training-mode
            # batch-mean subtraction cancels it exactly, so only (gamma, beta) are packed.
            gbs.append(jnp.asarray(np.stack([np.asarray(gamma, np.float32),
                                             np.asarray(beta, np.float32)], axis=0)))
        else:
            # Final conv bias, tiled over the interleaved (wo, cout) lane layout.
            bias_t = jnp.asarray(np.tile(np.asarray(b, np.float32)[None, :], (1, wo)))

        if s > 1 and c["ho"] > 1:
            # 0/1 row-selection matrix implementing the H stride as a tiny matmul on the
            # (h*N + n)-major 2-D activation layout (replaces the strided Ref read).
            ho = c["ho"]
            span = s * (ho - 1) + 1
            sel = np.zeros((ho * n_batch, span * n_batch), np.float32)
            for i in range(ho):
                for n in range(n_batch):
                    sel[i * n_batch + n, s * i * n_batch + n] = 1.0
            sels.append(jnp.asarray(sel))

    operands = [*bands, *gbs, bias_t, *sels]
    return operands, shapes


# --------------------------------- fused kernel ------------------------------------ #

def _lane_channel_onehot(wo, cout, transpose):
    """In-kernel 0/1 map between the interleaved (wo, cout) lane layout and channels."""
    lanes = wo * cout
    shape = (cout, lanes) if transpose else (lanes, cout)
    lane = lax.broadcasted_iota(jnp.int32, shape, 1 if transpose else 0)
    ch = lax.broadcasted_iota(jnp.int32, shape, 0 if transpose else 1)
    if (cout & (cout - 1)) == 0:                  # power-of-two channel counts (true here)
        lane_c = jnp.bitwise_and(lane, cout - 1)
    else:
        lane_c = lane % cout  # TODO(synk): verify non-pow2 remainder lowering on Mosaic
    return jnp.where(lane_c == ch, 1.0, 0.0).astype(jnp.float32)


def _build_fused_kernel(shapes, n_batch):
    nl = len(shapes)
    n_bn = sum(1 for c in shapes if c["bn"])
    n_sel = sum(1 for c in shapes if c["s"] > 1 and c["ho"] > 1)

    def kernel(*args):
        i = 0
        x_ref = args[i]; i += 1
        band_refs = list(args[i:i + nl]); i += nl
        gb_list = list(args[i:i + n_bn]); i += n_bn
        bias_ref = args[i]; i += 1
        sel_list = list(args[i:i + n_sel]); i += n_sel
        o_ref = args[i]; i += 1
        bufs = list(args[i:i + nl]); i += nl
        assert i == len(args)

        gb_refs, sel_refs = {}, {}
        gi = si = 0
        for l, c in enumerate(shapes):
            if c["bn"]:
                gb_refs[l] = gb_list[gi]; gi += 1
            if c["s"] > 1 and c["ho"] > 1:
                sel_refs[l] = sel_list[si]; si += 1

        # Zero ONLY the H zero-padding rows of every layer buffer; interior rows are
        # fully overwritten by the previous layer before they are read.
        for l, c in enumerate(shapes):
            p, hin, wcin = c["p"], c["hin"], c["w_cin"]
            if p > 0:
                z = jnp.zeros((p * n_batch, wcin), jnp.float32)
                bufs[l][pl.ds(0, p * n_batch), :] = z
                bufs[l][pl.ds((p + hin) * n_batch, p * n_batch), :] = z

        # Stage the network input ((h*N + n)-major rows, W*C on lanes) into layer 0.
        p0, h0 = shapes[0]["p"], shapes[0]["hin"]
        bufs[0][pl.ds(p0 * n_batch, h0 * n_batch), :] = x_ref[...]

        for l, c in enumerate(shapes):
            k, s, bn = c["k"], c["s"], c["bn"]
            ho, wo, cout = c["ho"], c["wo"], c["cout"]
            wocout = c["wo_cout"]
            span = s * (ho - 1) + 1
            m_rows = ho * n_batch

            # Conv: batch folded into the matmul M; one lane-dense MXU matmul per dy.
            acc = jnp.zeros((m_rows, wocout), jnp.float32)
            for dy in range(k):
                block = bufs[l][pl.ds(dy * n_batch, span * n_batch), :]
                if s > 1 and ho > 1:
                    rows = jnp.dot(sel_refs[l][...], block,
                                   preferred_element_type=jnp.float32)   # H-stride select
                else:
                    rows = block
                acc = acc + jnp.dot(rows, band_refs[l][dy, :, :],
                                    preferred_element_type=jnp.float32)
            # TODO(synk): on v6e/v7x, stack the k dy taps into one (m, k*w_cin) slab and
            # issue a single deeper matmul per layer.

            if bn:
                # Training-mode BatchNorm2d + LeakyReLU(0.2) applied while `acc` is still
                # live in vregs — no pre-BN store/reload.
                r = _lane_channel_onehot(wo, cout, transpose=False)      # (wocout, cout)
                rt = _lane_channel_onehot(wo, cout, transpose=True)      # (cout, wocout)
                inv_m = 1.0 / float(n_batch * ho * wo)
                csum = jnp.dot(jnp.sum(acc, axis=0, keepdims=True), r,
                               preferred_element_type=jnp.float32)
                cssq = jnp.dot(jnp.sum(acc * acc, axis=0, keepdims=True), r,
                               preferred_element_type=jnp.float32)
                mean = csum * inv_m
                var = jnp.maximum(cssq * inv_m - mean * mean, 0.0)       # clamp one-pass var
                gamma = gb_refs[l][0:1, :]
                beta = gb_refs[l][1:2, :]
                scale_c = gamma * lax.rsqrt(var + 1e-5)
                shift_c = beta - mean * scale_c
                scale_t = jnp.dot(scale_c, rt, preferred_element_type=jnp.float32)
                shift_t = jnp.dot(shift_c, rt, preferred_element_type=jnp.float32)
                y = acc * scale_t + shift_t
                y = jnp.where(y > 0, y, 0.2 * y)                         # LeakyReLU(0.2)
                pn = shapes[l + 1]["p"]
                bufs[l + 1][pl.ds(pn * n_batch, m_rows), :] = y
            else:
                o_ref[...] = acc + bias_ref[...]

    return kernel


# ---------------------------------- wrapper ----------------------------------------- #

def nlayer_discriminator(x_nchw, operands, shapes):
    """Forward pass (getIntermFeat=False, use_sigmoid=False).  NCHW in / NCHW out."""
    n, ci, h, w = x_nchw.shape
    assert (ci, h, w) == (shapes[0]["cin"], shapes[0]["hin"], shapes[0]["win"])
    # (h*N + n)-major rows, W*C on lanes.
    x2d = jnp.transpose(x_nchw, (2, 0, 3, 1)).reshape(h * n, w * ci)

    last = shapes[-1]
    out_shape = jax.ShapeDtypeStruct((last["ho"] * n, last["wo_cout"]), jnp.float32)

    scratch = [pltpu.VMEM((c["hp"] * n, c["w_cin"]), jnp.float32) for c in shapes]

    vspec = pl.BlockSpec(memory_space=pltpu.MemorySpace.VMEM)
    out2d = pl.pallas_call(
        _build_fused_kernel(shapes, n),
        out_shape=out_shape,
        in_specs=[vspec] * (1 + len(operands)),
        out_specs=vspec,
        scratch_shapes=scratch,
        # TODO(synk): at pix2pixHD sizes, add an M-tiled "parallel" grid axis (2 TCs on
        # v7x), BlockSpec pipelining, bf16 bands, and per-generation vmem_limit_bytes.
    )(x2d, *operands)

    out = out2d.reshape(last["ho"], n, last["wo"], last["cout"])
    return jnp.transpose(out, (1, 3, 0, 2))


# ------------------------------ pure-JAX reference ---------------------------------- #

def ref_forward(x_nchw, params):
    x = jnp.transpose(x_nchw, (0, 2, 3, 1))
    for (w, b, gamma, beta, k, s, p, has_bn) in params:
        wh = jnp.transpose(w, (2, 3, 1, 0))  # HWIO
        y = lax.conv_general_dilated(
            x, wh, (s, s), [(p, p), (p, p)],
            dimension_numbers=("NHWC", "HWIO", "NHWC"),
            precision=lax.Precision.HIGHEST,
        ) + b
        if has_bn:
            mean = jnp.mean(y, axis=(0, 1, 2), keepdims=True)
            var = jnp.mean((y - mean) ** 2, axis=(0, 1, 2), keepdims=True)
            y = (y - mean) * lax.rsqrt(var + 1e-5) * gamma + beta
            y = jnp.where(y > 0, y, 0.2 * y)
        x = y
    return jnp.transpose(x, (0, 3, 1, 2))


# --------------------------------------- main --------------------------------------- #

if __name__ == "__main__":
    key = jax.random.PRNGKey(0)
    kx, kp = jax.random.split(key)

    # Small shapes consistent with the module: NCHW input, input_nc=4, ndf=8, 16x16.
    x = jax.random.normal(kx, (2, 4, 16, 16), jnp.float32)
    params = init_params(kp, input_nc=4, ndf=8)

    operands, shapes = pack_params(params, hin=16, win=16, n_batch=2)
    out = nlayer_discriminator(x, operands, shapes)
    out = jax.block_until_ready(out)

    ref = ref_forward(x, params)
    assert out.shape == ref.shape == (2, 1, 1, 1), (out.shape, ref.shape)
    assert jnp.allclose(out, ref, rtol=2e-2, atol=2e-2), (out, ref)

    print("KERNEL_OK")
</pallas_src>

<mosaic_0001>
module attributes {stable_mosaic.version = 11 : i64} {
  func.func @kernel(%arg0: memref<32x64xf32, #tpu.memory_space<vmem>>, %arg1: memref<5x64x128xf32, #tpu.memory_space<vmem>>, %arg2: memref<5x128x128xf32, #tpu.memory_space<vmem>>, %arg3: memref<5x128x128xf32, #tpu.memory_space<vmem>>, %arg4: memref<5x128x128xf32, #tpu.memory_space<vmem>>, %arg5: memref<5x128x64xf32, #tpu.memory_space<vmem>>, %arg6: memref<5x64x64xf32, #tpu.memory_space<vmem>>, %arg7: memref<5x64x32xf32, #tpu.memory_space<vmem>>, %arg8: memref<5x32x32xf32, #tpu.memory_space<vmem>>, %arg9: memref<3x32x1xf32, #tpu.memory_space<vmem>>, %arg10: memref<2x8xf32, #tpu.memory_space<vmem>>, %arg11: memref<2x8xf32, #tpu.memory_space<vmem>>, %arg12: memref<2x16xf32, #tpu.memory_space<vmem>>, %arg13: memref<2x16xf32, #tpu.memory_space<vmem>>, %arg14: memref<2x16xf32, #tpu.memory_space<vmem>>, %arg15: memref<2x16xf32, #tpu.memory_space<vmem>>, %arg16: memref<2x32xf32, #tpu.memory_space<vmem>>, %arg17: memref<2x32xf32, #tpu.memory_space<vmem>>, %arg18: memref<1x1xf32, #tpu.memory_space<vmem>>, %arg19: memref<16x30xf32, #tpu.memory_space<vmem>>, %arg20: memref<8x14xf32, #tpu.memory_space<vmem>>, %arg21: memref<2x1xf32, #tpu.memory_space<vmem>>, %arg22: memref<40x64xf32, #tpu.memory_space<vmem>>, %arg23: memref<40x128xf32, #tpu.memory_space<vmem>>, %arg24: memref<40x128xf32, #tpu.memory_space<vmem>>, %arg25: memref<24x128xf32, #tpu.memory_space<vmem>>, %arg26: memref<24x128xf32, #tpu.memory_space<vmem>>, %arg27: memref<16x64xf32, #tpu.memory_space<vmem>>, %arg28: memref<16x64xf32, #tpu.memory_space<vmem>>, %arg29: memref<10x32xf32, #tpu.memory_space<vmem>>, %arg30: memref<6x32xf32, #tpu.memory_space<vmem>>) attributes {dimension_semantics = [], scalar_prefetch = 0 : i64, scratch_operands = 9 : i64, tpu.core_type = #tpu.core_type<tc>} {
    %cst = arith.constant 0.000000e+00 : f32
    %0 = vector.broadcast %cst : f32 to vector<4x64xf32>
    %c0 = arith.constant 0 : index
    %c0_0 = arith.constant 0 : index
    %1 = vector.load %arg22[%c0, %c0_0] : memref<40x64xf32, #tpu.memory_space<vmem>>, vector<4x64xf32>
    tpu.vector_store %arg22[%c0, %c0_0], %0 {strides = array<i32>} : memref<40x64xf32, #tpu.memory_space<vmem>>, vector<4x64xf32>,
    %c36 = arith.constant 36 : index
    %c0_1 = arith.constant 0 : index
    %2 = vector.load %arg22[%c36, %c0_1] : memref<40x64xf32, #tpu.memory_space<vmem>>, vector<4x64xf32>
    tpu.vector_store %arg22[%c36, %c0_1], %0 {strides = array<i32>} : memref<40x64xf32, #tpu.memory_space<vmem>>, vector<4x64xf32>,
    %cst_2 = arith.constant 0.000000e+00 : f32
    %3 = vector.broadcast %cst_2 : f32 to vector<4x128xf32>
    %c0_3 = arith.constant 0 : index
    %c0_4 = arith.constant 0 : index
    %4 = vector.load %arg23[%c0_3, %c0_4] : memref<40x128xf32, #tpu.memory_space<vmem>>, vector<4x128xf32>
    tpu.vector_store %arg23[%c0_3, %c0_4], %3 {strides = array<i32>} : memref<40x128xf32, #tpu.memory_space<vmem>>, vector<4x128xf32>,
    %c36_5 = arith.constant 36 : index
    %c0_6 = arith.constant 0 : index
    %5 = vector.load %arg23[%c36_5, %c0_6] : memref<40x128xf32, #tpu.memory_space<vmem>>, vector<4x128xf32>
    tpu.vector_store %arg23[%c36_5, %c0_6], %3 {strides = array<i32>} : memref<40x128xf32, #tpu.memory_space<vmem>>, vector<4x128xf32>,
    %cst_7 = arith.constant 0.000000e+00 : f32
    %6 = vector.broadcast %cst_7 : f32 to vector<4x128xf32>
    %c0_8 = arith.constant 0 : index
    %c0_9 = arith.constant 0 : index
    %7 = vector.load %arg24[%c0_8, %c0_9] : memref<40x128xf32, #tpu.memory_space<vmem>>, vector<4x128xf32>
    tpu.vector_store %arg24[%c0_8, %c0_9], %6 {strides = array<i32>} : memref<40x128xf32, #tpu.memory_space<vmem>>, vector<4x128xf32>,
    %c36_10 = arith.constant 36 : index
    %c0_11 = arith.constant 0 : index
    %8 = vector.load %arg24[%c36_10, %c0_11] : memref<40x128xf32, #tpu.memory_space<vmem>>, vector<4x128xf32>
    tpu.vector_store %arg24[%c36_10, %c0_11], %6 {strides = array<i32>} : memref<40x128xf32, #tpu.memory_space<vmem>>, vector<4x128xf32>,
    %cst_12 = arith.constant 0.000000e+00 : f32
    %9 = vector.broadcast %cst_12 : f32 to vector<4x128xf32>
    %c0_13 = arith.constant 0 : index
    %c0_14 = arith.constant 0 : index
    %10 = vector.load %arg25[%c0_13, %c0_14] : memref<24x128xf32, #tpu.memory_space<vmem>>, vector<4x128xf32>
    tpu.vector_store %arg25[%c0_13, %c0_14], %9 {strides = array<i32>} : memref<24x128xf32, #tpu.memory_space<vmem>>, vector<4x128xf32>,
    %c20 = arith.constant 20 : index
    %c0_15 = arith.constant 0 : index
    %11 = vector.load %arg25[%c20, %c0_15] : memref<24x128xf32, #tpu.memory_space<vmem>>, vector<4x128xf32>
    tpu.vector_store %arg25[%c20, %c0_15], %9 {strides = array<i32>} : memref<24x128xf32, #tpu.memory_space<vmem>>, vector<4x128xf32>,
    %cst_16 = arith.constant 0.000000e+00 : f32
    %12 = vector.broadcast %cst_16 : f32 to vector<4x128xf32>
    %c0_17 = arith.constant 0 : index
    %c0_18 = arith.constant 0 : index
    %13 = vector.load %arg26[%c0_17, %c0_18] : memref<24x128xf32, #tpu.memory_space<vmem>>, vector<4x128xf32>
    tpu.vector_store %arg26[%c0_17, %c0_18], %12 {strides = array<i32>} : memref<24x128xf32, #tpu.memory_space<vmem>>, vector<4x128xf32>,
    %c20_19 = arith.constant 20 : index
    %c0_20 = arith.constant 0 : index
    %14 = vector.load %arg26[%c20_19, %c0_20] : memref<24x128xf32, #tpu.memory_space<vmem>>, vector<4x128xf32>
    tpu.vector_store %arg26[%c20_19, %c0_20], %12 {strides = array<i32>} : memref<24x128xf32, #tpu.memory_space<vmem>>, vector<4x128xf32>,
    %cst_21 = arith.constant 0.000000e+00 : f32
    %15 = vector.broadcast %cst_21 : f32 to vector<4x64xf32>
    %c0_22 = arith.constant 0 : index
    %c0_23 = arith.constant 0 : index
    %16 = vector.load %arg27[%c0_22, %c0_23] : memref<16x64xf32, #tpu.memory_space<vmem>>, vector<4x64xf32>
    tpu.vector_store %arg27[%c0_22, %c0_23], %15 {strides = array<i32>} : memref<16x64xf32, #tpu.memory_space<vmem>>, vector<4x64xf32>,
    %c12 = arith.constant 12 : index
    %c0_24 = arith.constant 0 : index
    %17 = vector.load %arg27[%c12, %c0_24] : memref<16x64xf32, #tpu.memory_space<vmem>>, vector<4x64xf32>
    tpu.vector_store %arg27[%c12, %c0_24], %15 {strides = array<i32>} : memref<16x64xf32, #tpu.memory_space<vmem>>, vector<4x64xf32>,
    %cst_25 = arith.constant 0.000000e+00 : f32
    %18 = vector.broadcast %cst_25 : f32 to vector<4x64xf32>
    %c0_26 = arith.constant 0 : index
    %c0_27 = arith.constant 0 : index
    %19 = vector.load %arg28[%c0_26, %c0_27] : memref<16x64xf32, #tpu.memory_space<vmem>>, vector<4x64xf32>
    tpu.vector_store %arg28[%c0_26, %c0_27], %18 {strides = array<i32>} : memref<16x64xf32, #tpu.memory_space<vmem>>, vector<4x64xf32>,
    %c12_28 = arith.constant 12 : index
    %c0_29 = arith.constant 0 : index
    %20 = vector.load %arg28[%c12_28, %c0_29] : memref<16x64xf32, #tpu.memory_space<vmem>>, vector<4x64xf32>
    tpu.vector_store %arg28[%c12_28, %c0_29], %18 {strides = array<i32>} : memref<16x64xf32, #tpu.memory_space<vmem>>, vector<4x64xf32>,
    %cst_30 = arith.constant 0.000000e+00 : f32
    %21 = vector.broadcast %cst_30 : f32 to vector<4x32xf32>
    %c0_31 = arith.constant 0 : index
    %c0_32 = arith.constant 0 : index
    %22 = vector.load %arg29[%c0_31, %c0_32] : memref<10x32xf32, #tpu.memory_space<vmem>>, vector<4x32xf32>
    tpu.vector_store %arg29[%c0_31, %c0_32], %21 {strides = array<i32>} : memref<10x32xf32, #tpu.memory_space<vmem>>, vector<4x32xf32>,
    %c6 = arith.constant 6 : index
    %c0_33 = arith.constant 0 : index
    %23 = vector.load %arg29[%c6, %c0_33] : memref<10x32xf32, #tpu.memory_space<vmem>>, vector<4x32xf32>
    tpu.vector_store %arg29[%c6, %c0_33], %21 {strides = array<i32>} : memref<10x32xf32, #tpu.memory_space<vmem>>, vector<4x32xf32>,
    %cst_34 = arith.constant 0.000000e+00 : f32
    %24 = vector.broadcast %cst_34 : f32 to vector<2x32xf32>
    %c0_35 = arith.constant 0 : index
    %c0_36 = arith.constant 0 : index
    %25 = vector.load %arg30[%c0_35, %c0_36] : memref<6x32xf32, #tpu.memory_space<vmem>>, vector<2x32xf32>
    tpu.vector_store %arg30[%c0_35, %c0_36], %24 {strides = array<i32>} : memref<6x32xf32, #tpu.memory_space<vmem>>, vector<2x32xf32>,
    %c4 = arith.constant 4 : index
    %c0_37 = arith.constant 0 : index
    %26 = vector.load %arg30[%c4, %c0_37] : memref<6x32xf32, #tpu.memory_space<vmem>>, vector<2x32xf32>
    tpu.vector_store %arg30[%c4, %c0_37], %24 {strides = array<i32>} : memref<6x32xf32, #tpu.memory_space<vmem>>, vector<2x32xf32>,
    %c0_38 = arith.constant 0 : index
    %c0_39 = arith.constant 0 : index
    %27 = vector.load %arg0[%c0_38, %c0_39] : memref<32x64xf32, #tpu.memory_space<vmem>>, vector<32x64xf32>
    %c4_40 = arith.constant 4 : index
    %c0_41 = arith.constant 0 : index
    %28 = vector.load %arg22[%c4_40, %c0_41] : memref<40x64xf32, #tpu.memory_space<vmem>>, vector<32x64xf32>
    tpu.vector_store %arg22[%c4_40, %c0_41], %27 {strides = array<i32>} : memref<40x64xf32, #tpu.memory_space<vmem>>, vector<32x64xf32>,
    %cst_42 = arith.constant 0.000000e+00 : f32
    %29 = vector.broadcast %cst_42 : f32 to vector<32x128xf32>
    %c0_43 = arith.constant 0 : index
    %c0_44 = arith.constant 0 : index
    %30 = vector.load %arg22[%c0_43, %c0_44] : memref<40x64xf32, #tpu.memory_space<vmem>>, vector<32x64xf32>
    %c0_45 = arith.constant 0 : index
    %c0_46 = arith.constant 0 : index
    %c0_47 = arith.constant 0 : index
    %31 = vector.load %arg1[%c0_45, %c0_46, %c0_47] : memref<5x64x128xf32, #tpu.memory_space<vmem>>, vector<1x64x128xf32>
    %32 = vector.shape_cast %31 : vector<1x64x128xf32> to vector<64x128xf32>
    %cst_48 = arith.constant dense<0.000000e+00> : vector<32x128xf32>
    %33 = tpu.matmul %30, %32, %cst_48 {dimension_numbers = #tpu.dot_dimension_numbers<[1], [0], [0], [1], [0, 0, 1, 1], [], []>} : vector<32x64xf32>, vector<64x128xf32>, vector<32x128xf32> -> vector<32x128xf32>
    %34 = arith.addf %29, %33 : vector<32x128xf32>
    %c2 = arith.constant 2 : index
    %c0_49 = arith.constant 0 : index
    %35 = vector.load %arg22[%c2, %c0_49] : memref<40x64xf32, #tpu.memory_space<vmem>>, vector<32x64xf32>
    %c1 = arith.constant 1 : index
    %c0_50 = arith.constant 0 : index
    %c0_51 = arith.constant 0 : index
    %36 = vector.load %arg1[%c1, %c0_50, %c0_51] : memref<5x64x128xf32, #tpu.memory_space<vmem>>, vector<1x64x128xf32>
    %37 = vector.shape_cast %36 : vector<1x64x128xf32> to vector<64x128xf32>
    %cst_52 = arith.constant dense<0.000000e+00> : vector<32x128xf32>
    %38 = tpu.matmul %35, %37, %cst_52 {dimension_numbers = #tpu.dot_dimension_numbers<[1], [0], [0], [1], [0, 0, 1, 1], [], []>} : vector<32x64xf32>, vector<64x128xf32>, vector<32x128xf32> -> vector<32x128xf32>
    %39 = arith.addf %34, %38 : vector<32x128xf32>
    %c4_53 = arith.constant 4 : index
    %c0_54 = arith.constant 0 : index
    %40 = vector.load %arg22[%c4_53, %c0_54] : memref<40x64xf32, #tpu.memory_space<vmem>>, vector<32x64xf32>
    %c2_55 = arith.constant 2 : index
    %c0_56 = arith.constant 0 : index
    %c0_57 = arith.constant 0 : index
    %41 = vector.load %arg1[%c2_55, %c0_56, %c0_57] : memref<5x64x128xf32, #tpu.memory_space<vmem>>, vector<1x64x128xf32>
    %42 = vector.shape_cast %41 : vector<1x64x128xf32> to vector<64x128xf32>
    %cst_58 = arith.constant dense<0.000000e+00> : vector<32x128xf32>
    %43 = tpu.matmul %40, %42, %cst_58 {dimension_numbers = #tpu.dot_dimension_numbers<[1], [0], [0], [1], [0, 0, 1, 1], [], []>} : vector<32x64xf32>, vector<64x128xf32>, vector<32x128xf32> -> vector<32x128xf32>
    %44 = arith.addf %39, %43 : vector<32x128xf32>
    %c6_59 = arith.constant 6 : index
    %c0_60 = arith.constant 0 : index
    %45 = vector.load %arg22[%c6_59, %c0_60] : memref<40x64xf32, #tpu.memory_space<vmem>>, vector<32x64xf32>
    %c3 = arith.constant 3 : index
    %c0_61 = arith.constant 0 : index
    %c0_62 = arith.constant 0 : index
    %46 = vector.load %arg1[%c3, %c0_61, %c0_62] : memref<5x64x128xf32, #tpu.memory_space<vmem>>, vector<1x64x128xf32>
    %47 = vector.shape_cast %46 : vector<1x64x128xf32> to vector<64x128xf32>
    %cst_63 = arith.constant dense<0.000000e+00> : vector<32x128xf32>
    %48 = tpu.matmul %45, %47, %cst_63 {dimension_numbers = #tpu.dot_dimension_numbers<[1], [0], [0], [1], [0, 0, 1, 1], [], []>} : vector<32x64xf32>, vector<64x128xf32>, vector<32x128xf32> -> vector<32x128xf32>
    %49 = arith.addf %44, %48 : vector<32x128xf32>
    %c8 = arith.constant 8 : index
    %c0_64 = arith.constant 0 : index
    %50 = vector.load %arg22[%c8, %c0_64] : memref<40x64xf32, #tpu.memory_space<vmem>>, vector<32x64xf32>
    %c4_65 = arith.constant 4 : index
    %c0_66 = arith.constant 0 : index
    %c0_67 = arith.constant 0 : index
    %51 = vector.load %arg1[%c4_65, %c0_66, %c0_67] : memref<5x64x128xf32, #tpu.memory_space<vmem>>, vector<1x64x128xf32>
    %52 = vector.shape_cast %51 : vector<1x64x128xf32> to vector<64x128xf32>
    %cst_68 = arith.constant dense<0.000000e+00> : vector<32x128xf32>
    %53 = tpu.matmul %50, %52, %cst_68 {dimension_numbers = #tpu.dot_dimension_numbers<[1], [0], [0], [1], [0, 0, 1, 1], [], []>} : vector<32x64xf32>, vector<64x128xf32>, vector<32x128xf32> -> vector<32x128xf32>
    %54 = arith.addf %49, %53 : vector<32x128xf32>
    %55 = tpu.iota {dimensions = array<i32: 0>} : vector<128x8xi32>
    %56 = tpu.iota {dimensions = array<i32: 1>} : vector<128x8xi32>
    %c7_i32 = arith.constant 7 : i32
    %57 = vector.broadcast %c7_i32 : i32 to vector<128x8xi32>
    %58 = arith.andi %55, %57 : vector<128x8xi32>
    %59 = arith.cmpi eq, %58, %56 : vector<128x8xi32>
    %cst_69 = arith.constant 1.000000e+00 : f32
    %cst_70 = arith.constant 0.000000e+00 : f32
    %60 = vector.broadcast %cst_69 : f32 to vector<128x8xf32>
    %61 = vector.broadcast %cst_70 : f32 to vector<128x8xf32>
    %62 = arith.select %59, %60, %61 : vector<128x8xi1>, vector<128x8xf32>
    %63 = tpu.iota {dimensions = array<i32: 1>} : vector<8x128xi32>
    %64 = tpu.iota {dimensions = array<i32: 0>} : vector<8x128xi32>
    %c7_i32_71 = arith.constant 7 : i32
    %65 = vector.broadcast %c7_i32_71 : i32 to vector<8x128xi32>
    %66 = arith.andi %63, %65 : vector<8x128xi32>
    %67 = arith.cmpi eq, %66, %64 : vector<8x128xi32>
    %cst_72 = arith.constant 1.000000e+00 : f32
    %cst_73 = arith.constant 0.000000e+00 : f32
    %68 = vector.broadcast %cst_72 : f32 to vector<8x128xf32>
    %69 = vector.broadcast %cst_73 : f32 to vector<8x128xf32>
    %70 = arith.select %67, %68, %69 : vector<8x128xi1>, vector<8x128xf32>
    %cst_74 = arith.constant dense<0.000000e+00> : vector<128xf32>
    %71 = vector.multi_reduction <add>, %54, %cst_74 [0] : vector<32x128xf32> to vector<128xf32>
    %72 = vector.shape_cast %71 : vector<128xf32> to vector<1x128xf32>
    %cst_75 = arith.constant dense<0.000000e+00> : vector<1x8xf32>
    %73 = tpu.matmul %72, %62, %cst_75 {dimension_numbers = #tpu.dot_dimension_numbers<[1], [0], [0], [1], [0, 0, 1, 1], [], []>} : vector<1x128xf32>, vector<128x8xf32>, vector<1x8xf32> -> vector<1x8xf32>
    %74 = arith.mulf %54, %54 : vector<32x128xf32>
    %cst_76 = arith.constant dense<0.000000e+00> : vector<128xf32>
    %75 = vector.multi_reduction <add>, %74, %cst_76 [0] : vector<32x128xf32> to vector<128xf32>
    %76 = vector.shape_cast %75 : vector<128xf32> to vector<1x128xf32>
    %cst_77 = arith.constant dense<0.000000e+00> : vector<1x8xf32>
    %77 = tpu.matmul %76, %62, %cst_77 {dimension_numbers = #tpu.dot_dimension_numbers<[1], [0], [0], [1], [0, 0, 1, 1], [], []>} : vector<1x128xf32>, vector<128x8xf32>, vector<1x8xf32> -> vector<1x8xf32>
    %cst_78 = arith.constant 0.001953125 : f32
    %78 = vector.broadcast %cst_78 : f32 to vector<1x8xf32>
    %79 = arith.mulf %73, %78 : vector<1x8xf32>
    %cst_79 = arith.constant 0.001953125 : f32
    %80 = vector.broadcast %cst_79 : f32 to vector<1x8xf32>
    %81 = arith.mulf %77, %80 : vector<1x8xf32>
    %82 = arith.mulf %79, %79 : vector<1x8xf32>
    %83 = arith.subf %81, %82 : vector<1x8xf32>
    %cst_80 = arith.constant 0.000000e+00 : f32
    %84 = vector.broadcast %cst_80 : f32 to vector<1x8xf32>
    %85 = arith.maximumf %83, %84 : vector<1x8xf32>
    %c0_81 = arith.constant 0 : index
    %c0_82 = arith.constant 0 : index
    %86 = vector.load %arg10[%c0_81, %c0_82] : memref<2x8xf32, #tpu.memory_space<vmem>>, vector<1x8xf32>
    %c1_83 = arith.constant 1 : index
    %c0_84 = arith.constant 0 : index
    %87 = vector.load %arg10[%c1_83, %c0_84] : memref<2x8xf32, #tpu.memory_space<vmem>>, vector<1x8xf32>
    %cst_85 = arith.constant 9.99999974E-6 : f32
    %88 = vector.broadcast %cst_85 : f32 to vector<1x8xf32>
    %89 = arith.addf %85, %88 : vector<1x8xf32>
    %90 = math.rsqrt %89 : vector<1x8xf32>
    %91 = arith.mulf %86, %90 : vector<1x8xf32>
    %92 = arith.mulf %79, %91 : vector<1x8xf32>
    %93 = arith.subf %87, %92 : vector<1x8xf32>
    %cst_86 = arith.constant dense<0.000000e+00> : vector<1x128xf32>
    %94 = tpu.matmul %91, %70, %cst_86 {dimension_numbers = #tpu.dot_dimension_numbers<[1], [0], [0], [1], [0, 0, 1, 1], [], []>} : vector<1x8xf32>, vector<8x128xf32>, vector<1x128xf32> -> vector<1x128xf32>
    %cst_87 = arith.constant dense<0.000000e+00> : vector<1x128xf32>
    %95 = tpu.matmul %93, %70, %cst_87 {dimension_numbers = #tpu.dot_dimension_numbers<[1], [0], [0], [1], [0, 0, 1, 1], [], []>} : vector<1x8xf32>, vector<8x128xf32>, vector<1x128xf32> -> vector<1x128xf32>
    %96 = vector.broadcast %94 : vector<1x128xf32> to vector<32x128xf32>
    %97 = arith.mulf %54, %96 : vector<32x128xf32>
    %98 = vector.broadcast %95 : vector<1x128xf32> to vector<32x128xf32>
    %99 = arith.addf %97, %98 : vector<32x128xf32>
    %cst_88 = arith.constant 0.000000e+00 : f32
    %100 = vector.broadcast %cst_88 : f32 to vector<32x128xf32>
    %101 = arith.cmpf ogt, %99, %100 : vector<32x128xf32>
    %cst_89 = arith.constant 2.000000e-01 : f32
    %102 = vector.broadcast %cst_89 : f32 to vector<32x128xf32>
    %103 = arith.mulf %102, %99 : vector<32x128xf32>
    %104 = arith.select %101, %99, %103 : vector<32x128xi1>, vector<32x128xf32>
    %c4_90 = arith.constant 4 : index
    %c0_91 = arith.constant 0 : index
    %105 = vector.load %arg23[%c4_90, %c0_91] : memref<40x128xf32, #tpu.memory_space<vmem>>, vector<32x128xf32>
    tpu.vector_store %arg23[%c4_90, %c0_91], %104 {strides = array<i32>} : memref<40x128xf32, #tpu.memory_space<vmem>>, vector<32x128xf32>,
    %cst_92 = arith.constant 0.000000e+00 : f32
    %106 = vector.broadcast %cst_92 : f32 to vector<32x128xf32>
    %c0_93 = arith.constant 0 : index
    %c0_94 = arith.constant 0 : index
    %107 = vector.load %arg23[%c0_93, %c0_94] : memref<40x128xf32, #tpu.memory_space<vmem>>, vector<32x128xf32>
    %c0_95 = arith.constant 0 : index
    %c0_96 = arith.constant 0 : index
    %c0_97 = arith.constant 0 : index
    %108 = vector.load %arg2[%c0_95, %c0_96, %c0_97] : memref<5x128x128xf32, #tpu.memory_space<vmem>>, vector<1x128x128xf32>
    %109 = vector.shape_cast %108 : vector<1x128x128xf32> to vector<128x128xf32>
    %cst_98 = arith.constant dense<0.000000e+00> : vector<32x128xf32>
    %110 = tpu.matmul %107, %109, %cst_98 {dimension_numbers = #tpu.dot_dimension_numbers<[1], [0], [0], [1], [0, 0, 1, 1], [], []>} : vector<32x128xf32>, vector<128x128xf32>, vector<32x128xf32> -> vector<32x128xf32>
    %111 = arith.addf %106, %110 : vector<32x128xf32>
    %c2_99 = arith.constant 2 : index
    %c0_100 = arith.constant 0 : index
    %112 = vector.load %arg23[%c2_99, %c0_100] : memref<40x128xf32, #tpu.memory_space<vmem>>, vector<32x128xf32>
    %c1_101 = arith.constant 1 : index
    %c0_102 = arith.constant 0 : index
    %c0_103 = arith.constant 0 : index
    %113 = vector.load %arg2[%c1_101, %c0_102, %c0_103] : memref<5x128x128xf32, #tpu.memory_space<vmem>>, vector<1x128x128xf32>
    %114 = vector.shape_cast %113 : vector<1x128x128xf32> to vector<128x128xf32>
    %cst_104 = arith.constant dense<0.000000e+00> : vector<32x128xf32>
    %115 = tpu.matmul %112, %114, %cst_104 {dimension_numbers = #tpu.dot_dimension_numbers<[1], [0], [0], [1], [0, 0, 1, 1], [], []>} : vector<32x128xf32>, vector<128x128xf32>, vector<32x128xf32> -> vector<32x128xf32>
    %116 = arith.addf %111, %115 : vector<32x128xf32>
    %c4_105 = arith.constant 4 : index
    %c0_106 = arith.constant 0 : index
    %117 = vector.load %arg23[%c4_105, %c0_106] : memref<40x128xf32, #tpu.memory_space<vmem>>, vector<32x128xf32>
    %c2_107 = arith.constant 2 : index
    %c0_108 = arith.constant 0 : index
    %c0_109 = arith.constant 0 : index
    %118 = vector.load %arg2[%c2_107, %c0_108, %c0_109] : memref<5x128x128xf32, #tpu.memory_space<vmem>>, vector<1x128x128xf32>
    %119 = vector.shape_cast %118 : vector<1x128x128xf32> to vector<128x128xf32>
    %cst_110 = arith.constant dense<0.000000e+00> : vector<32x128xf32>
    %120 = tpu.matmul %117, %119, %cst_110 {dimension_numbers = #tpu.dot_dimension_numbers<[1], [0], [0], [1], [0, 0, 1, 1], [], []>} : vector<32x128xf32>, vector<128x128xf32>, vector<32x128xf32> -> vector<32x128xf32>
    %121 = arith.addf %116, %120 : vector<32x128xf32>
    %c6_111 = arith.constant 6 : index
    %c0_112 = arith.constant 0 : index
    %122 = vector.load %arg23[%c6_111, %c0_112] : memref<40x128xf32, #tpu.memory_space<vmem>>, vector<32x128xf32>
    %c3_113 = arith.constant 3 : index
    %c0_114 = arith.constant 0 : index
    %c0_115 = arith.constant 0 : index
    %123 = vector.load %arg2[%c3_113, %c0_114, %c0_115] : memref<5x128x128xf32, #tpu.memory_space<vmem>>, vector<1x128x128xf32>
    %124 = vector.shape_cast %123 : vector<1x128x128xf32> to vector<128x128xf32>
    %cst_116 = arith.constant dense<0.000000e+00> : vector<32x128xf32>
    %125 = tpu.matmul %122, %124, %cst_116 {dimension_numbers = #tpu.dot_dimension_numbers<[1], [0], [0], [1], [0, 0, 1, 1], [], []>} : vector<32x128xf32>, vector<128x128xf32>, vector<32x128xf32> -> vector<32x128xf32>
    %126 = arith.addf %121, %125 : vector<32x128xf32>
    %c8_117 = arith.constant 8 : index
    %c0_118 = arith.constant 0 : index
    %127 = vector.load %arg23[%c8_117, %c0_118] : memref<40x128xf32, #tpu.memory_space<vmem>>, vector<32x128xf32>
    %c4_119 = arith.constant 4 : index
    %c0_120 = arith.constant 0 : index
    %c0_121 = arith.constant 0 : index
    %128 = vector.load %arg2[%c4_119, %c0_120, %c0_121] : memref<5x128x128xf32, #tpu.memory_space<vmem>>, vector<1x128x128xf32>
    %129 = vector.shape_cast %128 : vector<1x128x128xf32> to vector<128x128xf32>
    %cst_122 = arith.constant dense<0.000000e+00> : vector<32x128xf32>
    %130 = tpu.matmul %127, %129, %cst_122 {dimension_numbers = #tpu.dot_dimension_numbers<[1], [0], [0], [1], [0, 0, 1, 1], [], []>} : vector<32x128xf32>, vector<128x128xf32>, vector<32x128xf32> -> vector<32x128xf32>
    %131 = arith.addf %126, %130 : vector<32x128xf32>
    %132 = tpu.iota {dimensions = array<i32: 0>} : vector<128x8xi32>
    %133 = tpu.iota {dimensions = array<i32: 1>} : vector<128x8xi32>
    %c7_i32_123 = arith.constant 7 : i32
    %134 = vector.broadcast %c7_i32_123 : i32 to vector<128x8xi32>
    %135 = arith.andi %132, %134 : vector<128x8xi32>
    %136 = arith.cmpi eq, %135, %133 : vector<128x8xi32>
    %cst_124 = arith.constant 1.000000e+00 : f32
    %cst_125 = arith.constant 0.000000e+00 : f32
    %137 = vector.broadcast %cst_124 : f32 to vector<128x8xf32>
    %138 = vector.broadcast %cst_125 : f32 to vector<128x8xf32>
    %139 = arith.select %136, %137, %138 : vector<128x8xi1>, vector<128x8xf32>
    %140 = tpu.iota {dimensions = array<i32: 1>} : vector<8x128xi32>
    %141 = tpu.iota {dimensions = array<i32: 0>} : vector<8x128xi32>
    %c7_i32_126 = arith.constant 7 : i32
    %142 = vector.broadcast %c7_i32_126 : i32 to vector<8x128xi32>
    %143 = arith.andi %140, %142 : vector<8x128xi32>
    %144 = arith.cmpi eq, %143, %141 : vector<8x128xi32>
    %cst_127 = arith.constant 1.000000e+00 : f32
    %cst_128 = arith.constant 0.000000e+00 : f32
    %145 = vector.broadcast %cst_127 : f32 to vector<8x128xf32>
    %146 = vector.broadcast %cst_128 : f32 to vector<8x128xf32>
    %147 = arith.select %144, %145, %146 : vector<8x128xi1>, vector<8x128xf32>
    %cst_129 = arith.constant dense<0.000000e+00> : vector<128xf32>
    %148 = vector.multi_reduction <add>, %131, %cst_129 [0] : vector<32x128xf32> to vector<128xf32>
    %149 = vector.shape_cast %148 : vector<128xf32> to vector<1x128xf32>
    %cst_130 = arith.constant dense<0.000000e+00> : vector<1x8xf32>
    %150 = tpu.matmul %149, %139, %cst_130 {dimension_numbers = #tpu.dot_dimension_numbers<[1], [0], [0], [1], [0, 0, 1, 1], [], []>} : vector<1x128xf32>, vector<128x8xf32>, vector<1x8xf32> -> vector<1x8xf32>
    %151 = arith.mulf %131, %131 : vector<32x128xf32>
    %cst_131 = arith.constant dense<0.000000e+00> : vector<128xf32>
    %152 = vector.multi_reduction <add>, %151, %cst_131 [0] : vector<32x128xf32> to vector<128xf32>
    %153 = vector.shape_cast %152 : vector<128xf32> to vector<1x128xf32>
    %cst_132 = arith.constant dense<0.000000e+00> : vector<1x8xf32>
    %154 = tpu.matmul %153, %139, %cst_132 {dimension_numbers = #tpu.dot_dimension_numbers<[1], [0], [0], [1], [0, 0, 1, 1], [], []>} : vector<1x128xf32>, vector<128x8xf32>, vector<1x8xf32> -> vector<1x8xf32>
    %cst_133 = arith.constant 0.001953125 : f32
    %155 = vector.broadcast %cst_133 : f32 to vector<1x8xf32>
    %156 = arith.mulf %150, %155 : vector<1x8xf32>
    %cst_134 = arith.constant 0.001953125 : f32
    %157 = vector.broadcast %cst_134 : f32 to vector<1x8xf32>
    %158 = arith.mulf %154, %157 : vector<1x8xf32>
    %159 = arith.mulf %156, %156 : vector<1x8xf32>
    %160 = arith.subf %158, %159 : vector<1x8xf32>
    %cst_135 = arith.constant 0.000000e+00 : f32
    %161 = vector.broadcast %cst_135 : f32 to vector<1x8xf32>
    %162 = arith.maximumf %160, %161 : vector<1x8xf32>
    %c0_136 = arith.constant 0 : index
    %c0_137 = arith.constant 0 : index
    %163 = vector.load %arg11[%c0_136, %c0_137] : memref<2x8xf32, #tpu.memory_space<vmem>>, vector<1x8xf32>
    %c1_138 = arith.constant 1 : index
    %c0_139 = arith.constant 0 : index
    %164 = vector.load %arg11[%c1_138, %c0_139] : memref<2x8xf32, #tpu.memory_space<vmem>>, vector<1x8xf32>
    %cst_140 = arith.constant 9.99999974E-6 : f32
    %165 = vector.broadcast %cst_140 : f32 to vector<1x8xf32>
    %166 = arith.addf %162, %165 : vector<1x8xf32>
    %167 = math.rsqrt %166 : vector<1x8xf32>
    %168 = arith.mulf %163, %167 : vector<1x8xf32>
    %169 = arith.mulf %156, %168 : vector<1x8xf32>
    %170 = arith.subf %164, %169 : vector<1x8xf32>
    %cst_141 = arith.constant dense<0.000000e+00> : vector<1x128xf32>
    %171 = tpu.matmul %168, %147, %cst_141 {dimension_numbers = #tpu.dot_dimension_numbers<[1], [0], [0], [1], [0, 0, 1, 1], [], []>} : vector<1x8xf32>, vector<8x128xf32>, vector<1x128xf32> -> vector<1x128xf32>
    %cst_142 = arith.constant dense<0.000000e+00> : vector<1x128xf32>
    %172 = tpu.matmul %170, %147, %cst_142 {dimension_numbers = #tpu.dot_dimension_numbers<[1], [0], [0], [1], [0, 0, 1, 1], [], []>} : vector<1x8xf32>, vector<8x128xf32>, vector<1x128xf32> -> vector<1x128xf32>
    %173 = vector.broadcast %171 : vector<1x128xf32> to vector<32x128xf32>
    %174 = arith.mulf %131, %173 : vector<32x128xf32>
    %175 = vector.broadcast %172 : vector<1x128xf32> to vector<32x128xf32>
    %176 = arith.addf %174, %175 : vector<32x128xf32>
    %cst_143 = arith.constant 0.000000e+00 : f32
    %177 = vector.broadcast %cst_143 : f32 to vector<32x128xf32>
    %178 = arith.cmpf ogt, %176, %177 : vector<32x128xf32>
    %cst_144 = arith.constant 2.000000e-01 : f32
    %179 = vector.broadcast %cst_144 : f32 to vector<32x128xf32>
    %180 = arith.mulf %179, %176 : vector<32x128xf32>
    %181 = arith.select %178, %176, %180 : vector<32x128xi1>, vector<32x128xf32>
    %c4_145 = arith.constant 4 : index
    %c0_146 = arith.constant 0 : index
    %182 = vector.load %arg24[%c4_145, %c0_146] : memref<40x128xf32, #tpu.memory_space<vmem>>, vector<32x128xf32>
    tpu.vector_store %arg24[%c4_145, %c0_146], %181 {strides = array<i32>} : memref<40x128xf32, #tpu.memory_space<vmem>>, vector<32x128xf32>,
    %cst_147 = arith.constant 0.000000e+00 : f32
    %183 = vector.broadcast %cst_147 : f32 to vector<16x128xf32>
    %c0_148 = arith.constant 0 : index
    %c0_149 = arith.constant 0 : index
    %184 = vector.load %arg24[%c0_148, %c0_149] : memref<40x128xf32, #tpu.memory_space<vmem>>, vector<30x128xf32>
    %c0_150 = arith.constant 0 : index
    %c0_151 = arith.constant 0 : index
    %185 = vector.load %arg19[%c0_150, %c0_151] : memref<16x30xf32, #tpu.memory_space<vmem>>, vector<16x30xf32>
    %cst_152 = arith.constant dense<0.000000e+00> : vector<16x128xf32>
    %186 = tpu.matmul %185, %184, %cst_152 {dimension_numbers = #tpu.dot_dimension_numbers<[1], [0], [0], [1], [0, 0, 1, 1], [], []>} : vector<16x30xf32>, vector<30x128xf32>, vector<16x128xf32> -> vector<16x128xf32>
    %c0_153 = arith.constant 0 : index
    %c0_154 = arith.constant 0 : index
    %c0_155 = arith.constant 0 : index
    %187 = vector.load %arg3[%c0_153, %c0_154, %c0_155] : memref<5x128x128xf32, #tpu.memory_space<vmem>>, vector<1x128x128xf32>
    %188 = vector.shape_cast %187 : vector<1x128x128xf32> to vector<128x128xf32>
    %cst_156 = arith.constant dense<0.000000e+00> : vector<16x128xf32>
    %189 = tpu.matmul %186, %188, %cst_156 {dimension_numbers = #tpu.dot_dimension_numbers<[1], [0], [0], [1], [0, 0, 1, 1], [], []>} : vector<16x128xf32>, vector<128x128xf32>, vector<16x128xf32> -> vector<16x128xf32>
    %190 = arith.addf %183, %189 : vector<16x128xf32>
    %c2_157 = arith.constant 2 : index
    %c0_158 = arith.constant 0 : index
    %191 = vector.load %arg24[%c2_157, %c0_158] : memref<40x128xf32, #tpu.memory_space<vmem>>, vector<30x128xf32>
    %c0_159 = arith.constant 0 : index
    %c0_160 = arith.constant 0 : index
    %192 = vector.load %arg19[%c0_159, %c0_160] : memref<16x30xf32, #tpu.memory_space<vmem>>, vector<16x30xf32>
    %cst_161 = arith.constant dense<0.000000e+00> : vector<16x128xf32>
    %193 = tpu.matmul %192, %191, %cst_161 {dimension_numbers = #tpu.dot_dimension_numbers<[1], [0], [0], [1], [0, 0, 1, 1], [], []>} : vector<16x30xf32>, vector<30x128xf32>, vector<16x128xf32> -> vector<16x128xf32>
    %c1_162 = arith.constant 1 : index
    %c0_163 = arith.constant 0 : index
    %c0_164 = arith.constant 0 : index
    %194 = vector.load %arg3[%c1_162, %c0_163, %c0_164] : memref<5x128x128xf32, #tpu.memory_space<vmem>>, vector<1x128x128xf32>
    %195 = vector.shape_cast %194 : vector<1x128x128xf32> to vector<128x128xf32>
    %cst_165 = arith.constant dense<0.000000e+00> : vector<16x128xf32>
    %196 = tpu.matmul %193, %195, %cst_165 {dimension_numbers = #tpu.dot_dimension_numbers<[1], [0], [0], [1], [0, 0, 1, 1], [], []>} : vector<16x128xf32>, vector<128x128xf32>, vector<16x128xf32> -> vector<16x128xf32>
    %197 = arith.addf %190, %196 : vector<16x128xf32>
    %c4_166 = arith.constant 4 : index
    %c0_167 = arith.constant 0 : index
    %198 = vector.load %arg24[%c4_166, %c0_167] : memref<40x128xf32, #tpu.memory_space<vmem>>, vector<30x128xf32>
    %c0_168 = arith.constant 0 : index
    %c0_169 = arith.constant 0 : index
    %199 = vector.load %arg19[%c0_168, %c0_169] : memref<16x30xf32, #tpu.memory_space<vmem>>, vector<16x30xf32>
    %cst_170 = arith.constant dense<0.000000e+00> : vector<16x128xf32>
    %200 = tpu.matmul %199, %198, %cst_170 {dimension_numbers = #tpu.dot_dimension_numbers<[1], [0], [0], [1], [0, 0, 1, 1], [], []>} : vector<16x30xf32>, vector<30x128xf32>, vector<16x128xf32> -> vector<16x128xf32>
    %c2_171 = arith.constant 2 : index
    %c0_172 = arith.constant 0 : index
    %c0_173 = arith.constant 0 : index
    %201 = vector.load %arg3[%c2_171, %c0_172, %c0_173] : memref<5x128x128xf32, #tpu.memory_space<vmem>>, vector<1x128x128xf32>
    %202 = vector.shape_cast %201 : vector<1x128x128xf32> to vector<128x128xf32>
    %cst_174 = arith.constant dense<0.000000e+00> : vector<16x128xf32>
    %203 = tpu.matmul %200, %202, %cst_174 {dimension_numbers = #tpu.dot_dimension_numbers<[1], [0], [0], [1], [0, 0, 1, 1], [], []>} : vector<16x128xf32>, vector<128x128xf32>, vector<16x128xf32> -> vector<16x128xf32>
    %204 = arith.addf %197, %203 : vector<16x128xf32>
    %c6_175 = arith.constant 6 : index
    %c0_176 = arith.constant 0 : index
    %205 = vector.load %arg24[%c6_175, %c0_176] : memref<40x128xf32, #tpu.memory_space<vmem>>, vector<30x128xf32>
    %c0_177 = arith.constant 0 : index
    %c0_178 = arith.constant 0 : index
    %206 = vector.load %arg19[%c0_177, %c0_178] : memref<16x30xf32, #tpu.memory_space<vmem>>, vector<16x30xf32>
    %cst_179 = arith.constant dense<0.000000e+00> : vector<16x128xf32>
    %207 = tpu.matmul %206, %205, %cst_179 {dimension_numbers = #tpu.dot_dimension_numbers<[1], [0], [0], [1], [0, 0, 1, 1], [], []>} : vector<16x30xf32>, vector<30x128xf32>, vector<16x128xf32> -> vector<16x128xf32>
    %c3_180 = arith.constant 3 : index
    %c0_181 = arith.constant 0 : index
    %c0_182 = arith.constant 0 : index
    %208 = vector.load %arg3[%c3_180, %c0_181, %c0_182] : memref<5x128x128xf32, #tpu.memory_space<vmem>>, vector<1x128x128xf32>
    %209 = vector.shape_cast %208 : vector<1x128x128xf32> to vector<128x128xf32>
    %cst_183 = arith.constant dense<0.000000e+00> : vector<16x128xf32>
    %210 = tpu.matmul %207, %209, %cst_183 {dimension_numbers = #tpu.dot_dimension_numbers<[1], [0], [0], [1], [0, 0, 1, 1], [], []>} : vector<16x128xf32>, vector<128x128xf32>, vector<16x128xf32> -> vector<16x128xf32>
    %211 = arith.addf %204, %210 : vector<16x128xf32>
    %c8_184 = arith.constant 8 : index
    %c0_185 = arith.constant 0 : index
    %212 = vector.load %arg24[%c8_184, %c0_185] : memref<40x128xf32, #tpu.memory_space<vmem>>, vector<30x128xf32>
    %c0_186 = arith.constant 0 : index
    %c0_187 = arith.constant 0 : index
    %213 = vector.load %arg19[%c0_186, %c0_187] : memref<16x30xf32, #tpu.memory_space<vmem>>, vector<16x30xf32>
    %cst_188 = arith.constant dense<0.000000e+00> : vector<16x128xf32>
    %214 = tpu.matmul %213, %212, %cst_188 {dimension_numbers = #tpu.dot_dimension_numbers<[1], [0], [0], [1], [0, 0, 1, 1], [], []>} : vector<16x30xf32>, vector<30x128xf32>, vector<16x128xf32> -> vector<16x128xf32>
    %c4_189 = arith.constant 4 : index
    %c0_190 = arith.constant 0 : index
    %c0_191 = arith.constant 0 : index
    %215 = vector.load %arg3[%c4_189, %c0_190, %c0_191] : memref<5x128x128xf32, #tpu.memory_space<vmem>>, vector<1x128x128xf32>
    %216 = vector.shape_cast %215 : vector<1x128x128xf32> to vector<128x128xf32>
    %cst_192 = arith.constant dense<0.000000e+00> : vector<16x128xf32>
    %217 = tpu.matmul %214, %216, %cst_192 {dimension_numbers = #tpu.dot_dimension_numbers<[1], [0], [0], [1], [0, 0, 1, 1], [], []>} : vector<16x128xf32>, vector<128x128xf32>, vector<16x128xf32> -> vector<16x128xf32>
    %218 = arith.addf %211, %217 : vector<16x128xf32>
    %219 = tpu.iota {dimensions = array<i32: 0>} : vector<128x16xi32>
    %220 = tpu.iota {dimensions = array<i32: 1>} : vector<128x16xi32>
    %c15_i32 = arith.constant 15 : i32
    %221 = vector.broadcast %c15_i32 : i32 to vector<128x16xi32>
    %222 = arith.andi %219, %221 : vector<128x16xi32>
    %223 = arith.cmpi eq, %222, %220 : vector<128x16xi32>
    %cst_193 = arith.constant 1.000000e+00 : f32
    %cst_194 = arith.constant 0.000000e+00 : f32
    %224 = vector.broadcast %cst_193 : f32 to vector<128x16xf32>
    %225 = vector.broadcast %cst_194 : f32 to vector<128x16xf32>
    %226 = arith.select %223, %224, %225 : vector<128x16xi1>, vector<128x16xf32>
    %227 = tpu.iota {dimensions = array<i32: 1>} : vector<16x128xi32>
    %228 = tpu.iota {dimensions = array<i32: 0>} : vector<16x128xi32>
    %c15_i32_195 = arith.constant 15 : i32
    %229 = vector.broadcast %c15_i32_195 : i32 to vector<16x128xi32>
    %230 = arith.andi %227, %229 : vector<16x128xi32>
    %231 = arith.cmpi eq, %230, %228 : vector<16x128xi32>
    %cst_196 = arith.constant 1.000000e+00 : f32
    %cst_197 = arith.constant 0.000000e+00 : f32
    %232 = vector.broadcast %cst_196 : f32 to vector<16x128xf32>
    %233 = vector.broadcast %cst_197 : f32 to vector<16x128xf32>
    %234 = arith.select %231, %232, %233 : vector<16x128xi1>, vector<16x128xf32>
    %cst_198 = arith.constant dense<0.000000e+00> : vector<128xf32>
    %235 = vector.multi_reduction <add>, %218, %cst_198 [0] : vector<16x128xf32> to vector<128xf32>
    %236 = vector.shape_cast %235 : vector<128xf32> to vector<1x128xf32>
    %cst_199 = arith.constant dense<0.000000e+00> : vector<1x16xf32>
    %237 = tpu.matmul %236, %226, %cst_199 {dimension_numbers = #tpu.dot_dimension_numbers<[1], [0], [0], [1], [0, 0, 1, 1], [], []>} : vector<1x128xf32>, vector<128x16xf32>, vector<1x16xf32> -> vector<1x16xf32>
    %238 = arith.mulf %218, %218 : vector<16x128xf32>
    %cst_200 = arith.constant dense<0.000000e+00> : vector<128xf32>
    %239 = vector.multi_reduction <add>, %238, %cst_200 [0] : vector<16x128xf32> to vector<128xf32>
    %240 = vector.shape_cast %239 : vector<128xf32> to vector<1x128xf32>
    %cst_201 = arith.constant dense<0.000000e+00> : vector<1x16xf32>
    %241 = tpu.matmul %240, %226, %cst_201 {dimension_numbers = #tpu.dot_dimension_numbers<[1], [0], [0], [1], [0, 0, 1, 1], [], []>} : vector<1x128xf32>, vector<128x16xf32>, vector<1x16xf32> -> vector<1x16xf32>
    %cst_202 = arith.constant 7.812500e-03 : f32
    %242 = vector.broadcast %cst_202 : f32 to vector<1x16xf32>
    %243 = arith.mulf %237, %242 : vector<1x16xf32>
    %cst_203 = arith.constant 7.812500e-03 : f32
    %244 = vector.broadcast %cst_203 : f32 to vector<1x16xf32>
    %245 = arith.mulf %241, %244 : vector<1x16xf32>
    %246 = arith.mulf %243, %243 : vector<1x16xf32>
    %247 = arith.subf %245, %246 : vector<1x16xf32>
    %cst_204 = arith.constant 0.000000e+00 : f32
    %248 = vector.broadcast %cst_204 : f32 to vector<1x16xf32>
    %249 = arith.maximumf %247, %248 : vector<1x16xf32>
    %c0_205 = arith.constant 0 : index
    %c0_206 = arith.constant 0 : index
    %250 = vector.load %arg12[%c0_205, %c0_206] : memref<2x16xf32, #tpu.memory_space<vmem>>, vector<1x16xf32>
    %c1_207 = arith.constant 1 : index
    %c0_208 = arith.constant 0 : index
    %251 = vector.load %arg12[%c1_207, %c0_208] : memref<2x16xf32, #tpu.memory_space<vmem>>, vector<1x16xf32>
    %cst_209 = arith.constant 9.99999974E-6 : f32
    %252 = vector.broadcast %cst_209 : f32 to vector<1x16xf32>
    %253 = arith.addf %249, %252 : vector<1x16xf32>
    %254 = math.rsqrt %253 : vector<1x16xf32>
    %255 = arith.mulf %250, %254 : vector<1x16xf32>
    %256 = arith.mulf %243, %255 : vector<1x16xf32>
    %257 = arith.subf %251, %256 : vector<1x16xf32>
    %cst_210 = arith.constant dense<0.000000e+00> : vector<1x128xf32>
    %258 = tpu.matmul %255, %234, %cst_210 {dimension_numbers = #tpu.dot_dimension_numbers<[1], [0], [0], [1], [0, 0, 1, 1], [], []>} : vector<1x16xf32>, vector<16x128xf32>, vector<1x128xf32> -> vector<1x128xf32>
    %cst_211 = arith.constant dense<0.000000e+00> : vector<1x128xf32>
    %259 = tpu.matmul %257, %234, %cst_211 {dimension_numbers = #tpu.dot_dimension_numbers<[1], [0], [0], [1], [0, 0, 1, 1], [], []>} : vector<1x16xf32>, vector<16x128xf32>, vector<1x128xf32> -> vector<1x128xf32>
    %260 = vector.broadcast %258 : vector<1x128xf32> to vector<16x128xf32>
    %261 = arith.mulf %218, %260 : vector<16x128xf32>
    %262 = vector.broadcast %259 : vector<1x128xf32> to vector<16x128xf32>
    %263 = arith.addf %261, %262 : vector<16x128xf32>
    %cst_212 = arith.constant 0.000000e+00 : f32
    %264 = vector.broadcast %cst_212 : f32 to vector<16x128xf32>
    %265 = arith.cmpf ogt, %263, %264 : vector<16x128xf32>
    %cst_213 = arith.constant 2.000000e-01 : f32
    %266 = vector.broadcast %cst_213 : f32 to vector<16x128xf32>
    %267 = arith.mulf %266, %263 : vector<16x128xf32>
    %268 = arith.select %265, %263, %267 : vector<16x128xi1>, vector<16x128xf32>
    %c4_214 = arith.constant 4 : index
    %c0_215 = arith.constant 0 : index
    %269 = vector.load %arg25[%c4_214, %c0_215] : memref<24x128xf32, #tpu.memory_space<vmem>>, vector<16x128xf32>
    tpu.vector_store %arg25[%c4_214, %c0_215], %268 {strides = array<i32>} : memref<24x128xf32, #tpu.memory_space<vmem>>, vector<16x128xf32>,
    %cst_216 = arith.constant 0.000000e+00 : f32
    %270 = vector.broadcast %cst_216 : f32 to vector<16x128xf32>
    %c0_217 = arith.constant 0 : index
    %c0_218 = arith.constant 0 : index
    %271 = vector.load %arg25[%c0_217, %c0_218] : memref<24x128xf32, #tpu.memory_space<vmem>>, vector<16x128xf32>
    %c0_219 = arith.constant 0 : index
    %c0_220 = arith.constant 0 : index
    %c0_221 = arith.constant 0 : index
    %272 = vector.load %arg4[%c0_219, %c0_220, %c0_221] : memref<5x128x128xf32, #tpu.memory_space<vmem>>, vector<1x128x128xf32>
    %273 = vector.shape_cast %272 : vector<1x128x128xf32> to vector<128x128xf32>
    %cst_222 = arith.constant dense<0.000000e+00> : vector<16x128xf32>
    %274 = tpu.matmul %271, %273, %cst_222 {dimension_numbers = #tpu.dot_dimension_numbers<[1], [0], [0], [1], [0, 0, 1, 1], [], []>} : vector<16x128xf32>, vector<128x128xf32>, vector<16x128xf32> -> vector<16x128xf32>
    %275 = arith.addf %270, %274 : vector<16x128xf32>
    %c2_223 = arith.constant 2 : index
    %c0_224 = arith.constant 0 : index
    %276 = vector.load %arg25[%c2_223, %c0_224] : memref<24x128xf32, #tpu.memory_space<vmem>>, vector<16x128xf32>
    %c1_225 = arith.constant 1 : index
    %c0_226 = arith.constant 0 : index
    %c0_227 = arith.constant 0 : index
    %277 = vector.load %arg4[%c1_225, %c0_226, %c0_227] : memref<5x128x128xf32, #tpu.memory_space<vmem>>, vector<1x128x128xf32>
    %278 = vector.shape_cast %277 : vector<1x128x128xf32> to vector<128x128xf32>
    %cst_228 = arith.constant dense<0.000000e+00> : vector<16x128xf32>
    %279 = tpu.matmul %276, %278, %cst_228 {dimension_numbers = #tpu.dot_dimension_numbers<[1], [0], [0], [1], [0, 0, 1, 1], [], []>} : vector<16x128xf32>, vector<128x128xf32>, vector<16x128xf32> -> vector<16x128xf32>
    %280 = arith.addf %275, %279 : vector<16x128xf32>
    %c4_229 = arith.constant 4 : index
    %c0_230 = arith.constant 0 : index
    %281 = vector.load %arg25[%c4_229, %c0_230] : memref<24x128xf32, #tpu.memory_space<vmem>>, vector<16x128xf32>
    %c2_231 = arith.constant 2 : index
    %c0_232 = arith.constant 0 : index
    %c0_233 = arith.constant 0 : index
    %282 = vector.load %arg4[%c2_231, %c0_232, %c0_233] : memref<5x128x128xf32, #tpu.memory_space<vmem>>, vector<1x128x128xf32>
    %283 = vector.shape_cast %282 : vector<1x128x128xf32> to vector<128x128xf32>
    %cst_234 = arith.constant dense<0.000000e+00> : vector<16x128xf32>
    %284 = tpu.matmul %281, %283, %cst_234 {dimension_numbers = #tpu.dot_dimension_numbers<[1], [0], [0], [1], [0, 0, 1, 1], [], []>} : vector<16x128xf32>, vector<128x128xf32>, vector<16x128xf32> -> vector<16x128xf32>
    %285 = arith.addf %280, %284 : vector<16x128xf32>
    %c6_235 = arith.constant 6 : index
    %c0_236 = arith.constant 0 : index
    %286 = vector.load %arg25[%c6_235, %c0_236] : memref<24x128xf32, #tpu.memory_space<vmem>>, vector<16x128xf32>
    %c3_237 = arith.constant 3 : index
    %c0_238 = arith.constant 0 : index
    %c0_239 = arith.constant 0 : index
    %287 = vector.load %arg4[%c3_237, %c0_238, %c0_239] : memref<5x128x128xf32, #tpu.memory_space<vmem>>, vector<1x128x128xf32>
    %288 = vector.shape_cast %287 : vector<1x128x128xf32> to vector<128x128xf32>
    %cst_240 = arith.constant dense<0.000000e+00> : vector<16x128xf32>
    %289 = tpu.matmul %286, %288, %cst_240 {dimension_numbers = #tpu.dot_dimension_numbers<[1], [0], [0], [1], [0, 0, 1, 1], [], []>} : vector<16x128xf32>, vector<128x128xf32>, vector<16x128xf32> -> vector<16x128xf32>
    %290 = arith.addf %285, %289 : vector<16x128xf32>
    %c8_241 = arith.constant 8 : index
    %c0_242 = arith.constant 0 : index
    %291 = vector.load %arg25[%c8_241, %c0_242] : memref<24x128xf32, #tpu.memory_space<vmem>>, vector<16x128xf32>
    %c4_243 = arith.constant 4 : index
    %c0_244 = arith.constant 0 : index
    %c0_245 = arith.constant 0 : index
    %292 = vector.load %arg4[%c4_243, %c0_244, %c0_245] : memref<5x128x128xf32, #tpu.memory_space<vmem>>, vector<1x128x128xf32>
    %293 = vector.shape_cast %292 : vector<1x128x128xf32> to vector<128x128xf32>
    %cst_246 = arith.constant dense<0.000000e+00> : vector<16x128xf32>
    %294 = tpu.matmul %291, %293, %cst_246 {dimension_numbers = #tpu.dot_dimension_numbers<[1], [0], [0], [1], [0, 0, 1, 1], [], []>} : vector<16x128xf32>, vector<128x128xf32>, vector<16x128xf32> -> vector<16x128xf32>
    %295 = arith.addf %290, %294 : vector<16x128xf32>
    %296 = tpu.iota {dimensions = array<i32: 0>} : vector<128x16xi32>
    %297 = tpu.iota {dimensions = array<i32: 1>} : vector<128x16xi32>
    %c15_i32_247 = arith.constant 15 : i32
    %298 = vector.broadcast %c15_i32_247 : i32 to vector<128x16xi32>
    %299 = arith.andi %296, %298 : vector<128x16xi32>
    %300 = arith.cmpi eq, %299, %297 : vector<128x16xi32>
    %cst_248 = arith.constant 1.000000e+00 : f32
    %cst_249 = arith.constant 0.000000e+00 : f32
    %301 = vector.broadcast %cst_248 : f32 to vector<128x16xf32>
    %302 = vector.broadcast %cst_249 : f32 to vector<128x16xf32>
    %303 = arith.select %300, %301, %302 : vector<128x16xi1>, vector<128x16xf32>
    %304 = tpu.iota {dimensions = array<i32: 1>} : vector<16x128xi32>
    %305 = tpu.iota {dimensions = array<i32: 0>} : vector<16x128xi32>
    %c15_i32_250 = arith.constant 15 : i32
    %306 = vector.broadcast %c15_i32_250 : i32 to vector<16x128xi32>
    %307 = arith.andi %304, %306 : vector<16x128xi32>
    %308 = arith.cmpi eq, %307, %305 : vector<16x128xi32>
    %cst_251 = arith.constant 1.000000e+00 : f32
    %cst_252 = arith.constant 0.000000e+00 : f32
    %309 = vector.broadcast %cst_251 : f32 to vector<16x128xf32>
    %310 = vector.broadcast %cst_252 : f32 to vector<16x128xf32>
    %311 = arith.select %308, %309, %310 : vector<16x128xi1>, vector<16x128xf32>
    %cst_253 = arith.constant dense<0.000000e+00> : vector<128xf32>
    %312 = vector.multi_reduction <add>, %295, %cst_253 [0] : vector<16x128xf32> to vector<128xf32>
    %313 = vector.shape_cast %312 : vector<128xf32> to vector<1x128xf32>
    %cst_254 = arith.constant dense<0.000000e+00> : vector<1x16xf32>
    %314 = tpu.matmul %313, %303, %cst_254 {dimension_numbers = #tpu.dot_dimension_numbers<[1], [0], [0], [1], [0, 0, 1, 1], [], []>} : vector<1x128xf32>, vector<128x16xf32>, vector<1x16xf32> -> vector<1x16xf32>
    %315 = arith.mulf %295, %295 : vector<16x128xf32>
    %cst_255 = arith.constant dense<0.000000e+00> : vector<128xf32>
    %316 = vector.multi_reduction <add>, %315, %cst_255 [0] : vector<16x128xf32> to vector<128xf32>
    %317 = vector.shape_cast %316 : vector<128xf32> to vector<1x128xf32>
    %cst_256 = arith.constant dense<0.000000e+00> : vector<1x16xf32>
    %318 = tpu.matmul %317, %303, %cst_256 {dimension_numbers = #tpu.dot_dimension_numbers<[1], [0], [0], [1], [0, 0, 1, 1], [], []>} : vector<1x128xf32>, vector<128x16xf32>, vector<1x16xf32> -> vector<1x16xf32>
    %cst_257 = arith.constant 7.812500e-03 : f32
    %319 = vector.broadcast %cst_257 : f32 to vector<1x16xf32>
    %320 = arith.mulf %314, %319 : vector<1x16xf32>
    %cst_258 = arith.constant 7.812500e-03 : f32
    %321 = vector.broadcast %cst_258 : f32 to vector<1x16xf32>
    %322 = arith.mulf %318, %321 : vector<1x16xf32>
    %323 = arith.mulf %320, %320 : vector<1x16xf32>
    %324 = arith.subf %322, %323 : vector<1x16xf32>
    %cst_259 = arith.constant 0.000000e+00 : f32
    %325 = vector.broadcast %cst_259 : f32 to vector<1x16xf32>
    %326 = arith.maximumf %324, %325 : vector<1x16xf32>
    %c0_260 = arith.constant 0 : index
    %c0_261 = arith.constant 0 : index
    %327 = vector.load %arg13[%c0_260, %c0_261] : memref<2x16xf32, #tpu.memory_space<vmem>>, vector<1x16xf32>
    %c1_262 = arith.constant 1 : index
    %c0_263 = arith.constant 0 : index
    %328 = vector.load %arg13[%c1_262, %c0_263] : memref<2x16xf32, #tpu.memory_space<vmem>>, vector<1x16xf32>
    %cst_264 = arith.constant 9.99999974E-6 : f32
    %329 = vector.broadcast %cst_264 : f32 to vector<1x16xf32>
    %330 = arith.addf %326, %329 : vector<1x16xf32>
    %331 = math.rsqrt %330 : vector<1x16xf32>
    %332 = arith.mulf %327, %331 : vector<1x16xf32>
    %333 = arith.mulf %320, %332 : vector<1x16xf32>
    %334 = arith.subf %328, %333 : vector<1x16xf32>
    %cst_265 = arith.constant dense<0.000000e+00> : vector<1x128xf32>
    %335 = tpu.matmul %332, %311, %cst_265 {dimension_numbers = #tpu.dot_dimension_numbers<[1], [0], [0], [1], [0, 0, 1, 1], [], []>} : vector<1x16xf32>, vector<16x128xf32>, vector<1x128xf32> -> vector<1x128xf32>
    %cst_266 = arith.constant dense<0.000000e+00> : vector<1x128xf32>
    %336 = tpu.matmul %334, %311, %cst_266 {dimension_numbers = #tpu.dot_dimension_numbers<[1], [0], [0], [1], [0, 0, 1, 1], [], []>} : vector<1x16xf32>, vector<16x128xf32>, vector<1x128xf32> -> vector<1x128xf32>
    %337 = vector.broadcast %335 : vector<1x128xf32> to vector<16x128xf32>
    %338 = arith.mulf %295, %337 : vector<16x128xf32>
    %339 = vector.broadcast %336 : vector<1x128xf32> to vector<16x128xf32>
    %340 = arith.addf %338, %339 : vector<16x128xf32>
    %cst_267 = arith.constant 0.000000e+00 : f32
    %341 = vector.broadcast %cst_267 : f32 to vector<16x128xf32>
    %342 = arith.cmpf ogt, %340, %341 : vector<16x128xf32>
    %cst_268 = arith.constant 2.000000e-01 : f32
    %343 = vector.broadcast %cst_268 : f32 to vector<16x128xf32>
    %344 = arith.mulf %343, %340 : vector<16x128xf32>
    %345 = arith.select %342, %340, %344 : vector<16x128xi1>, vector<16x128xf32>
    %c4_269 = arith.constant 4 : index
    %c0_270 = arith.constant 0 : index
    %346 = vector.load %arg26[%c4_269, %c0_270] : memref<24x128xf32, #tpu.memory_space<vmem>>, vector<16x128xf32>
    tpu.vector_store %arg26[%c4_269, %c0_270], %345 {strides = array<i32>} : memref<24x128xf32, #tpu.memory_space<vmem>>, vector<16x128xf32>,
    %cst_271 = arith.constant 0.000000e+00 : f32
    %347 = vector.broadcast %cst_271 : f32 to vector<8x64xf32>
    %c0_272 = arith.constant 0 : index
    %c0_273 = arith.constant 0 : index
    %348 = vector.load %arg26[%c0_272, %c0_273] : memref<24x128xf32, #tpu.memory_space<vmem>>, vector<14x128xf32>
    %c0_274 = arith.constant 0 : index
    %c0_275 = arith.constant 0 : index
    %349 = vector.load %arg20[%c0_274, %c0_275] : memref<8x14xf32, #tpu.memory_space<vmem>>, vector<8x14xf32>
    %cst_276 = arith.constant dense<0.000000e+00> : vector<8x128xf32>
    %350 = tpu.matmul %349, %348, %cst_276 {dimension_numbers = #tpu.dot_dimension_numbers<[1], [0], [0], [1], [0, 0, 1, 1], [], []>} : vector<8x14xf32>, vector<14x128xf32>, vector<8x128xf32> -> vector<8x128xf32>
    %c0_277 = arith.constant 0 : index
    %c0_278 = arith.constant 0 : index
    %c0_279 = arith.constant 0 : index
    %351 = vector.load %arg5[%c0_277, %c0_278, %c0_279] : memref<5x128x64xf32, #tpu.memory_space<vmem>>, vector<1x128x64xf32>
    %352 = vector.shape_cast %351 : vector<1x128x64xf32> to vector<128x64xf32>
    %cst_280 = arith.constant dense<0.000000e+00> : vector<8x64xf32>
    %353 = tpu.matmul %350, %352, %cst_280 {dimension_numbers = #tpu.dot_dimension_numbers<[1], [0], [0], [1], [0, 0, 1, 1], [], []>} : vector<8x128xf32>, vector<128x64xf32>, vector<8x64xf32> -> vector<8x64xf32>
    %354 = arith.addf %347, %353 : vector<8x64xf32>
    %c2_281 = arith.constant 2 : index
    %c0_282 = arith.constant 0 : index
    %355 = vector.load %arg26[%c2_281, %c0_282] : memref<24x128xf32, #tpu.memory_space<vmem>>, vector<14x128xf32>
    %c0_283 = arith.constant 0 : index
    %c0_284 = arith.constant 0 : index
    %356 = vector.load %arg20[%c0_283, %c0_284] : memref<8x14xf32, #tpu.memory_space<vmem>>, vector<8x14xf32>
    %cst_285 = arith.constant dense<0.000000e+00> : vector<8x128xf32>
    %357 = tpu.matmul %356, %355, %cst_285 {dimension_numbers = #tpu.dot_dimension_numbers<[1], [0], [0], [1], [0, 0, 1, 1], [], []>} : vector<8x14xf32>, vector<14x128xf32>, vector<8x128xf32> -> vector<8x128xf32>
    %c1_286 = arith.constant 1 : index
    %c0_287 = arith.constant 0 : index
    %c0_288 = arith.constant 0 : index
    %358 = vector.load %arg5[%c1_286, %c0_287, %c0_288] : memref<5x128x64xf32, #tpu.memory_space<vmem>>, vector<1x128x64xf32>
    %359 = vector.shape_cast %358 : vector<1x128x64xf32> to vector<128x64xf32>
    %cst_289 = arith.constant dense<0.000000e+00> : vector<8x64xf32>
    %360 = tpu.matmul %357, %359, %cst_289 {dimension_numbers = #tpu.dot_dimension_numbers<[1], [0], [0], [1], [0, 0, 1, 1], [], []>} : vector<8x128xf32>, vector<128x64xf32>, vector<8x64xf32> -> vector<8x64xf32>
    %361 = arith.addf %354, %360 : vector<8x64xf32>
    %c4_290 = arith.constant 4 : index
    %c0_291 = arith.constant 0 : index
    %362 = vector.load %arg26[%c4_290, %c0_291] : memref<24x128xf32, #tpu.memory_space<vmem>>, vector<14x128xf32>
    %c0_292 = arith.constant 0 : index
    %c0_293 = arith.constant 0 : index
    %363 = vector.load %arg20[%c0_292, %c0_293] : memref<8x14xf32, #tpu.memory_space<vmem>>, vector<8x14xf32>
    %cst_294 = arith.constant dense<0.000000e+00> : vector<8x128xf32>
    %364 = tpu.matmul %363, %362, %cst_294 {dimension_numbers = #tpu.dot_dimension_numbers<[1], [0], [0], [1], [0, 0, 1, 1], [], []>} : vector<8x14xf32>, vector<14x128xf32>, vector<8x128xf32> -> vector<8x128xf32>
    %c2_295 = arith.constant 2 : index
    %c0_296 = arith.constant 0 : index
    %c0_297 = arith.constant 0 : index
    %365 = vector.load %arg5[%c2_295, %c0_296, %c0_297] : memref<5x128x64xf32, #tpu.memory_space<vmem>>, vector<1x128x64xf32>
    %366 = vector.shape_cast %365 : vector<1x128x64xf32> to vector<128x64xf32>
    %cst_298 = arith.constant dense<0.000000e+00> : vector<8x64xf32>
    %367 = tpu.matmul %364, %366, %cst_298 {dimension_numbers = #tpu.dot_dimension_numbers<[1], [0], [0], [1], [0, 0, 1, 1], [], []>} : vector<8x128xf32>, vector<128x64xf32>, vector<8x64xf32> -> vector<8x64xf32>
    %368 = arith.addf %361, %367 : vector<8x64xf32>
    %c6_299 = arith.constant 6 : index
    %c0_300 = arith.constant 0 : index
    %369 = vector.load %arg26[%c6_299, %c0_300] : memref<24x128xf32, #tpu.memory_space<vmem>>, vector<14x128xf32>
    %c0_301 = arith.constant 0 : index
    %c0_302 = arith.constant 0 : index
    %370 = vector.load %arg20[%c0_301, %c0_302] : memref<8x14xf32, #tpu.memory_space<vmem>>, vector<8x14xf32>
    %cst_303 = arith.constant dense<0.000000e+00> : vector<8x128xf32>
    %371 = tpu.matmul %370, %369, %cst_303 {dimension_numbers = #tpu.dot_dimension_numbers<[1], [0], [0], [1], [0, 0, 1, 1], [], []>} : vector<8x14xf32>, vector<14x128xf32>, vector<8x128xf32> -> vector<8x128xf32>
    %c3_304 = arith.constant 3 : index
    %c0_305 = arith.constant 0 : index
    %c0_306 = arith.constant 0 : index
    %372 = vector.load %arg5[%c3_304, %c0_305, %c0_306] : memref<5x128x64xf32, #tpu.memory_space<vmem>>, vector<1x128x64xf32>
    %373 = vector.shape_cast %372 : vector<1x128x64xf32> to vector<128x64xf32>
    %cst_307 = arith.constant dense<0.000000e+00> : vector<8x64xf32>
    %374 = tpu.matmul %371, %373, %cst_307 {dimension_numbers = #tpu.dot_dimension_numbers<[1], [0], [0], [1], [0, 0, 1, 1], [], []>} : vector<8x128xf32>, vector<128x64xf32>, vector<8x64xf32> -> vector<8x64xf32>
    %375 = arith.addf %368, %374 : vector<8x64xf32>
    %c8_308 = arith.constant 8 : index
    %c0_309 = arith.constant 0 : index
    %376 = vector.load %arg26[%c8_308, %c0_309] : memref<24x128xf32, #tpu.memory_space<vmem>>, vector<14x128xf32>
    %c0_310 = arith.constant 0 : index
    %c0_311 = arith.constant 0 : index
    %377 = vector.load %arg20[%c0_310, %c0_311] : memref<8x14xf32, #tpu.memory_space<vmem>>, vector<8x14xf32>
    %cst_312 = arith.constant dense<0.000000e+00> : vector<8x128xf32>
    %378 = tpu.matmul %377, %376, %cst_312 {dimension_numbers = #tpu.dot_dimension_numbers<[1], [0], [0], [1], [0, 0, 1, 1], [], []>} : vector<8x14xf32>, vector<14x128xf32>, vector<8x128xf32> -> vector<8x128xf32>
    %c4_313 = arith.constant 4 : index
    %c0_314 = arith.constant 0 : index
    %c0_315 = arith.constant 0 : index
    %379 = vector.load %arg5[%c4_313, %c0_314, %c0_315] : memref<5x128x64xf32, #tpu.memory_space<vmem>>, vector<1x128x64xf32>
    %380 = vector.shape_cast %379 : vector<1x128x64xf32> to vector<128x64xf32>
    %cst_316 = arith.constant dense<0.000000e+00> : vector<8x64xf32>
    %381 = tpu.matmul %378, %380, %cst_316 {dimension_numbers = #tpu.dot_dimension_numbers<[1], [0], [0], [1], [0, 0, 1, 1], [], []>} : vector<8x128xf32>, vector<128x64xf32>, vector<8x64xf32> -> vector<8x64xf32>
    %382 = arith.addf %375, %381 : vector<8x64xf32>
    %383 = tpu.iota {dimensions = array<i32: 0>} : vector<64x16xi32>
    %384 = tpu.iota {dimensions = array<i32: 1>} : vector<64x16xi32>
    %c15_i32_317 = arith.constant 15 : i32
    %385 = vector.broadcast %c15_i32_317 : i32 to vector<64x16xi32>
    %386 = arith.andi %383, %385 : vector<64x16xi32>
    %387 = arith.cmpi eq, %386, %384 : vector<64x16xi32>
    %cst_318 = arith.constant 1.000000e+00 : f32
    %cst_319 = arith.constant 0.000000e+00 : f32
    %388 = vector.broadcast %cst_318 : f32 to vector<64x16xf32>
    %389 = vector.broadcast %cst_319 : f32 to vector<64x16xf32>
    %390 = arith.select %387, %388, %389 : vector<64x16xi1>, vector<64x16xf32>
    %391 = tpu.iota {dimensions = array<i32: 1>} : vector<16x64xi32>
    %392 = tpu.iota {dimensions = array<i32: 0>} : vector<16x64xi32>
    %c15_i32_320 = arith.constant 15 : i32
    %393 = vector.broadcast %c15_i32_320 : i32 to vector<16x64xi32>
    %394 = arith.andi %391, %393 : vector<16x64xi32>
    %395 = arith.cmpi eq, %394, %392 : vector<16x64xi32>
    %cst_321 = arith.constant 1.000000e+00 : f32
    %cst_322 = arith.constant 0.000000e+00 : f32
    %396 = vector.broadcast %cst_321 : f32 to vector<16x64xf32>
    %397 = vector.broadcast %cst_322 : f32 to vector<16x64xf32>
    %398 = arith.select %395, %396, %397 : vector<16x64xi1>, vector<16x64xf32>
    %cst_323 = arith.constant dense<0.000000e+00> : vector<64xf32>
    %399 = vector.multi_reduction <add>, %382, %cst_323 [0] : vector<8x64xf32> to vector<64xf32>
    %400 = vector.shape_cast %399 : vector<64xf32> to vector<1x64xf32>
    %cst_324 = arith.constant dense<0.000000e+00> : vector<1x16xf32>
    %401 = tpu.matmul %400, %390, %cst_324 {dimension_numbers = #tpu.dot_dimension_numbers<[1], [0], [0], [1], [0, 0, 1, 1], [], []>} : vector<1x64xf32>, vector<64x16xf32>, vector<1x16xf32> -> vector<1x16xf32>
    %402 = arith.mulf %382, %382 : vector<8x64xf32>
    %cst_325 = arith.constant dense<0.000000e+00> : vector<64xf32>
    %403 = vector.multi_reduction <add>, %402, %cst_325 [0] : vector<8x64xf32> to vector<64xf32>
    %404 = vector.shape_cast %403 : vector<64xf32> to vector<1x64xf32>
    %cst_326 = arith.constant dense<0.000000e+00> : vector<1x16xf32>
    %405 = tpu.matmul %404, %390, %cst_326 {dimension_numbers = #tpu.dot_dimension_numbers<[1], [0], [0], [1], [0, 0, 1, 1], [], []>} : vector<1x64xf32>, vector<64x16xf32>, vector<1x16xf32> -> vector<1x16xf32>
    %cst_327 = arith.constant 3.125000e-02 : f32
    %406 = vector.broadcast %cst_327 : f32 to vector<1x16xf32>
    %407 = arith.mulf %401, %406 : vector<1x16xf32>
    %cst_328 = arith.constant 3.125000e-02 : f32
    %408 = vector.broadcast %cst_328 : f32 to vector<1x16xf32>
    %409 = arith.mulf %405, %408 : vector<1x16xf32>
    %410 = arith.mulf %407, %407 : vector<1x16xf32>
    %411 = arith.subf %409, %410 : vector<1x16xf32>
    %cst_329 = arith.constant 0.000000e+00 : f32
    %412 = vector.broadcast %cst_329 : f32 to vector<1x16xf32>
    %413 = arith.maximumf %411, %412 : vector<1x16xf32>
    %c0_330 = arith.constant 0 : index
    %c0_331 = arith.constant 0 : index
    %414 = vector.load %arg14[%c0_330, %c0_331] : memref<2x16xf32, #tpu.memory_space<vmem>>, vector<1x16xf32>
    %c1_332 = arith.constant 1 : index
    %c0_333 = arith.constant 0 : index
    %415 = vector.load %arg14[%c1_332, %c0_333] : memref<2x16xf32, #tpu.memory_space<vmem>>, vector<1x16xf32>
    %cst_334 = arith.constant 9.99999974E-6 : f32
    %416 = vector.broadcast %cst_334 : f32 to vector<1x16xf32>
    %417 = arith.addf %413, %416 : vector<1x16xf32>
    %418 = math.rsqrt %417 : vector<1x16xf32>
    %419 = arith.mulf %414, %418 : vector<1x16xf32>
    %420 = arith.mulf %407, %419 : vector<1x16xf32>
    %421 = arith.subf %415, %420 : vector<1x16xf32>
    %cst_335 = arith.constant dense<0.000000e+00> : vector<1x64xf32>
    %422 = tpu.matmul %419, %398, %cst_335 {dimension_numbers = #tpu.dot_dimension_numbers<[1], [0], [0], [1], [0, 0, 1, 1], [], []>} : vector<1x16xf32>, vector<16x64xf32>, vector<1x64xf32> -> vector<1x64xf32>
    %cst_336 = arith.constant dense<0.000000e+00> : vector<1x64xf32>
    %423 = tpu.matmul %421, %398, %cst_336 {dimension_numbers = #tpu.dot_dimension_numbers<[1], [0], [0], [1], [0, 0, 1, 1], [], []>} : vector<1x16xf32>, vector<16x64xf32>, vector<1x64xf32> -> vector<1x64xf32>
    %424 = vector.broadcast %422 : vector<1x64xf32> to vector<8x64xf32>
    %425 = arith.mulf %382, %424 : vector<8x64xf32>
    %426 = vector.broadcast %423 : vector<1x64xf32> to vector<8x64xf32>
    %427 = arith.addf %425, %426 : vector<8x64xf32>
    %cst_337 = arith.constant 0.000000e+00 : f32
    %428 = vector.broadcast %cst_337 : f32 to vector<8x64xf32>
    %429 = arith.cmpf ogt, %427, %428 : vector<8x64xf32>
    %cst_338 = arith.constant 2.000000e-01 : f32
    %430 = vector.broadcast %cst_338 : f32 to vector<8x64xf32>
    %431 = arith.mulf %430, %427 : vector<8x64xf32>
    %432 = arith.select %429, %427, %431 : vector<8x64xi1>, vector<8x64xf32>
    %c4_339 = arith.constant 4 : index
    %c0_340 = arith.constant 0 : index
    %433 = vector.load %arg27[%c4_339, %c0_340] : memref<16x64xf32, #tpu.memory_space<vmem>>, vector<8x64xf32>
    tpu.vector_store %arg27[%c4_339, %c0_340], %432 {strides = array<i32>} : memref<16x64xf32, #tpu.memory_space<vmem>>, vector<8x64xf32>,
    %cst_341 = arith.constant 0.000000e+00 : f32
    %434 = vector.broadcast %cst_341 : f32 to vector<8x64xf32>
    %c0_342 = arith.constant 0 : index
    %c0_343 = arith.constant 0 : index
    %435 = vector.load %arg27[%c0_342, %c0_343] : memref<16x64xf32, #tpu.memory_space<vmem>>, vector<8x64xf32>
    %c0_344 = arith.constant 0 : index
    %c0_345 = arith.constant 0 : index
    %c0_346 = arith.constant 0 : index
    %436 = vector.load %arg6[%c0_344, %c0_345, %c0_346] : memref<5x64x64xf32, #tpu.memory_space<vmem>>, vector<1x64x64xf32>
    %437 = vector.shape_cast %436 : vector<1x64x64xf32> to vector<64x64xf32>
    %cst_347 = arith.constant dense<0.000000e+00> : vector<8x64xf32>
    %438 = tpu.matmul %435, %437, %cst_347 {dimension_numbers = #tpu.dot_dimension_numbers<[1], [0], [0], [1], [0, 0, 1, 1], [], []>} : vector<8x64xf32>, vector<64x64xf32>, vector<8x64xf32> -> vector<8x64xf32>
    %439 = arith.addf %434, %438 : vector<8x64xf32>
    %c2_348 = arith.constant 2 : index
    %c0_349 = arith.constant 0 : index
    %440 = vector.load %arg27[%c2_348, %c0_349] : memref<16x64xf32, #tpu.memory_space<vmem>>, vector<8x64xf32>
    %c1_350 = arith.constant 1 : index
    %c0_351 = arith.constant 0 : index
    %c0_352 = arith.constant 0 : index
    %441 = vector.load %arg6[%c1_350, %c0_351, %c0_352] : memref<5x64x64xf32, #tpu.memory_space<vmem>>, vector<1x64x64xf32>
    %442 = vector.shape_cast %441 : vector<1x64x64xf32> to vector<64x64xf32>
    %cst_353 = arith.constant dense<0.000000e+00> : vector<8x64xf32>
    %443 = tpu.matmul %440, %442, %cst_353 {dimension_numbers = #tpu.dot_dimension_numbers<[1], [0], [0], [1], [0, 0, 1, 1], [], []>} : vector<8x64xf32>, vector<64x64xf32>, vector<8x64xf32> -> vector<8x64xf32>
    %444 = arith.addf %439, %443 : vector<8x64xf32>
    %c4_354 = arith.constant 4 : index
    %c0_355 = arith.constant 0 : index
    %445 = vector.load %arg27[%c4_354, %c0_355] : memref<16x64xf32, #tpu.memory_space<vmem>>, vector<8x64xf32>
    %c2_356 = arith.constant 2 : index
    %c0_357 = arith.constant 0 : index
    %c0_358 = arith.constant 0 : index
    %446 = vector.load %arg6[%c2_356, %c0_357, %c0_358] : memref<5x64x64xf32, #tpu.memory_space<vmem>>, vector<1x64x64xf32>
    %447 = vector.shape_cast %446 : vector<1x64x64xf32> to vector<64x64xf32>
    %cst_359 = arith.constant dense<0.000000e+00> : vector<8x64xf32>
    %448 = tpu.matmul %445, %447, %cst_359 {dimension_numbers = #tpu.dot_dimension_numbers<[1], [0], [0], [1], [0, 0, 1, 1], [], []>} : vector<8x64xf32>, vector<64x64xf32>, vector<8x64xf32> -> vector<8x64xf32>
    %449 = arith.addf %444, %448 : vector<8x64xf32>
    %c6_360 = arith.constant 6 : index
    %c0_361 = arith.constant 0 : index
    %450 = vector.load %arg27[%c6_360, %c0_361] : memref<16x64xf32, #tpu.memory_space<vmem>>, vector<8x64xf32>
    %c3_362 = arith.constant 3 : index
    %c0_363 = arith.constant 0 : index
    %c0_364 = arith.constant 0 : index
    %451 = vector.load %arg6[%c3_362, %c0_363, %c0_364] : memref<5x64x64xf32, #tpu.memory_space<vmem>>, vector<1x64x64xf32>
    %452 = vector.shape_cast %451 : vector<1x64x64xf32> to vector<64x64xf32>
    %cst_365 = arith.constant dense<0.000000e+00> : vector<8x64xf32>
    %453 = tpu.matmul %450, %452, %cst_365 {dimension_numbers = #tpu.dot_dimension_numbers<[1], [0], [0], [1], [0, 0, 1, 1], [], []>} : vector<8x64xf32>, vector<64x64xf32>, vector<8x64xf32> -> vector<8x64xf32>
    %454 = arith.addf %449, %453 : vector<8x64xf32>
    %c8_366 = arith.constant 8 : index
    %c0_367 = arith.constant 0 : index
    %455 = vector.load %arg27[%c8_366, %c0_367] : memref<16x64xf32, #tpu.memory_space<vmem>>, vector<8x64xf32>
    %c4_368 = arith.constant 4 : index
    %c0_369 = arith.constant 0 : index
    %c0_370 = arith.constant 0 : index
    %456 = vector.load %arg6[%c4_368, %c0_369, %c0_370] : memref<5x64x64xf32, #tpu.memory_space<vmem>>, vector<1x64x64xf32>
    %457 = vector.shape_cast %456 : vector<1x64x64xf32> to vector<64x64xf32>
    %cst_371 = arith.constant dense<0.000000e+00> : vector<8x64xf32>
    %458 = tpu.matmul %455, %457, %cst_371 {dimension_numbers = #tpu.dot_dimension_numbers<[1], [0], [0], [1], [0, 0, 1, 1], [], []>} : vector<8x64xf32>, vector<64x64xf32>, vector<8x64xf32> -> vector<8x64xf32>
    %459 = arith.addf %454, %458 : vector<8x64xf32>
    %460 = tpu.iota {dimensions = array<i32: 0>} : vector<64x16xi32>
    %461 = tpu.iota {dimensions = array<i32: 1>} : vector<64x16xi32>
    %c15_i32_372 = arith.constant 15 : i32
    %462 = vector.broadcast %c15_i32_372 : i32 to vector<64x16xi32>
    %463 = arith.andi %460, %462 : vector<64x16xi32>
    %464 = arith.cmpi eq, %463, %461 : vector<64x16xi32>
    %cst_373 = arith.constant 1.000000e+00 : f32
    %cst_374 = arith.constant 0.000000e+00 : f32
    %465 = vector.broadcast %cst_373 : f32 to vector<64x16xf32>
    %466 = vector.broadcast %cst_374 : f32 to vector<64x16xf32>
    %467 = arith.select %464, %465, %466 : vector<64x16xi1>, vector<64x16xf32>
    %468 = tpu.iota {dimensions = array<i32: 1>} : vector<16x64xi32>
    %469 = tpu.iota {dimensions = array<i32: 0>} : vector<16x64xi32>
    %c15_i32_375 = arith.constant 15 : i32
    %470 = vector.broadcast %c15_i32_375 : i32 to vector<16x64xi32>
    %471 = arith.andi %468, %470 : vector<16x64xi32>
    %472 = arith.cmpi eq, %471, %469 : vector<16x64xi32>
    %cst_376 = arith.constant 1.000000e+00 : f32
    %cst_377 = arith.constant 0.000000e+00 : f32
    %473 = vector.broadcast %cst_376 : f32 to vector<16x64xf32>
    %474 = vector.broadcast %cst_377 : f32 to vector<16x64xf32>
    %475 = arith.select %472, %473, %474 : vector<16x64xi1>, vector<16x64xf32>
    %cst_378 = arith.constant dense<0.000000e+00> : vector<64xf32>
    %476 = vector.multi_reduction <add>, %459, %cst_378 [0] : vector<8x64xf32> to vector<64xf32>
    %477 = vector.shape_cast %476 : vector<64xf32> to vector<1x64xf32>
    %cst_379 = arith.constant dense<0.000000e+00> : vector<1x16xf32>
    %478 = tpu.matmul %477, %467, %cst_379 {dimension_numbers = #tpu.dot_dimension_numbers<[1], [0], [0], [1], [0, 0, 1, 1], [], []>} : vector<1x64xf32>, vector<64x16xf32>, vector<1x16xf32> -> vector<1x16xf32>
    %479 = arith.mulf %459, %459 : vector<8x64xf32>
    %cst_380 = arith.constant dense<0.000000e+00> : vector<64xf32>
    %480 = vector.multi_reduction <add>, %479, %cst_380 [0] : vector<8x64xf32> to vector<64xf32>
    %481 = vector.shape_cast %480 : vector<64xf32> to vector<1x64xf32>
    %cst_381 = arith.constant dense<0.000000e+00> : vector<1x16xf32>
    %482 = tpu.matmul %481, %467, %cst_381 {dimension_numbers = #tpu.dot_dimension_numbers<[1], [0], [0], [1], [0, 0, 1, 1], [], []>} : vector<1x64xf32>, vector<64x16xf32>, vector<1x16xf32> -> vector<1x16xf32>
    %cst_382 = arith.constant 3.125000e-02 : f32
    %483 = vector.broadcast %cst_382 : f32 to vector<1x16xf32>
    %484 = arith.mulf %478, %483 : vector<1x16xf32>
    %cst_383 = arith.constant 3.125000e-02 : f32
    %485 = vector.broadcast %cst_383 : f32 to vector<1x16xf32>
    %486 = arith.mulf %482, %485 : vector<1x16xf32>
    %487 = arith.mulf %484, %484 : vector<1x16xf32>
    %488 = arith.subf %486, %487 : vector<1x16xf32>
    %cst_384 = arith.constant 0.000000e+00 : f32
    %489 = vector.broadcast %cst_384 : f32 to vector<1x16xf32>
    %490 = arith.maximumf %488, %489 : vector<1x16xf32>
    %c0_385 = arith.constant 0 : index
    %c0_386 = arith.constant 0 : index
    %491 = vector.load %arg15[%c0_385, %c0_386] : memref<2x16xf32, #tpu.memory_space<vmem>>, vector<1x16xf32>
    %c1_387 = arith.constant 1 : index
    %c0_388 = arith.constant 0 : index
    %492 = vector.load %arg15[%c1_387, %c0_388] : memref<2x16xf32, #tpu.memory_space<vmem>>, vector<1x16xf32>
    %cst_389 = arith.constant 9.99999974E-6 : f32
    %493 = vector.broadcast %cst_389 : f32 to vector<1x16xf32>
    %494 = arith.addf %490, %493 : vector<1x16xf32>
    %495 = math.rsqrt %494 : vector<1x16xf32>
    %496 = arith.mulf %491, %495 : vector<1x16xf32>
    %497 = arith.mulf %484, %496 : vector<1x16xf32>
    %498 = arith.subf %492, %497 : vector<1x16xf32>
    %cst_390 = arith.constant dense<0.000000e+00> : vector<1x64xf32>
    %499 = tpu.matmul %496, %475, %cst_390 {dimension_numbers = #tpu.dot_dimension_numbers<[1], [0], [0], [1], [0, 0, 1, 1], [], []>} : vector<1x16xf32>, vector<16x64xf32>, vector<1x64xf32> -> vector<1x64xf32>
    %cst_391 = arith.constant dense<0.000000e+00> : vector<1x64xf32>
    %500 = tpu.matmul %498, %475, %cst_391 {dimension_numbers = #tpu.dot_dimension_numbers<[1], [0], [0], [1], [0, 0, 1, 1], [], []>} : vector<1x16xf32>, vector<16x64xf32>, vector<1x64xf32> -> vector<1x64xf32>
    %501 = vector.broadcast %499 : vector<1x64xf32> to vector<8x64xf32>
    %502 = arith.mulf %459, %501 : vector<8x64xf32>
    %503 = vector.broadcast %500 : vector<1x64xf32> to vector<8x64xf32>
    %504 = arith.addf %502, %503 : vector<8x64xf32>
    %cst_392 = arith.constant 0.000000e+00 : f32
    %505 = vector.broadcast %cst_392 : f32 to vector<8x64xf32>
    %506 = arith.cmpf ogt, %504, %505 : vector<8x64xf32>
    %cst_393 = arith.constant 2.000000e-01 : f32
    %507 = vector.broadcast %cst_393 : f32 to vector<8x64xf32>
    %508 = arith.mulf %507, %504 : vector<8x64xf32>
    %509 = arith.select %506, %504, %508 : vector<8x64xi1>, vector<8x64xf32>
    %c4_394 = arith.constant 4 : index
    %c0_395 = arith.constant 0 : index
    %510 = vector.load %arg28[%c4_394, %c0_395] : memref<16x64xf32, #tpu.memory_space<vmem>>, vector<8x64xf32>
    tpu.vector_store %arg28[%c4_394, %c0_395], %509 {strides = array<i32>} : memref<16x64xf32, #tpu.memory_space<vmem>>, vector<8x64xf32>,
    %cst_396 = arith.constant 0.000000e+00 : f32
    %511 = vector.broadcast %cst_396 : f32 to vector<2x32xf32>
    %c0_397 = arith.constant 0 : index
    %c0_398 = arith.constant 0 : index
    %512 = vector.load %arg28[%c0_397, %c0_398] : memref<16x64xf32, #tpu.memory_space<vmem>>, vector<2x64xf32>
    %c0_399 = arith.constant 0 : index
    %c0_400 = arith.constant 0 : index
    %c0_401 = arith.constant 0 : index
    %513 = vector.load %arg7[%c0_399, %c0_400, %c0_401] : memref<5x64x32xf32, #tpu.memory_space<vmem>>, vector<1x64x32xf32>
    %514 = vector.shape_cast %513 : vector<1x64x32xf32> to vector<64x32xf32>
    %cst_402 = arith.constant dense<0.000000e+00> : vector<2x32xf32>
    %515 = tpu.matmul %512, %514, %cst_402 {dimension_numbers = #tpu.dot_dimension_numbers<[1], [0], [0], [1], [0, 0, 1, 1], [], []>} : vector<2x64xf32>, vector<64x32xf32>, vector<2x32xf32> -> vector<2x32xf32>
    %516 = arith.addf %511, %515 : vector<2x32xf32>
    %c2_403 = arith.constant 2 : index
    %c0_404 = arith.constant 0 : index
    %517 = vector.load %arg28[%c2_403, %c0_404] : memref<16x64xf32, #tpu.memory_space<vmem>>, vector<2x64xf32>
    %c1_405 = arith.constant 1 : index
    %c0_406 = arith.constant 0 : index
    %c0_407 = arith.constant 0 : index
    %518 = vector.load %arg7[%c1_405, %c0_406, %c0_407] : memref<5x64x32xf32, #tpu.memory_space<vmem>>, vector<1x64x32xf32>
    %519 = vector.shape_cast %518 : vector<1x64x32xf32> to vector<64x32xf32>
    %cst_408 = arith.constant dense<0.000000e+00> : vector<2x32xf32>
    %520 = tpu.matmul %517, %519, %cst_408 {dimension_numbers = #tpu.dot_dimension_numbers<[1], [0], [0], [1], [0, 0, 1, 1], [], []>} : vector<2x64xf32>, vector<64x32xf32>, vector<2x32xf32> -> vector<2x32xf32>
    %521 = arith.addf %516, %520 : vector<2x32xf32>
    %c4_409 = arith.constant 4 : index
    %c0_410 = arith.constant 0 : index
    %522 = vector.load %arg28[%c4_409, %c0_410] : memref<16x64xf32, #tpu.memory_space<vmem>>, vector<2x64xf32>
    %c2_411 = arith.constant 2 : index
    %c0_412 = arith.constant 0 : index
    %c0_413 = arith.constant 0 : index
    %523 = vector.load %arg7[%c2_411, %c0_412, %c0_413] : memref<5x64x32xf32, #tpu.memory_space<vmem>>, vector<1x64x32xf32>
    %524 = vector.shape_cast %523 : vector<1x64x32xf32> to vector<64x32xf32>
    %cst_414 = arith.constant dense<0.000000e+00> : vector<2x32xf32>
    %525 = tpu.matmul %522, %524, %cst_414 {dimension_numbers = #tpu.dot_dimension_numbers<[1], [0], [0], [1], [0, 0, 1, 1], [], []>} : vector<2x64xf32>, vector<64x32xf32>, vector<2x32xf32> -> vector<2x32xf32>
    %526 = arith.addf %521, %525 : vector<2x32xf32>
    %c6_415 = arith.constant 6 : index
    %c0_416 = arith.constant 0 : index
    %527 = vector.load %arg28[%c6_415, %c0_416] : memref<16x64xf32, #tpu.memory_space<vmem>>, vector<2x64xf32>
    %c3_417 = arith.constant 3 : index
    %c0_418 = arith.constant 0 : index
    %c0_419 = arith.constant 0 : index
    %528 = vector.load %arg7[%c3_417, %c0_418, %c0_419] : memref<5x64x32xf32, #tpu.memory_space<vmem>>, vector<1x64x32xf32>
    %529 = vector.shape_cast %528 : vector<1x64x32xf32> to vector<64x32xf32>
    %cst_420 = arith.constant dense<0.000000e+00> : vector<2x32xf32>
    %530 = tpu.matmul %527, %529, %cst_420 {dimension_numbers = #tpu.dot_dimension_numbers<[1], [0], [0], [1], [0, 0, 1, 1], [], []>} : vector<2x64xf32>, vector<64x32xf32>, vector<2x32xf32> -> vector<2x32xf32>
    %531 = arith.addf %526, %530 : vector<2x32xf32>
    %c8_421 = arith.constant 8 : index
    %c0_422 = arith.constant 0 : index
    %532 = vector.load %arg28[%c8_421, %c0_422] : memref<16x64xf32, #tpu.memory_space<vmem>>, vector<2x64xf32>
    %c4_423 = arith.constant 4 : index
    %c0_424 = arith.constant 0 : index
    %c0_425 = arith.constant 0 : index
    %533 = vector.load %arg7[%c4_423, %c0_424, %c0_425] : memref<5x64x32xf32, #tpu.memory_space<vmem>>, vector<1x64x32xf32>
    %534 = vector.shape_cast %533 : vector<1x64x32xf32> to vector<64x32xf32>
    %cst_426 = arith.constant dense<0.000000e+00> : vector<2x32xf32>
    %535 = tpu.matmul %532, %534, %cst_426 {dimension_numbers = #tpu.dot_dimension_numbers<[1], [0], [0], [1], [0, 0, 1, 1], [], []>} : vector<2x64xf32>, vector<64x32xf32>, vector<2x32xf32> -> vector<2x32xf32>
    %536 = arith.addf %531, %535 : vector<2x32xf32>
    %537 = tpu.iota {dimensions = array<i32: 0>} : vector<32x32xi32>
    %538 = tpu.iota {dimensions = array<i32: 1>} : vector<32x32xi32>
    %c31_i32 = arith.constant 31 : i32
    %539 = vector.broadcast %c31_i32 : i32 to vector<32x32xi32>
    %540 = arith.andi %537, %539 : vector<32x32xi32>
    %541 = arith.cmpi eq, %540, %538 : vector<32x32xi32>
    %cst_427 = arith.constant 1.000000e+00 : f32
    %cst_428 = arith.constant 0.000000e+00 : f32
    %542 = vector.broadcast %cst_427 : f32 to vector<32x32xf32>
    %543 = vector.broadcast %cst_428 : f32 to vector<32x32xf32>
    %544 = arith.select %541, %542, %543 : vector<32x32xi1>, vector<32x32xf32>
    %545 = tpu.iota {dimensions = array<i32: 1>} : vector<32x32xi32>
    %546 = tpu.iota {dimensions = array<i32: 0>} : vector<32x32xi32>
    %c31_i32_429 = arith.constant 31 : i32
    %547 = vector.broadcast %c31_i32_429 : i32 to vector<32x32xi32>
    %548 = arith.andi %545, %547 : vector<32x32xi32>
    %549 = arith.cmpi eq, %548, %546 : vector<32x32xi32>
    %cst_430 = arith.constant 1.000000e+00 : f32
    %cst_431 = arith.constant 0.000000e+00 : f32
    %550 = vector.broadcast %cst_430 : f32 to vector<32x32xf32>
    %551 = vector.broadcast %cst_431 : f32 to vector<32x32xf32>
    %552 = arith.select %549, %550, %551 : vector<32x32xi1>, vector<32x32xf32>
    %cst_432 = arith.constant dense<0.000000e+00> : vector<32xf32>
    %553 = vector.multi_reduction <add>, %536, %cst_432 [0] : vector<2x32xf32> to vector<32xf32>
    %554 = vector.shape_cast %553 : vector<32xf32> to vector<1x32xf32>
    %cst_433 = arith.constant dense<0.000000e+00> : vector<1x32xf32>
    %555 = tpu.matmul %554, %544, %cst_433 {dimension_numbers = #tpu.dot_dimension_numbers<[1], [0], [0], [1], [0, 0, 1, 1], [], []>} : vector<1x32xf32>, vector<32x32xf32>, vector<1x32xf32> -> vector<1x32xf32>
    %556 = arith.mulf %536, %536 : vector<2x32xf32>
    %cst_434 = arith.constant dense<0.000000e+00> : vector<32xf32>
    %557 = vector.multi_reduction <add>, %556, %cst_434 [0] : vector<2x32xf32> to vector<32xf32>
    %558 = vector.shape_cast %557 : vector<32xf32> to vector<1x32xf32>
    %cst_435 = arith.constant dense<0.000000e+00> : vector<1x32xf32>
    %559 = tpu.matmul %558, %544, %cst_435 {dimension_numbers = #tpu.dot_dimension_numbers<[1], [0], [0], [1], [0, 0, 1, 1], [], []>} : vector<1x32xf32>, vector<32x32xf32>, vector<1x32xf32> -> vector<1x32xf32>
    %cst_436 = arith.constant 5.000000e-01 : f32
    %560 = vector.broadcast %cst_436 : f32 to vector<1x32xf32>
    %561 = arith.mulf %555, %560 : vector<1x32xf32>
    %cst_437 = arith.constant 5.000000e-01 : f32
    %562 = vector.broadcast %cst_437 : f32 to vector<1x32xf32>
    %563 = arith.mulf %559, %562 : vector<1x32xf32>
    %564 = arith.mulf %561, %561 : vector<1x32xf32>
    %565 = arith.subf %563, %564 : vector<1x32xf32>
    %cst_438 = arith.constant 0.000000e+00 : f32
    %566 = vector.broadcast %cst_438 : f32 to vector<1x32xf32>
    %567 = arith.maximumf %565, %566 : vector<1x32xf32>
    %c0_439 = arith.constant 0 : index
    %c0_440 = arith.constant 0 : index
    %568 = vector.load %arg16[%c0_439, %c0_440] : memref<2x32xf32, #tpu.memory_space<vmem>>, vector<1x32xf32>
    %c1_441 = arith.constant 1 : index
    %c0_442 = arith.constant 0 : index
    %569 = vector.load %arg16[%c1_441, %c0_442] : memref<2x32xf32, #tpu.memory_space<vmem>>, vector<1x32xf32>
    %cst_443 = arith.constant 9.99999974E-6 : f32
    %570 = vector.broadcast %cst_443 : f32 to vector<1x32xf32>
    %571 = arith.addf %567, %570 : vector<1x32xf32>
    %572 = math.rsqrt %571 : vector<1x32xf32>
    %573 = arith.mulf %568, %572 : vector<1x32xf32>
    %574 = arith.mulf %561, %573 : vector<1x32xf32>
    %575 = arith.subf %569, %574 : vector<1x32xf32>
    %cst_444 = arith.constant dense<0.000000e+00> : vector<1x32xf32>
    %576 = tpu.matmul %573, %552, %cst_444 {dimension_numbers = #tpu.dot_dimension_numbers<[1], [0], [0], [1], [0, 0, 1, 1], [], []>} : vector<1x32xf32>, vector<32x32xf32>, vector<1x32xf32> -> vector<1x32xf32>
    %cst_445 = arith.constant dense<0.000000e+00> : vector<1x32xf32>
    %577 = tpu.matmul %575, %552, %cst_445 {dimension_numbers = #tpu.dot_dimension_numbers<[1], [0], [0], [1], [0, 0, 1, 1], [], []>} : vector<1x32xf32>, vector<32x32xf32>, vector<1x32xf32> -> vector<1x32xf32>
    %578 = vector.broadcast %576 : vector<1x32xf32> to vector<2x32xf32>
    %579 = arith.mulf %536, %578 : vector<2x32xf32>
    %580 = vector.broadcast %577 : vector<1x32xf32> to vector<2x32xf32>
    %581 = arith.addf %579, %580 : vector<2x32xf32>
    %cst_446 = arith.constant 0.000000e+00 : f32
    %582 = vector.broadcast %cst_446 : f32 to vector<2x32xf32>
    %583 = arith.cmpf ogt, %581, %582 : vector<2x32xf32>
    %cst_447 = arith.constant 2.000000e-01 : f32
    %584 = vector.broadcast %cst_447 : f32 to vector<2x32xf32>
    %585 = arith.mulf %584, %581 : vector<2x32xf32>
    %586 = arith.select %583, %581, %585 : vector<2x32xi1>, vector<2x32xf32>
    %c4_448 = arith.constant 4 : index
    %c0_449 = arith.constant 0 : index
    %587 = vector.load %arg29[%c4_448, %c0_449] : memref<10x32xf32, #tpu.memory_space<vmem>>, vector<2x32xf32>
    tpu.vector_store %arg29[%c4_448, %c0_449], %586 {strides = array<i32>} : memref<10x32xf32, #tpu.memory_space<vmem>>, vector<2x32xf32>,
    %cst_450 = arith.constant 0.000000e+00 : f32
    %588 = vector.broadcast %cst_450 : f32 to vector<2x32xf32>
    %c0_451 = arith.constant 0 : index
    %c0_452 = arith.constant 0 : index
    %589 = vector.load %arg29[%c0_451, %c0_452] : memref<10x32xf32, #tpu.memory_space<vmem>>, vector<2x32xf32>
    %c0_453 = arith.constant 0 : index
    %c0_454 = arith.constant 0 : index
    %c0_455 = arith.constant 0 : index
    %590 = vector.load %arg8[%c0_453, %c0_454, %c0_455] : memref<5x32x32xf32, #tpu.memory_space<vmem>>, vector<1x32x32xf32>
    %591 = vector.shape_cast %590 : vector<1x32x32xf32> to vector<32x32xf32>
    %cst_456 = arith.constant dense<0.000000e+00> : vector<2x32xf32>
    %592 = tpu.matmul %589, %591, %cst_456 {dimension_numbers = #tpu.dot_dimension_numbers<[1], [0], [0], [1], [0, 0, 1, 1], [], []>} : vector<2x32xf32>, vector<32x32xf32>, vector<2x32xf32> -> vector<2x32xf32>
    %593 = arith.addf %588, %592 : vector<2x32xf32>
    %c2_457 = arith.constant 2 : index
    %c0_458 = arith.constant 0 : index
    %594 = vector.load %arg29[%c2_457, %c0_458] : memref<10x32xf32, #tpu.memory_space<vmem>>, vector<2x32xf32>
    %c1_459 = arith.constant 1 : index
    %c0_460 = arith.constant 0 : index
    %c0_461 = arith.constant 0 : index
    %595 = vector.load %arg8[%c1_459, %c0_460, %c0_461] : memref<5x32x32xf32, #tpu.memory_space<vmem>>, vector<1x32x32xf32>
    %596 = vector.shape_cast %595 : vector<1x32x32xf32> to vector<32x32xf32>
    %cst_462 = arith.constant dense<0.000000e+00> : vector<2x32xf32>
    %597 = tpu.matmul %594, %596, %cst_462 {dimension_numbers = #tpu.dot_dimension_numbers<[1], [0], [0], [1], [0, 0, 1, 1], [], []>} : vector<2x32xf32>, vector<32x32xf32>, vector<2x32xf32> -> vector<2x32xf32>
    %598 = arith.addf %593, %597 : vector<2x32xf32>
    %c4_463 = arith.constant 4 : index
    %c0_464 = arith.constant 0 : index
    %599 = vector.load %arg29[%c4_463, %c0_464] : memref<10x32xf32, #tpu.memory_space<vmem>>, vector<2x32xf32>
    %c2_465 = arith.constant 2 : index
    %c0_466 = arith.constant 0 : index
    %c0_467 = arith.constant 0 : index
    %600 = vector.load %arg8[%c2_465, %c0_466, %c0_467] : memref<5x32x32xf32, #tpu.memory_space<vmem>>, vector<1x32x32xf32>
    %601 = vector.shape_cast %600 : vector<1x32x32xf32> to vector<32x32xf32>
    %cst_468 = arith.constant dense<0.000000e+00> : vector<2x32xf32>
    %602 = tpu.matmul %599, %601, %cst_468 {dimension_numbers = #tpu.dot_dimension_numbers<[1], [0], [0], [1], [0, 0, 1, 1], [], []>} : vector<2x32xf32>, vector<32x32xf32>, vector<2x32xf32> -> vector<2x32xf32>
    %603 = arith.addf %598, %602 : vector<2x32xf32>
    %c6_469 = arith.constant 6 : index
    %c0_470 = arith.constant 0 : index
    %604 = vector.load %arg29[%c6_469, %c0_470] : memref<10x32xf32, #tpu.memory_space<vmem>>, vector<2x32xf32>
    %c3_471 = arith.constant 3 : index
    %c0_472 = arith.constant 0 : index
    %c0_473 = arith.constant 0 : index
    %605 = vector.load %arg8[%c3_471, %c0_472, %c0_473] : memref<5x32x32xf32, #tpu.memory_space<vmem>>, vector<1x32x32xf32>
    %606 = vector.shape_cast %605 : vector<1x32x32xf32> to vector<32x32xf32>
    %cst_474 = arith.constant dense<0.000000e+00> : vector<2x32xf32>
    %607 = tpu.matmul %604, %606, %cst_474 {dimension_numbers = #tpu.dot_dimension_numbers<[1], [0], [0], [1], [0, 0, 1, 1], [], []>} : vector<2x32xf32>, vector<32x32xf32>, vector<2x32xf32> -> vector<2x32xf32>
    %608 = arith.addf %603, %607 : vector<2x32xf32>
    %c8_475 = arith.constant 8 : index
    %c0_476 = arith.constant 0 : index
    %609 = vector.load %arg29[%c8_475, %c0_476] : memref<10x32xf32, #tpu.memory_space<vmem>>, vector<2x32xf32>
    %c4_477 = arith.constant 4 : index
    %c0_478 = arith.constant 0 : index
    %c0_479 = arith.constant 0 : index
    %610 = vector.load %arg8[%c4_477, %c0_478, %c0_479] : memref<5x32x32xf32, #tpu.memory_space<vmem>>, vector<1x32x32xf32>
    %611 = vector.shape_cast %610 : vector<1x32x32xf32> to vector<32x32xf32>
    %cst_480 = arith.constant dense<0.000000e+00> : vector<2x32xf32>
    %612 = tpu.matmul %609, %611, %cst_480 {dimension_numbers = #tpu.dot_dimension_numbers<[1], [0], [0], [1], [0, 0, 1, 1], [], []>} : vector<2x32xf32>, vector<32x32xf32>, vector<2x32xf32> -> vector<2x32xf32>
    %613 = arith.addf %608, %612 : vector<2x32xf32>
    %614 = tpu.iota {dimensions = array<i32: 0>} : vector<32x32xi32>
    %615 = tpu.iota {dimensions = array<i32: 1>} : vector<32x32xi32>
    %c31_i32_481 = arith.constant 31 : i32
    %616 = vector.broadcast %c31_i32_481 : i32 to vector<32x32xi32>
    %617 = arith.andi %614, %616 : vector<32x32xi32>
    %618 = arith.cmpi eq, %617, %615 : vector<32x32xi32>
    %cst_482 = arith.constant 1.000000e+00 : f32
    %cst_483 = arith.constant 0.000000e+00 : f32
    %619 = vector.broadcast %cst_482 : f32 to vector<32x32xf32>
    %620 = vector.broadcast %cst_483 : f32 to vector<32x32xf32>
    %621 = arith.select %618, %619, %620 : vector<32x32xi1>, vector<32x32xf32>
    %622 = tpu.iota {dimensions = array<i32: 1>} : vector<32x32xi32>
    %623 = tpu.iota {dimensions = array<i32: 0>} : vector<32x32xi32>
    %c31_i32_484 = arith.constant 31 : i32
    %624 = vector.broadcast %c31_i32_484 : i32 to vector<32x32xi32>
    %625 = arith.andi %622, %624 : vector<32x32xi32>
    %626 = arith.cmpi eq, %625, %623 : vector<32x32xi32>
    %cst_485 = arith.constant 1.000000e+00 : f32
    %cst_486 = arith.constant 0.000000e+00 : f32
    %627 = vector.broadcast %cst_485 : f32 to vector<32x32xf32>
    %628 = vector.broadcast %cst_486 : f32 to vector<32x32xf32>
    %629 = arith.select %626, %627, %628 : vector<32x32xi1>, vector<32x32xf32>
    %cst_487 = arith.constant dense<0.000000e+00> : vector<32xf32>
    %630 = vector.multi_reduction <add>, %613, %cst_487 [0] : vector<2x32xf32> to vector<32xf32>
    %631 = vector.shape_cast %630 : vector<32xf32> to vector<1x32xf32>
    %cst_488 = arith.constant dense<0.000000e+00> : vector<1x32xf32>
    %632 = tpu.matmul %631, %621, %cst_488 {dimension_numbers = #tpu.dot_dimension_numbers<[1], [0], [0], [1], [0, 0, 1, 1], [], []>} : vector<1x32xf32>, vector<32x32xf32>, vector<1x32xf32> -> vector<1x32xf32>
    %633 = arith.mulf %613, %613 : vector<2x32xf32>
    %cst_489 = arith.constant dense<0.000000e+00> : vector<32xf32>
    %634 = vector.multi_reduction <add>, %633, %cst_489 [0] : vector<2x32xf32> to vector<32xf32>
    %635 = vector.shape_cast %634 : vector<32xf32> to vector<1x32xf32>
    %cst_490 = arith.constant dense<0.000000e+00> : vector<1x32xf32>
    %636 = tpu.matmul %635, %621, %cst_490 {dimension_numbers = #tpu.dot_dimension_numbers<[1], [0], [0], [1], [0, 0, 1, 1], [], []>} : vector<1x32xf32>, vector<32x32xf32>, vector<1x32xf32> -> vector<1x32xf32>
    %cst_491 = arith.constant 5.000000e-01 : f32
    %637 = vector.broadcast %cst_491 : f32 to vector<1x32xf32>
    %638 = arith.mulf %632, %637 : vector<1x32xf32>
    %cst_492 = arith.constant 5.000000e-01 : f32
    %639 = vector.broadcast %cst_492 : f32 to vector<1x32xf32>
    %640 = arith.mulf %636, %639 : vector<1x32xf32>
    %641 = arith.mulf %638, %638 : vector<1x32xf32>
    %642 = arith.subf %640, %641 : vector<1x32xf32>
    %cst_493 = arith.constant 0.000000e+00 : f32
    %643 = vector.broadcast %cst_493 : f32 to vector<1x32xf32>
    %644 = arith.maximumf %642, %643 : vector<1x32xf32>
    %c0_494 = arith.constant 0 : index
    %c0_495 = arith.constant 0 : index
    %645 = vector.load %arg17[%c0_494, %c0_495] : memref<2x32xf32, #tpu.memory_space<vmem>>, vector<1x32xf32>
    %c1_496 = arith.constant 1 : index
    %c0_497 = arith.constant 0 : index
    %646 = vector.load %arg17[%c1_496, %c0_497] : memref<2x32xf32, #tpu.memory_space<vmem>>, vector<1x32xf32>
    %cst_498 = arith.constant 9.99999974E-6 : f32
    %647 = vector.broadcast %cst_498 : f32 to vector<1x32xf32>
    %648 = arith.addf %644, %647 : vector<1x32xf32>
    %649 = math.rsqrt %648 : vector<1x32xf32>
    %650 = arith.mulf %645, %649 : vector<1x32xf32>
    %651 = arith.mulf %638, %650 : vector<1x32xf32>
    %652 = arith.subf %646, %651 : vector<1x32xf32>
    %cst_499 = arith.constant dense<0.000000e+00> : vector<1x32xf32>
    %653 = tpu.matmul %650, %629, %cst_499 {dimension_numbers = #tpu.dot_dimension_numbers<[1], [0], [0], [1], [0, 0, 1, 1], [], []>} : vector<1x32xf32>, vector<32x32xf32>, vector<1x32xf32> -> vector<1x32xf32>
    %cst_500 = arith.constant dense<0.000000e+00> : vector<1x32xf32>
    %654 = tpu.matmul %652, %629, %cst_500 {dimension_numbers = #tpu.dot_dimension_numbers<[1], [0], [0], [1], [0, 0, 1, 1], [], []>} : vector<1x32xf32>, vector<32x32xf32>, vector<1x32xf32> -> vector<1x32xf32>
    %655 = vector.broadcast %653 : vector<1x32xf32> to vector<2x32xf32>
    %656 = arith.mulf %613, %655 : vector<2x32xf32>
    %657 = vector.broadcast %654 : vector<1x32xf32> to vector<2x32xf32>
    %658 = arith.addf %656, %657 : vector<2x32xf32>
    %cst_501 = arith.constant 0.000000e+00 : f32
    %659 = vector.broadcast %cst_501 : f32 to vector<2x32xf32>
    %660 = arith.cmpf ogt, %658, %659 : vector<2x32xf32>
    %cst_502 = arith.constant 2.000000e-01 : f32
    %661 = vector.broadcast %cst_502 : f32 to vector<2x32xf32>
    %662 = arith.mulf %661, %658 : vector<2x32xf32>
    %663 = arith.select %660, %658, %662 : vector<2x32xi1>, vector<2x32xf32>
    %c2_503 = arith.constant 2 : index
    %c0_504 = arith.constant 0 : index
    %664 = vector.load %arg30[%c2_503, %c0_504] : memref<6x32xf32, #tpu.memory_space<vmem>>, vector<2x32xf32>
    tpu.vector_store %arg30[%c2_503, %c0_504], %663 {strides = array<i32>} : memref<6x32xf32, #tpu.memory_space<vmem>>, vector<2x32xf32>,
    %cst_505 = arith.constant 0.000000e+00 : f32
    %665 = vector.broadcast %cst_505 : f32 to vector<2x1xf32>
    %c0_506 = arith.constant 0 : index
    %c0_507 = arith.constant 0 : index
    %666 = vector.load %arg30[%c0_506, %c0_507] : memref<6x32xf32, #tpu.memory_space<vmem>>, vector<2x32xf32>
    %c0_508 = arith.constant 0 : index
    %c0_509 = arith.constant 0 : index
    %c0_510 = arith.constant 0 : index
    %667 = vector.load %arg9[%c0_508, %c0_509, %c0_510] : memref<3x32x1xf32, #tpu.memory_space<vmem>>, vector<1x32x1xf32>
    %668 = vector.shape_cast %667 : vector<1x32x1xf32> to vector<32x1xf32>
    %cst_511 = arith.constant dense<0.000000e+00> : vector<2x1xf32>
    %669 = tpu.matmul %666, %668, %cst_511 {dimension_numbers = #tpu.dot_dimension_numbers<[1], [0], [0], [1], [0, 0, 1, 1], [], []>} : vector<2x32xf32>, vector<32x1xf32>, vector<2x1xf32> -> vector<2x1xf32>
    %670 = arith.addf %665, %669 : vector<2x1xf32>
    %c2_512 = arith.constant 2 : index
    %c0_513 = arith.constant 0 : index
    %671 = vector.load %arg30[%c2_512, %c0_513] : memref<6x32xf32, #tpu.memory_space<vmem>>, vector<2x32xf32>
    %c1_514 = arith.constant 1 : index
    %c0_515 = arith.constant 0 : index
    %c0_516 = arith.constant 0 : index
    %672 = vector.load %arg9[%c1_514, %c0_515, %c0_516] : memref<3x32x1xf32, #tpu.memory_space<vmem>>, vector<1x32x1xf32>
    %673 = vector.shape_cast %672 : vector<1x32x1xf32> to vector<32x1xf32>
    %cst_517 = arith.constant dense<0.000000e+00> : vector<2x1xf32>
    %674 = tpu.matmul %671, %673, %cst_517 {dimension_numbers = #tpu.dot_dimension_numbers<[1], [0], [0], [1], [0, 0, 1, 1], [], []>} : vector<2x32xf32>, vector<32x1xf32>, vector<2x1xf32> -> vector<2x1xf32>
    %675 = arith.addf %670, %674 : vector<2x1xf32>
    %c4_518 = arith.constant 4 : index
    %c0_519 = arith.constant 0 : index
    %676 = vector.load %arg30[%c4_518, %c0_519] : memref<6x32xf32, #tpu.memory_space<vmem>>, vector<2x32xf32>
    %c2_520 = arith.constant 2 : index
    %c0_521 = arith.constant 0 : index
    %c0_522 = arith.constant 0 : index
    %677 = vector.load %arg9[%c2_520, %c0_521, %c0_522] : memref<3x32x1xf32, #tpu.memory_space<vmem>>, vector<1x32x1xf32>
    %678 = vector.shape_cast %677 : vector<1x32x1xf32> to vector<32x1xf32>
    %cst_523 = arith.constant dense<0.000000e+00> : vector<2x1xf32>
    %679 = tpu.matmul %676, %678, %cst_523 {dimension_numbers = #tpu.dot_dimension_numbers<[1], [0], [0], [1], [0, 0, 1, 1], [], []>} : vector<2x32xf32>, vector<32x1xf32>, vector<2x1xf32> -> vector<2x1xf32>
    %680 = arith.addf %675, %679 : vector<2x1xf32>
    %c0_524 = arith.constant 0 : index
    %c0_525 = arith.constant 0 : index
    %681 = vector.load %arg18[%c0_524, %c0_525] : memref<1x1xf32, #tpu.memory_space<vmem>>, vector<1x1xf32>
    %682 = vector.broadcast %681 : vector<1x1xf32> to vector<2x1xf32>
    %683 = arith.addf %680, %682 : vector<2x1xf32>
    %c0_526 = arith.constant 0 : index
    %c0_527 = arith.constant 0 : index
    %684 = vector.load %arg21[%c0_526, %c0_527] : memref<2x1xf32, #tpu.memory_space<vmem>>, vector<2x1xf32>
    tpu.vector_store %arg21[%c0_526, %c0_527], %683 {strides = array<i32>} : memref<2x1xf32, #tpu.memory_space<vmem>>, vector<2x1xf32>,
    return
  }
}

</mosaic_0001>

<bundles_post_ra>
// kernel: tpu_custom_call.1
= control target key start
LH: loop header
LB: loop body
LE: loop exit
PB: predicated region body
PF: predicated region fallthrough
CT: control target
= control target key end

     0   :  { %s14673_s0 = inlined_call_operand.vmem [shape: f32[32,64], index: 0, kind: input, shape index: {}]   ;;  %s14674_s1 = inlined_call_operand.hbm [shape: f32[5,64,128], index: 1, kind: input, shape index: {}]   ;;  %s14675_s2 = inlined_call_operand.vmem [shape: f32[5,128,128], index: 2, kind: input, shape index: {}]   ;;  %s14676_s3 = inlined_call_operand.vmem [shape: f32[5,128,128], index: 3, kind: input, shape index: {}]   ;;  %s14677_s4 = inlined_call_operand.hbm [shape: f32[5,128,128], index: 4, kind: input, shape index: {}]   ;;  %s14678_s5 = inlined_call_operand.vmem [shape: f32[5,128,64], index: 5, kind: input, shape index: {}]   ;;  %s14679_s6 = inlined_call_operand.hbm [shape: f32[5,64,64], index: 6, kind: input, shape index: {}]   ;;  %s14680_s7 = inlined_call_operand.vmem [shape: f32[5,64,32], index: 7, kind: input, shape index: {}]   ;;  %s14681_s8 = inlined_call_operand.vmem [shape: f32[5,32,32], index: 8, kind: input, shape index: {}]   ;;  %s14682_s9 = inlined_call_operand.vmem [shape: f32[3,32,1], index: 9, kind: input, shape index: {}]   ;;  %s14683_s10 = inlined_call_operand.vmem [shape: f32[2,8], index: 10, kind: input, shape index: {}]   ;;  %s14684_s11 = inlined_call_operand.vmem [shape: f32[2,8], index: 11, kind: input, shape index: {}]   ;;  %s14685_s12 = inlined_call_operand.vmem [shape: f32[2,16], index: 12, kind: input, shape index: {}]   ;;  %s14686_s13 = inlined_call_operand.vmem [shape: f32[2,16], index: 13, kind: input, shape index: {}]   ;;  %s14687_s14 = inlined_call_operand.vmem [shape: f32[2,16], index: 14, kind: input, shape index: {}]   ;;  %s14688_s15 = inlined_call_operand.vmem [shape: f32[2,16], index: 15, kind: input, shape index: {}]   ;;  %s14689_s16 = inlined_call_operand.vmem [shape: f32[2,32], index: 16, kind: input, shape index: {}]   ;;  %s14690_s17 = inlined_call_operand.vmem [shape: f32[2,32], index: 17, kind: input, shape index: {}]   ;;  %s14691_s18 = inlined_call_operand.<no memory space> [shape: f32[1,1], index: 18, kind: input, shape index: {}]   ;;  %s14692_s19 = inlined_call_operand.vmem [shape: f32[16,30], index: 19, kind: input, shape index: {}]   ;;  %s14693_s20 = inlined_call_operand.vmem [shape: f32[8,14], index: 20, kind: input, shape index: {}]   ;;  %s14694_s21 = inlined_call_operand.vmem [shape: f32[2,1], index: 21, kind: output, shape index: {}]  }
   0x1   :  { %14703 = sst [smem:[#allocation19_spill]] %s14673_s0  ;;  %v26_v0 = vstv %s14691_s18 }
   0x2   :  { %14704 = sst [smem:[#allocation20_spill]] %s14674_s1  ;;  %27 = vst [vmem:[#allocation11] sm:$0x1] %v26_v0 }
   0x3   :  { %14705 = sst [smem:[#allocation21_spill]] %s14675_s2 }
   0x4   :  { %14706 = sst [smem:[#allocation22_spill]] %s14676_s3 }
   0x5   :  { %14707 = sst [smem:[#allocation23_spill]] %s14677_s4 }
   0x6   :  { %14708 = sst [smem:[#allocation24_spill]] %s14678_s5 }
   0x7   :  { %28 = vsyncpa [#allocation13], 0 }
   0x8   :  { %29 = vsyncpa [#allocation15], 0  ;;  %s12267_s26 = smov [#allocation14]   ;;  %s12268_s3 = smov [#allocation12]  }
   0x9   :  { %s53_s27 = sshll.u32 %s12267_s26, 4  ;;  %s37_s28 = sshll.u32 %s12268_s3, 4  ;;  %s54_s27 = int_to_ptr.vmem [resolvable:$true] %s53_s27  ;;  %s12391_s28 = int_to_ptr.vmem [resolvable:$true] %s37_s28 }
   0xa   :  { %s14709_s4 = sld [smem:[#allocation23_spill]] }
  0x10   :  { %s12197_s30 = scalar_lea.hbm %s14709_s4, 10240 }
  0x11   :  { %p12198_p0 = scmp.ne.s32.totalorder %s14709_s4, %s12197_s30  ;;  %p12201_p1 = scmp.lt.u32.totalorder %s12197_s30, %s14709_s4 }
  0x13   :  { %p12203_p2 = pnand %p12201_p1, %p12198_p0 }
  0x15   :  { %12206 = shalt.err (!%p12203_p2)
}
  0x16   :  { %s12207_s1 = scalar_lea.vmem %s54_s27, 10240  ;;  %p12212_p4 = scmp.lt.s32.totalorder %s54_s27, %s54_s27 }
  0x17   :  { %p12208_p3 = scmp.ne.s32.totalorder %s54_s27, %s12207_s1  ;;  %p12213_p5 = scmp.lt.s32.totalorder %s12207_s1, %s12207_s1 }
  0x19   :  { %p12214_p6 = por %p12213_p5, %p12212_p4 }
  0x1b   :  { %p12215_p7 = pnand %p12214_p6, %p12208_p3 }
  0x1d   :  { %12218 = shalt.err (!%p12215_p7)
}
  0x1e   :  { %s12269_s24 = smov 128   ;;  %s12270_s2 = smov 8  }
  0x1f   :  { %59 = dma.hbm_to_vmem [thread:$0]  %s14709_s4, 10240, %s54_s27, [#allocation15], %s12269_s24, %s12269_s24, %s12270_s2  }
  0x20   :  { %s14710_s0 = sld [smem:[#allocation20_spill]] }
  0x26   :  { %s12219_s30 = scalar_lea.hbm %s14710_s0, 5120 }
  0x27   :  { %p12220_p8 = scmp.ne.s32.totalorder %s14710_s0, %s12219_s30  ;;  %p12223_p9 = scmp.lt.u32.totalorder %s12219_s30, %s14710_s0 }
  0x29   :  { %p12225_p10 = pnand %p12223_p9, %p12220_p8 }
  0x2b   :  { %12228 = shalt.err (!%p12225_p10)
}
  0x2c   :  { %s12229_s1 = scalar_lea.vmem %s12391_s28, 5120  ;;  %p12234_p12 = scmp.lt.s32.totalorder %s12391_s28, %s12391_s28 }
  0x2d   :  { %p12230_p11 = scmp.ne.s32.totalorder %s12391_s28, %s12229_s1  ;;  %p12235_p13 = scmp.lt.s32.totalorder %s12229_s1, %s12229_s1 }
  0x2f   :  { %p12236_p0 = por %p12235_p13, %p12234_p12 }
  0x31   :  { %p12237_p1 = pnand %p12236_p0, %p12230_p11 }
  0x33   :  { %12240 = shalt.err (!%p12237_p1)
}
  0x34   :  { %43 = dma.hbm_to_vmem [thread:$0]  %s14710_s0, 5120, %s12391_s28, [#allocation13], %s12269_s24, %s12269_s24, %s12270_s2  }
  0x35   :  { %s12271_s25 = smov [#allocation16]   ;;  %s12241_s30 = scalar_lea.hbm %s14679_s6, 5120 }
  0x36   :  { %s67_s26 = sshll.u32 %s12271_s25, 4  ;;  %p12242_p2 = scmp.ne.s32.totalorder %s14679_s6, %s12241_s30  ;;  %s68_s26 = int_to_ptr.vmem [resolvable:$true] %s67_s26 }
  0x37   :  { %p12245_p3 = scmp.lt.u32.totalorder %s12241_s30, %s14679_s6 }
  0x39   :  { %p12247_p4 = pnand %p12245_p3, %p12242_p2 }
  0x3b   :  { %12250 = shalt.err (!%p12247_p4)
}
  0x3c   :  { %s12251_s1 = scalar_lea.vmem %s68_s26, 5120  ;;  %p12256_p6 = scmp.lt.s32.totalorder %s68_s26, %s68_s26 }
  0x3d   :  { %p12252_p5 = scmp.ne.s32.totalorder %s68_s26, %s12251_s1  ;;  %p12257_p7 = scmp.lt.s32.totalorder %s12251_s1, %s12251_s1 }
  0x3f   :  { %p12258_p8 = por %p12257_p7, %p12256_p6 }
  0x41   :  { %p12259_p9 = pnand %p12258_p8, %p12252_p5 }
  0x43   :  { %12262 = shalt.err (!%p12259_p9)
}
  0x44   :  { %73 = dma.hbm_to_vmem [thread:$0]  %s14679_s6, 5120, %s68_s26, [#allocation15], %s12269_s24, %s12269_s24, %s12270_s2  }
  0x45   :  { %12263 = dma.done.wait [#allocation13], 5120  }
  0x46   :  { %12264 = vsyncadd [#allocation13], 4294962176 }
  0x47   :  { %12265 = dma.done.wait [#allocation15], 15360  }
  0x48   :  { %12266 = vsyncadd [#allocation15], 4294951936  ;;  %vm111_vm0 = vcmask 519168   ;;  %v12272_v1 = vmov 0.0   ;;  %v12273_v2 = vmov 0.0|0.0   ;;  %v158_v3 = vld [vmem:[#allocation12 + $0x40] sm:$0xff]  ;;  %v702_v8 = vlaneseq }
  0x49   :  { %112 = vst.msk [vmem:[#allocation2] sm:$0xf] %vm111_vm0, %v12272_v1  ;;  %113 = vst.msk [vmem:[#allocation2 + $0x24] sm:$0xf] %vm111_vm0, %v12272_v1  ;;  %10940 = vmatprep.subr.bf16.mxu1 %v12273_v2  ;;  %v159_v4 = vld [vmem:[#allocation12 + $0x48] sm:$0xff]  ;;  %v160_v5 = vld [vmem:[#allocation12 + $0x50] sm:$0xff] }
  0x4a   :  { %114 = vst [vmem:[#allocation3] sm:$0xf] %v12272_v1  ;;  %115 = vst [vmem:[#allocation3 + $0x24] sm:$0xf] %v12272_v1  ;;  %vm14701_vm1 = vcmask 523264   ;;  %v10860_v6 = vpack.c.bf16 %v159_v4, %v158_v3  ;;  %v161_v7 = vld [vmem:[#allocation12 + $0x58] sm:$0xff] }
  0x4b   :  { %116 = vst [vmem:[#allocation4] sm:$0xf] %v12272_v1  ;;  %117 = vst [vmem:[#allocation4 + $0x24] sm:$0xf] %v12272_v1  ;;  %v10864_v9 = vpack.c.bf16 %v161_v7, %v160_v5  ;;  %v162_v10 = vld [vmem:[#allocation12 + $0x60] sm:$0xff]  ;;  %v163_v11 = vld [vmem:[#allocation12 + $0x68] sm:$0xff] }
  0x4c   :  { %118 = vst [vmem:[#allocation5] sm:$0xf] %v12272_v1  ;;  %119 = vst [vmem:[#allocation5 + $0x14] sm:$0xf] %v12272_v1  ;;  %s14711_s2 = sld [smem:[#allocation19_spill]]  ;;  %10861 = vmatprep.subr.bf16.mxu0 %v10860_v6  ;;  %v10868_v14 = vpack.c.bf16 %v163_v11, %v162_v10  ;;  %v12468_v16 = vshrl.u32 %v702_v8, 7 }
  0x4d   :  { %120 = vst [vmem:[#allocation6] sm:$0xf] %v12272_v1  ;;  %121 = vst [vmem:[#allocation6 + $0x14] sm:$0xf] %v12272_v1  ;;  %10863 = vmatpush3.bf16.msra.mxu0 %v10860_v6  ;;  %v164_v17 = vld [vmem:[#allocation12 + $0x70] sm:$0xff]  ;;  %v165_v18 = vld [vmem:[#allocation12 + $0x78] sm:$0xff] }
  0x4e   :  { %122 = vst.msk [vmem:[#allocation7] sm:$0xf] %vm111_vm0, %v12272_v1  ;;  %123 = vst.msk [vmem:[#allocation7 + $0xc] sm:$0xf] %vm111_vm0, %v12272_v1  ;;  %10865 = vmatprep.subr.bf16.mxu0 %v10864_v9  ;;  %v10872_v20 = vpack.c.bf16 %v165_v18, %v164_v17  ;;  %v12476_v21 = vadd.s32 8, %v12468_v16  ;;  %v145_v23 = vld [vmem:[#allocation12] sm:$0xff] }
  0x4f   :  { %124 = vst.msk [vmem:[#allocation8] sm:$0xf] %vm111_vm0, %v12272_v1  ;;  %v146_v24 = vld [vmem:[#allocation12 + $0x8] sm:$0xff]  ;;  %v12480_v25 = vadd.s32 16, %v12468_v16  ;;  %v12483_v26 = vadd.s32 24, %v12468_v16  ;;  %v12485_v28 = vand.u32 127, %v702_v8 }
  0x50   :  { %v10876_v27 = vpack.c.bf16 %v146_v24, %v145_v23  ;;  %v721_v29 = vand.u32 7, %v12468_v16  ;;  %v722_v30 = vand.u32 7, %v12476_v21  ;;  %v147_v31 = vld [vmem:[#allocation12 + $0x10] sm:$0xff]  ;;  %v148_v32 = vld [vmem:[#allocation12 + $0x18] sm:$0xff]  ;;  %v707_v33 = vadd.s32 32, %v12468_v16  ;;  %v149_v42 = vld [vmem:[#allocation12 + $0x20] sm:$0xff] }
  0x51   :  { %10867 = vmatpush3.bf16.msra.mxu0 %v10864_v9  ;;  %v708_v34 = vadd.s32 40, %v12468_v16  ;;  %v723_v35 = vand.u32 7, %v12480_v25  ;;  %v724_v36 = vand.u32 7, %v12483_v26  ;;  %v10880_v40 = vpack.c.bf16 %v148_v32, %v147_v31  ;;  %v150_v43 = vld [vmem:[#allocation12 + $0x28] sm:$0xff]  ;;  %v151_v53 = vld [vmem:[#allocation12 + $0x30] sm:$0xff]  ;;  %v152_v54 = vld [vmem:[#allocation12 + $0x38] sm:$0xff] }
  0x52   :  { %v132_v12 = vld [vmem:[%s14711_s2] sm:$0xff]  ;;  %v133_v13 = vld [vmem:[%s14711_s2 + $0x8] sm:$0xff]  ;;  %v134_v15 = vld [vmem:[%s14711_s2 + $0x10] sm:$0xff]  ;;  %10869 = vmatprep.subr.bf16.mxu0 %v10868_v14  ;;  %v2907_v38 = vand.u32 15, %v707_v33  ;;  %vm737_vm2 = vcmp.eq.s32.totalorder %v721_v29, %v12485_v28  ;;  %vm738_vm3 = vcmp.eq.s32.totalorder %v722_v30, %v12485_v28  ;;  %v725_v46 = vand.u32 7, %v707_v33  ;;  %s14738_s18 = sld [smem:[#allocation21_spill]] }
  0x53   :  { %137 = vst.msk [vmem:[#allocation2 + $0x4] sm:$0xff] %vm14701_vm1, %v132_v12  ;;  %138 = vst.msk [vmem:[#allocation2 + $0xc] sm:$0xff] %vm14701_vm1, %v133_v13  ;;  %v135_v19 = vld [vmem:[%s14711_s2 + $0x18] sm:$0xff]  ;;  %v2908_v39 = vand.u32 15, %v708_v34  ;;  %vm12497_vm4 = vcmp.eq.s32.totalorder %v723_v35, %v12485_v28  ;;  %vm12502_vm5 = vcmp.eq.s32.totalorder %v724_v36, %v12485_v28  ;;  %v726_v47 = vand.u32 7, %v708_v34  ;;  %v365_v58 = vld [vmem:[#allocation12 + $0x80] sm:$0xff] }
  0x54   :  { %139 = vst.msk [vmem:[#allocation2 + $0x14] sm:$0xff] %vm14701_vm1, %v134_v15  ;;  %140 = vst.msk [vmem:[#allocation2 + $0x1c] sm:$0xff] %vm14701_vm1, %v135_v19  ;;  %vm2923_vm7 = vcmp.eq.s32.totalorder %v2907_v38, %v12485_v28  ;;  %v10884_v50 = vpack.c.bf16 %v150_v43, %v149_v42  ;;  %v12274_v52 = vmov 1.0|1.0   ;;  %vm741_vm10 = vcmp.eq.s32.totalorder %v725_v46, %v12485_v28  ;;  %v366_v59 = vld [vmem:[#allocation12 + $0x88] sm:$0xff]  ;;  %v367_v62 = vld [vmem:[#allocation12 + $0x90] sm:$0xff] }
  0x55   :  { %10871 = vmatpush3.bf16.msra.mxu0 %v10868_v14  ;;  %vm12507_vm6 = vmpackc.low %vm738_vm3, %vm737_vm2  ;;  %vm2924_vm8 = vcmp.eq.s32.totalorder %v2908_v39, %v12485_v28  ;;  %vm742_vm11 = vcmp.eq.s32.totalorder %v726_v47, %v12485_v28  ;;  %v10888_v57 = vpack.c.bf16 %v152_v54, %v151_v53  ;;  %v10892_v61 = vpack.c.bf16 %v366_v59, %v365_v58  ;;  %v368_v63 = vld [vmem:[#allocation12 + $0x98] sm:$0xff]  ;;  %v369_v5 = vld [vmem:[#allocation12 + $0xa0] sm:$0xff]  ;;  %s14743_s22 = sld [smem:[#allocation22_spill]] }
  0x56   :  { %10873 = vmatprep.subr.bf16.mxu0 %v10872_v20  ;;  %10942 = vmatpush3.bf16.msk.msra.mxu1 %vm12507_vm6, %v12274_v52  ;;  %vm12521_vm9 = vmpackc.low %vm12502_vm5, %vm12497_vm4  ;;  %v10896_v3 = vpack.c.bf16 %v368_v63, %v367_v62  ;;  %v370_v6 = vld [vmem:[#allocation12 + $0xa8] sm:$0xff]  ;;  %v371_v10 = vld [vmem:[#allocation12 + $0xb0] sm:$0xff]  ;;  %v710_v53 = vadd.s32 56, %v12468_v16  ;;  %v12590_v58 = vadd.s32 64, %v12468_v16  ;;  %v12593_v59 = vadd.s32 72, %v12468_v16 }
  0x57   :  { %10943 = vmatprep.subr.bf16.mxu1 %v12273_v2  ;;  %vm12528_vm12 = vmpackc.low %vm2924_vm8, %vm2923_vm7  ;;  %v10900_v8 = vpack.c.bf16 %v370_v6, %v369_v5  ;;  %v372_v11 = vld [vmem:[#allocation12 + $0xb8] sm:$0xff]  ;;  %v479_v13 = vld [vmem:[#allocation12 + $0xc0] sm:$0xff]  ;;  %v12616_v5 = vadd.s32 80, %v12468_v16  ;;  %v12619_v6 = vadd.s32 88, %v12468_v16 }
  0x58   :  { %vm12537_vm13 = vmpackc.low %vm742_vm11, %vm741_vm10  ;;  %v10904_v12 = vpack.c.bf16 %v372_v11, %v371_v10  ;;  %v480_v14 = vld [vmem:[#allocation12 + $0xc8] sm:$0xff]  ;;  %v481_v17 = vld [vmem:[#allocation12 + $0xd0] sm:$0xff]  ;;  %v729_v62 = vand.u32 7, %v12590_v58  ;;  %v730_v63 = vand.u32 7, %v12593_v59  ;;  %v12638_v10 = vadd.s32 96, %v12468_v16 }
  0x59   :  { %10875 = vmatpush3.bf16.msra.mxu0 %v10872_v20  ;;  %v10908_v15 = vpack.c.bf16 %v480_v14, %v479_v13  ;;  %v482_v18 = vld [vmem:[#allocation12 + $0xd8] sm:$0xff]  ;;  %v483_v23 = vld [vmem:[#allocation12 + $0xe0] sm:$0xff]  ;;  %v484_v24 = vld [vmem:[#allocation12 + $0xe8] sm:$0xff]  ;;  %v12641_v11 = vadd.s32 104, %v12468_v16 }
  0x5a   :  { %v153_v22 = vld [vmem:[#allocation2 + $0x2] sm:$0xff]  ;;  %v154_v37 = vld [vmem:[#allocation2 + $0xa] sm:$0xff]  ;;  %10877 = vmatprep.subr.bf16.mxu0 %v10876_v27  ;;  %10945 = vmatpush3.bf16.msk.msra.mxu1 %vm12521_vm9, %v12274_v52  ;;  %v10912_v20 = vpack.c.bf16 %v482_v18, %v481_v17  ;;  %v10916_v29 = vpack.c.bf16 %v484_v24, %v483_v23  ;;  %v486_v32 = vld [vmem:[#allocation12 + $0xf8] sm:$0xff]  ;;  %vm745_vm2 = vcmp.eq.s32.totalorder %v729_v62, %v12485_v28  ;;  %v733_v13 = vand.u32 7, %v12638_v10 }
  0x5b   :  { %9163 = vmatprep.mubr.msk.f32.mxu0 %vm14701_vm1, %v153_v22  ;;  %v155_v41 = vld [vmem:[#allocation2 + $0x12] sm:$0xff]  ;;  %v156_v48 = vld [vmem:[#allocation2 + $0x1a] sm:$0xff]  ;;  %10946 = vmatprep.subr.bf16.mxu1 %v12273_v2  ;;  %v12545_v0 = vld [vmem:[#allocation2 + $0x8] sm:$0xff]  ;;  %vm746_vm3 = vcmp.eq.s32.totalorder %v730_v63, %v12485_v28  ;;  %v734_v14 = vand.u32 7, %v12641_v11  ;;  %v12664_v17 = vadd.s32 120, %v12468_v16  ;;  %v12276_v62 = vmov 1.0  }
  0x5c   :  { %9164 = vmatmul.mubr.msk.f32.vlgmr.msra.gmra.mrb[0].mxu0 %vm14701_vm1, %v154_v37  ;;  %v141_v51 = vld [vmem:[#allocation2] sm:$0xff]  ;;  %v12547_v4 = vld [vmem:[#allocation2 + $0x10] sm:$0xff]  ;;  %v12553_v7 = vld [vmem:[#allocation2 + $0x18] sm:$0xff] }
  0x5d   :  { %10879 = vmatpush3.bf16.msra.mxu0 %v10876_v27  ;;  %9166 = vmatprep.mubr.msk.f32.mxu0 %vm14701_vm1, %v155_v41  ;;  %v360_v9 = vld [vmem:[#allocation2 + $0x4] sm:$0xff]  ;;  %v361_v19 = vld [vmem:[#allocation2 + $0xc] sm:$0xff]  ;;  %v362_v22 = vld [vmem:[#allocation2 + $0x14] sm:$0xff] }
  0x5e   :  { %10881 = vmatprep.subr.bf16.mxu0 %v10880_v40  ;;  %10948 = vmatpush3.bf16.msk.msra.mxu1 %vm12537_vm13, %v12274_v52  ;;  %v363_v27 = vld [vmem:[#allocation2 + $0x1c] sm:$0xff]  ;;  %v474_v30 = vld [vmem:[#allocation2 + $0x6] sm:$0xff]  ;;  %v485_v31 = vld [vmem:[#allocation12 + $0xf0] sm:$0xff] }
  0x5f   :  { %10949 = vmatprep.subr.bf16.mxu1 %v12273_v2  ;;  %v10920_v33 = vpack.c.bf16 %v486_v32, %v485_v31  ;;  %v593_v34 = vld [vmem:[#allocation12 + $0x100] sm:$0xff]  ;;  %v594_v35 = vld [vmem:[#allocation12 + $0x108] sm:$0xff]  ;;  %v595_v37 = vld [vmem:[#allocation12 + $0x110] sm:$0xff] }
  0x60   :  { %9167 = vmatmul.mubr.msk.f32.gmra.mrb[2].mxu0 %vm14701_vm1, %v156_v48  ;;  %v10924_v36 = vpack.c.bf16 %v594_v35, %v593_v34  ;;  %v596_v38 = vld [vmem:[#allocation12 + $0x118] sm:$0xff]  ;;  %v475_v39 = vld [vmem:[#allocation2 + $0xe] sm:$0xff]  ;;  %v597_v42 = vld [vmem:[#allocation12 + $0x120] sm:$0xff] }
  0x61   :  { %10883 = vmatpush3.bf16.msra.mxu0 %v10880_v40  ;;  %9185 = vmatprep.mubr.msk.f32.mxu0 %vm14701_vm1, %v141_v51  ;;  %v10928_v40 = vpack.c.bf16 %v596_v38, %v595_v37  ;;  %v476_v41 = vld [vmem:[#allocation2 + $0x16] sm:$0xff]  ;;  %v598_v43 = vld [vmem:[#allocation12 + $0x128] sm:$0xff]  ;;  %v477_v44 = vld [vmem:[#allocation2 + $0x1e] sm:$0xff]  ;;  %v709_v51 = vadd.s32 48, %v12468_v16 }
  0x62   :  { %10885 = vmatprep.subr.bf16.mxu0 %v10884_v50  ;;  %v10932_v45 = vpack.c.bf16 %v598_v43, %v597_v42  ;;  %v599_v46 = vld [vmem:[#allocation12 + $0x130] sm:$0xff]  ;;  %v600_v47 = vld [vmem:[#allocation12 + $0x138] sm:$0xff]  ;;  %vm12611_vm4 = vmpackc.low %vm746_vm3, %vm745_vm2  ;;  %vm750_vm2 = vcmp.eq.s32.totalorder %v734_v14, %v12485_v28 }
  0x63   :  { %v10936_v48 = vpack.c.bf16 %v600_v47, %v599_v46  ;;  %v727_v54 = vand.u32 7, %v709_v51 }
  0x65   :  { %10887 = vmatpush3.bf16.msra.mxu0 %v10884_v50  ;;  %v591_v50 = vld [vmem:[#allocation2 + $0x20] sm:$0xff]  ;;  %vm743_vm14 = vcmp.eq.s32.totalorder %v727_v54, %v12485_v28  ;;  %v769_v54 = vand.u32 7, %v12485_v28 }
  0x66   :  { %10889 = vmatprep.subr.bf16.mxu0 %v10888_v57 }
  0x69   :  { %10891 = vmatpush3.bf16.msra.mxu0 %v10888_v57  ;;  %v728_v57 = vand.u32 7, %v710_v53 }
  0x6a   :  { %10893 = vmatprep.subr.bf16.mxu0 %v10892_v61 }
  0x6b   :  { %vm744_vm15 = vcmp.eq.s32.totalorder %v728_v57, %v12485_v28 }
  0x6c   :  { %9186 = vmatmul.mubr.msk.f32.vlgmr.msra.gmra.mrb[0].mxu0 %vm14701_vm1, %v12545_v0  ;;  %vm12595_vm0 = vmpackc.low %vm744_vm15, %vm743_vm14  ;;  %vm749_vm15 = vcmp.eq.s32.totalorder %v733_v13, %v12485_v28 }
  0x6d   :  { %10895 = vmatpush3.bf16.msra.mxu0 %v10892_v61  ;;  %9188 = vmatprep.mubr.msk.f32.mxu0 %vm14701_vm1, %v12547_v4  ;;  %vm12667_vm3 = vmpackc.low %vm750_vm2, %vm749_vm15  ;;  %vm12757_vm15 = vcmp.eq.s32.totalorder %v769_v54, %v12468_v16  ;;  %vm14702_vm2 = vcmask 64512   ;;  %v7821_v54 = vld [vmem:[%s14738_s18 + $0xd0] sm:$0xff] }
  0x6e   :  { %10897 = vmatprep.subr.bf16.mxu0 %v10896_v3  ;;  %10951 = vmatpush3.bf16.msk.msra.mxu1 %vm12595_vm0, %v12274_v52 }
  0x6f   :  { %10952 = vmatprep.subr.bf16.mxu1 %v12273_v2 }
  0x70   :  { %9189 = vmatmul.mubr.msk.f32.gmra.mrb[2].mxu0 %vm14701_vm1, %v12553_v7 }
  0x71   :  { %10899 = vmatpush3.bf16.msra.mxu0 %v10896_v3  ;;  %9207 = vmatprep.mubr.msk.f32.mxu0 %vm14701_vm1, %v360_v9  ;;  %v2910_v3 = vand.u32 15, %v710_v53  ;;  %v732_v9 = vand.u32 7, %v12619_v6 }
  0x72   :  { %10901 = vmatprep.subr.bf16.mxu0 %v10900_v8  ;;  %10954 = vmatpush3.bf16.msk.msra.mxu1 %vm12611_vm4, %v12274_v52 }
  0x73   :  { %vm2926_vm7 = vcmp.eq.s32.totalorder %v2910_v3, %v12485_v28  ;;  %10955 = vmatprep.subr.bf16.mxu1 %v12273_v2  ;;  %vm748_vm11 = vcmp.eq.s32.totalorder %v732_v9, %v12485_v28 }
  0x75   :  { %10903 = vmatpush3.bf16.msra.mxu0 %v10900_v8  ;;  %v731_v8 = vand.u32 7, %v12616_v5 }
  0x76   :  { %10905 = vmatprep.subr.bf16.mxu0 %v10904_v12 }
  0x77   :  { %vm747_vm10 = vcmp.eq.s32.totalorder %v731_v8, %v12485_v28 }
  0x78   :  { %vm12645_vm14 = vmpackc.low %vm748_vm11, %vm747_vm10 }
  0x79   :  { %10907 = vmatpush3.bf16.msra.mxu0 %v10904_v12  ;;  %10957 = vmatpush3.bf16.msk.msra.mxu1 %vm12645_vm14, %v12274_v52 }
  0x7a   :  { %10909 = vmatprep.subr.bf16.mxu0 %v10908_v15  ;;  %10958 = vmatprep.subr.bf16.mxu1 %v12273_v2 }
  0x7c   :  { %9208 = vmatmul.mubr.msk.f32.vlgmr.msra.gmra.mrb[0].mxu0 %vm14701_vm1, %v361_v19 }
  0x7d   :  { %10911 = vmatpush3.bf16.msra.mxu0 %v10908_v15  ;;  %9210 = vmatprep.mubr.msk.f32.mxu0 %vm14701_vm1, %v362_v22  ;;  %v12661_v15 = vadd.s32 112, %v12468_v16 }
  0x7e   :  { %10913 = vmatprep.subr.bf16.mxu0 %v10912_v20  ;;  %10960 = vmatpush3.bf16.msk.msra.mxu1 %vm12667_vm3, %v12274_v52 }
  0x7f   :  { %v735_v19 = vand.u32 7, %v12661_v15  ;;  %10961 = vmatprep.subr.bf16.mxu1 %v12273_v2 }
  0x80   :  { %9211 = vmatmul.mubr.msk.f32.gmra.mrb[2].mxu0 %vm14701_vm1, %v363_v27 }
  0x81   :  { %10915 = vmatpush3.bf16.msra.mxu0 %v10912_v20  ;;  %9229 = vmatprep.mubr.msk.f32.mxu0 %vm14701_vm1, %v474_v30  ;;  %v736_v20 = vand.u32 7, %v12664_v17 }
  0x82   :  { %10917 = vmatprep.subr.bf16.mxu0 %v10916_v29 }
  0x83   :  { %vm752_vm10 = vcmp.eq.s32.totalorder %v736_v20, %v12485_v28 }
  0x85   :  { %10919 = vmatpush3.bf16.msra.mxu0 %v10916_v29 }
  0x86   :  { %10921 = vmatprep.subr.bf16.mxu0 %v10920_v33 }
  0x89   :  { %10923 = vmatpush3.bf16.msra.mxu0 %v10920_v33 }
  0x8a   :  { %10925 = vmatprep.subr.bf16.mxu0 %v10924_v36 }
  0x8c   :  { %9230 = vmatmul.mubr.msk.f32.vlgmr.msra.gmra.mrb[0].mxu0 %vm14701_vm1, %v475_v39 }
  0x8d   :  { %10927 = vmatpush3.bf16.msra.mxu0 %v10924_v36  ;;  %9232 = vmatprep.mubr.msk.f32.mxu0 %vm14701_vm1, %v476_v41 }
  0x8e   :  { %10929 = vmatprep.subr.bf16.mxu0 %v10928_v40 }
  0x90   :  { %9233 = vmatmul.mubr.msk.f32.gmra.mrb[2].mxu0 %vm14701_vm1, %v477_v44 }
  0x91   :  { %10931 = vmatpush3.bf16.msra.mxu0 %v10928_v40  ;;  %9251 = vmatprep.mubr.msk.f32.mxu0 %vm14701_vm1, %v12545_v0  ;;  %v2909_v0 = vand.u32 15, %v709_v51 }
  0x92   :  { %10933 = vmatprep.subr.bf16.mxu0 %v10932_v45 }
  0x93   :  { %vm2925_vm5 = vcmp.eq.s32.totalorder %v2909_v0, %v12485_v28 }
  0x94   :  { %vm12629_vm8 = vmpackc.low %vm2926_vm7, %vm2925_vm5  ;;  %vm12275_vm5 = vmmov 0   ;;  %vm751_vm7 = vcmp.eq.s32.totalorder %v735_v19, %v12485_v28 }
  0x95   :  { %10935 = vmatpush3.bf16.msra.mxu0 %v10932_v45  ;;  %9289 = vmatprep.mubr.msk.f32.mxu1 %vm12275_vm5, %v12272_v1  ;;  %vm12684_vm11 = vmpackc.low %vm752_vm10, %vm751_vm7 }
  0x96   :  { %10937 = vmatprep.subr.bf16.mxu0 %v10936_v48  ;;  %10963 = vmatpush3.bf16.msk.msra.mxu1 %vm12684_vm11, %v12274_v52 }
  0x97   :  { %10964 = vmatprep.subr.bf16.mxu1 %v12273_v2 }
  0x99   :  { %10939 = vmatpush3.bf16.msra.mxu0 %v10936_v48 }
  0x9a   :  { %11148 = vmatprep.subr.bf16.mxu0 %v12273_v2 }
  0x9c   :  { %9252 = vmatmul.mubr.msk.f32.vlgmr.msra.gmra.mrb[0].mxu0 %vm14701_vm1, %v12547_v4 }
  0x9d   :  { %9254 = vmatprep.mubr.msk.f32.mxu0 %vm14701_vm1, %v12553_v7  ;;  %11150 = vmatpush3.bf16.msk.msra.mxu0 %vm12507_vm6, %v12274_v52 }
  0x9e   :  { %11151 = vmatprep.subr.bf16.mxu0 %v12273_v2 }
  0xa0   :  { %9255 = vmatmul.mubr.msk.f32.gmra.mrb[2].mxu0 %vm14701_vm1, %v591_v50 }
  0xa1   :  { %11153 = vmatpush3.bf16.msk.msra.mxu0 %vm12521_vm9, %v12274_v52  ;;  %9559 = vmatprep.mubr.msk.f32.mxu0 %vm12275_vm5, %v12272_v1 }
  0xa2   :  { %11154 = vmatprep.subr.bf16.mxu0 %v12273_v2 }
  0xa5   :  { %11156 = vmatpush3.bf16.msk.msra.mxu0 %vm12537_vm13, %v12274_v52 }
  0xa6   :  { %11157 = vmatprep.subr.bf16.mxu0 %v12273_v2 }
  0xa9   :  { %11159 = vmatpush3.bf16.msk.msra.mxu0 %vm12595_vm0, %v12274_v52 }
  0xaa   :  { %11160 = vmatprep.subr.bf16.mxu0 %v12273_v2 }
  0xad   :  { %11162 = vmatpush3.bf16.msk.msra.mxu0 %vm12611_vm4, %v12274_v52 }
  0xae   :  { %11163 = vmatprep.subr.bf16.mxu0 %v12273_v2 }
  0xb1   :  { %11165 = vmatpush3.bf16.msk.msra.mxu0 %vm12645_vm14, %v12274_v52 }
  0xb2   :  { %11166 = vmatprep.subr.bf16.mxu0 %v12273_v2 }
  0xb5   :  { %11168 = vmatpush3.bf16.msk.msra.mxu0 %vm12667_vm3, %v12274_v52 }
  0xb6   :  { %11169 = vmatprep.subr.bf16.mxu0 %v12273_v2 }
  0xb9   :  { %11171 = vmatpush3.bf16.msk.msra.mxu0 %vm12684_vm11, %v12274_v52 }
  0xba   :  { %11172 = vmatprep.subr.bf16.mxu0 %v12273_v2 }
 0x16f   :  { %v12699_v23 = vpop.f32.mrb[0].mxu0 }
 0x170   :  { %v852_v24 = vmul.f32 %v12699_v23, %v12699_v23  ;;  %v12703_v27 = vpop.f32.mrb[1].mxu0 }
 0x171   :  { %v772_v29 = vadd.f32 %v12699_v23, %v12703_v27  ;;  %v851_v30 = vmul.f32 %v12703_v27, %v12703_v27 }
 0x173   :  { %v855_v31 = vadd.f32 %v852_v24, %v851_v30  ;;  %v12709_v32 = vpop.f32.mrb[2].mxu0  ;;  %v7811_v30 = vld [vmem:[%s14738_s18 + $0x80] sm:$0xff] }
 0x174   :  { %v12711_v33 = vpop.f32.mrb[3].mxu0  ;;  %v854_v36 = vmul.f32 %v12709_v32, %v12709_v32 }
 0x175   :  { %v773_v34 = vadd.f32 %v772_v29, %v12711_v33  ;;  %v853_v35 = vmul.f32 %v12711_v33, %v12711_v33  ;;  %v939_v29 = vld [vmem:[%s14683_s10] sm:$0x1] }
 0x177   :  { %v774_v37 = vadd.f32 %v12709_v32, %v773_v34  ;;  %v856_v38 = vadd.f32 %v855_v31, %v853_v35  ;;  %v7812_v31 = vld [vmem:[%s14738_s18 + $0x88] sm:$0xff] }
 0x179   :  { %v775_v39 = vrot.slane %v774_v37, 4  ;;  %v857_v40 = vadd.f32 %v856_v38, %v854_v36  ;;  %v10988_v36 = vpack.c.bf16 %v7812_v31, %v7811_v30  ;;  %v7813_v38 = vld [vmem:[%s14738_s18 + $0x90] sm:$0xff]  ;;  %v12833_v30 = vsub.s32 0, %v12468_v16 }
 0x17b   :  { %v776_v41 = vadd.f32 %v775_v39, %v774_v37  ;;  %v858_v46 = vrot.slane %v857_v40, 4  ;;  %v940_v37 = vld [vmem:[%s14683_s10 + $0x1] sm:$0x1]  ;;  %v7814_v39 = vld [vmem:[%s14738_s18 + $0x98] sm:$0xff] }
 0x17d   :  { %v777_v42 = vrot.slane %v776_v41, 2  ;;  %v859_v47 = vadd.f32 %v858_v46, %v857_v40  ;;  %v7817_v46 = vld [vmem:[%s14738_s18 + $0xb0] sm:$0xff] }
 0x17f   :  { %v778_v43 = vadd.f32 %v777_v42, %v776_v41  ;;  %v860_v48 = vrot.slane %v859_v47, 2  ;;  %v10992_v42 = vpack.c.bf16 %v7814_v39, %v7813_v38 }
 0x181   :  { %v779_v44 = vrot.slane %v778_v43, 1  ;;  %v861_v50 = vadd.f32 %v860_v48, %v859_v47  ;;  %v7818_v47 = vld [vmem:[%s14738_s18 + $0xb8] sm:$0xff] }
 0x182   :  { %v11000_v48 = vpack.c.bf16 %v7818_v47, %v7817_v46 }
 0x183   :  { %v780_v45 = vadd.f32 %v779_v44, %v778_v43  ;;  %v862_v51 = vrot.slane %v861_v50, 1  ;;  %v7815_v43 = vld [vmem:[%s14738_s18 + $0xa0] sm:$0xff]  ;;  %v7816_v44 = vld [vmem:[%s14738_s18 + $0xa8] sm:$0xff] }
 0x185   :  { %9290 = vmatmul.mubr.f32.vlgmr.msra.gmra.mrb[0].mxu1 %v780_v45  ;;  %v863_v53 = vadd.f32 %v862_v51, %v861_v50  ;;  %v10996_v45 = vpack.c.bf16 %v7816_v44, %v7815_v43  ;;  %v7819_v50 = vld [vmem:[%s14738_s18 + $0xc0] sm:$0xff]  ;;  %v7820_v51 = vld [vmem:[%s14738_s18 + $0xc8] sm:$0xff] }
 0x186   :  { %10966 = vmatpush3.bf16.msk.msra.mxu1 %vm12507_vm6, %v12274_v52  ;;  %9324 = vmatprep.mubr.msk.f32.mxu1 %vm12275_vm5, %v12272_v1 }
 0x187   :  { %10967 = vmatprep.subr.bf16.mxu1 %v12273_v2 }
 0x18a   :  { %10969 = vmatpush3.bf16.msk.msra.mxu1 %vm12521_vm9, %v12274_v52 }
 0x18b   :  { %10970 = vmatprep.subr.bf16.mxu1 %v12273_v2 }
 0x18e   :  { %10972 = vmatpush3.bf16.msk.msra.mxu1 %vm12537_vm13, %v12274_v52 }
 0x18f   :  { %10973 = vmatprep.subr.bf16.mxu1 %v12273_v2 }
 0x192   :  { %10975 = vmatpush3.bf16.msk.msra.mxu1 %vm12595_vm0, %v12274_v52 }
 0x193   :  { %10976 = vmatprep.subr.bf16.mxu1 %v12273_v2 }
 0x196   :  { %10978 = vmatpush3.bf16.msk.msra.mxu1 %vm12611_vm4, %v12274_v52 }
 0x197   :  { %10979 = vmatprep.subr.bf16.mxu1 %v12273_v2 }
 0x19a   :  { %10981 = vmatpush3.bf16.msk.msra.mxu1 %vm12645_vm14, %v12274_v52 }
 0x19b   :  { %10982 = vmatprep.subr.bf16.mxu1 %v12273_v2 }
 0x19e   :  { %10984 = vmatpush3.bf16.msk.msra.mxu1 %vm12667_vm3, %v12274_v52 }
 0x19f   :  { %10985 = vmatprep.subr.bf16.mxu1 %v12273_v2 }
 0x1a2   :  { %10987 = vmatpush3.bf16.msk.msra.mxu1 %vm12684_vm11, %v12274_v52 }
 0x1a3   :  { %9327 = vmatprep.subr.mxu1 %v12272_v1 }
 0x1a5   :  { %9325 = vmatmul.mubr.f32.vlgmr.msra.gmra.mrb[2].mxu1 %v863_v53  ;;  %v11004_v53 = vpack.c.bf16 %v7820_v51, %v7819_v50 }
 0x1a6   :  { %9329 = vmatprep.mubr.msk.f32.mxu1 %vm12275_vm5, %v12272_v1  ;;  %9328 = vmatpush3.msk.msra.mxu1 %vm12757_vm15, %v12276_v62 }
 0x1a7   :  { %9332 = vmatprep.subr.mxu1 %v12272_v1 }
 0x258   :  { %v847_v63 = vpop.f32.mrb[0].mxu1 }
 0x259   :  { %v9291_v0 = vpop.f32.mrb[1].mxu1  ;;  %v934_v3 = vmul.f32 0.001953125, %v847_v63  ;;  %v7822_v63 = vld [vmem:[%s14738_s18 + $0xd8] sm:$0xff] }
 0x25a   :  { %v11008_v0 = vpack.c.bf16 %v7822_v63, %v7821_v54  ;;  %v1132_v54 = vld [vmem:[%s14738_s18 + $0x18] sm:$0xff] }
 0x25b   :  { %v936_v9 = vmul.f32 %v934_v3, %v934_v3 }
 0x278   :  { %v930_v8 = vpop.f32.mrb[2].mxu1 }
 0x279   :  { %v935_v13 = vmul.f32 0.001953125, %v930_v8  ;;  %v9326_v14 = vpop.f32.mrb[3].mxu1  ;;  %v7824_v8 = vld [vmem:[%s14738_s18 + $0xe8] sm:$0xff] }
 0x27a   :  { %v7826_v14 = vld [vmem:[%s14738_s18 + $0xf8] sm:$0xff] }
 0x27b   :  { %v937_v19 = vsub.f32 %v935_v13, %v936_v9  ;;  %v7825_v13 = vld [vmem:[%s14738_s18 + $0xf0] sm:$0xff] }
 0x27d   :  { %v938_v20 = vmax.f32 %v937_v19, 0.0  ;;  %v11016_v19 = vpack.c.bf16 %v7826_v14, %v7825_v13 }
 0x27f   :  { %v941_v24 = vadd.f32 1e-05, %v938_v20  ;;  %v1129_v20 = vld [vmem:[%s14738_s18] sm:$0xff] }
 0x281   :  { %12181 = vrsqrt.f32 %v941_v24  ;;  %v1130_v24 = vld [vmem:[%s14738_s18 + $0x8] sm:$0xff] }
 0x28b   :  { %v12182_v34 = vpop.eup %12181 }
 0x28c   :  { %v943_v35 = vmul.f32 %v12182_v34, %v939_v29  ;;  %v11020_v29 = vpack.c.bf16 %v1130_v24, %v1129_v20  ;;  %v1135_v20 = vld [vmem:[%s14738_s18 + $0x30] sm:$0xff]  ;;  %v1136_v24 = vld [vmem:[%s14738_s18 + $0x38] sm:$0xff] }
 0x28e   :  { %9330 = vmatmul.mubr.msk.f32.vlgmr.msra.gmra.mrb[4].mxu1 %vm14702_vm2, %v943_v35  ;;  %v944_v40 = vmul.f32 %v943_v35, %v934_v3  ;;  %v7823_v3 = vld [vmem:[%s14738_s18 + $0xe0] sm:$0xff] }
 0x28f   :  { %9333 = vmatpush3.msk.msra.mxu1 %vm12757_vm15, %v12276_v62  ;;  %9334 = vmatprep.mubr.msk.f32.mxu1 %vm12275_vm5, %v12272_v1  ;;  %v11012_v9 = vpack.c.bf16 %v7824_v8, %v7823_v3  ;;  %v1133_v8 = vld [vmem:[%s14738_s18 + $0x20] sm:$0xff] }
 0x290   :  { %v945_v41 = vsub.f32 %v940_v37, %v944_v40  ;;  %10989 = vmatprep.subr.bf16.mxu1 %v10988_v36 }
 0x292   :  { %9335 = vmatmul.mubr.msk.f32.vlgmr.msra.gmra.mrb[6].mxu1 %vm14702_vm2, %v945_v41 }
 0x293   :  { %10991 = vmatpush3.bf16.msra.mxu1 %v10988_v36 }
 0x294   :  { %10993 = vmatprep.subr.bf16.mxu1 %v10992_v42 }
 0x297   :  { %10995 = vmatpush3.bf16.msra.mxu1 %v10992_v42 }
 0x298   :  { %10997 = vmatprep.subr.bf16.mxu1 %v10996_v45 }
 0x29b   :  { %10999 = vmatpush3.bf16.msra.mxu1 %v10996_v45 }
 0x29c   :  { %11001 = vmatprep.subr.bf16.mxu1 %v11000_v48 }
 0x29f   :  { %11003 = vmatpush3.bf16.msra.mxu1 %v11000_v48 }
 0x2a0   :  { %11005 = vmatprep.subr.bf16.mxu1 %v11004_v53 }
 0x2a3   :  { %11007 = vmatpush3.bf16.msra.mxu1 %v11004_v53  ;;  %v1131_v53 = vld [vmem:[%s14738_s18 + $0x10] sm:$0xff] }
 0x2a4   :  { %11009 = vmatprep.subr.bf16.mxu1 %v11008_v0  ;;  %v11024_v3 = vpack.c.bf16 %v1132_v54, %v1131_v53 }
 0x2a7   :  { %11011 = vmatpush3.bf16.msra.mxu1 %v11008_v0 }
 0x2a8   :  { %11013 = vmatprep.subr.bf16.mxu1 %v11012_v9 }
 0x2ab   :  { %11015 = vmatpush3.bf16.msra.mxu1 %v11012_v9  ;;  %v1134_v9 = vld [vmem:[%s14738_s18 + $0x28] sm:$0xff] }
 0x2ac   :  { %11017 = vmatprep.subr.bf16.mxu1 %v11016_v19  ;;  %v11028_v14 = vpack.c.bf16 %v1134_v9, %v1133_v8 }
 0x2af   :  { %11019 = vmatpush3.bf16.msra.mxu1 %v11016_v19 }
 0x2b0   :  { %11021 = vmatprep.subr.bf16.mxu1 %v11020_v29 }
 0x361   :  { %v1016_v31 = vpop.f32.mrb[4].mxu1 }
 0x362   :  { %v1096_v34 = vrot.slane %v1016_v31, %v12833_v30  ;;  %v9331_v35 = vpop.f32.mrb[5].mxu1 }
 0x363   :  { %v1138_v35 = vld [vmem:[%s14738_s18 + $0x48] sm:$0xff] }
 0x364   :  { %v1097_v36 = vmul.f32 %v1096_v34, %v12703_v27  ;;  %v1098_v37 = vmul.f32 %v12699_v23, %v1096_v34  ;;  %v1099_v38 = vmul.f32 %v1096_v34, %v12711_v33  ;;  %v1100_v39 = vmul.f32 %v12709_v32, %v1096_v34 }
 0x365   :  { %v1089_v40 = vpop.f32.mrb[6].mxu1  ;;  %v11032_v34 = vpack.c.bf16 %v1136_v24, %v1135_v20  ;;  %v7835_v20 = vld [vmem:[%s14738_s18 + $0x140] sm:$0xff]  ;;  %v7836_v24 = vld [vmem:[%s14738_s18 + $0x148] sm:$0xff] }
 0x366   :  { %v1104_v41 = vrot.slane %v1089_v40, %v12833_v30  ;;  %v9336_v42 = vpop.f32.mrb[7].mxu1  ;;  %v1141_v40 = vld [vmem:[%s14738_s18 + $0x60] sm:$0xff] }
 0x368   :  { %v1105_v43 = vadd.f32 %v1104_v41, %v1097_v36  ;;  %v1106_v44 = vadd.f32 %v1104_v41, %v1098_v37  ;;  %v1107_v45 = vadd.f32 %v1104_v41, %v1099_v38  ;;  %v1108_v46 = vadd.f32 %v1104_v41, %v1100_v39  ;;  %v1139_v37 = vld [vmem:[%s14738_s18 + $0x50] sm:$0xff]  ;;  %v1140_v38 = vld [vmem:[%s14738_s18 + $0x58] sm:$0xff]  ;;  %v1142_v41 = vld [vmem:[%s14738_s18 + $0x68] sm:$0xff] }
 0x369   :  { %v11040_v39 = vpack.c.bf16 %v1140_v38, %v1139_v37  ;;  %v11044_v42 = vpack.c.bf16 %v1142_v41, %v1141_v40  ;;  %v7841_v38 = vld [vmem:[%s14738_s18 + $0x170] sm:$0xff]  ;;  %v7843_v41 = vld [vmem:[%s14738_s18 + $0x180] sm:$0xff] }
 0x36a   :  { %vm1109_vm7 = vcmp.gt.f32.partialorder %v1105_v43, 0.0  ;;  %vm1110_vm10 = vcmp.gt.f32.partialorder %v1106_v44, 0.0  ;;  %vm1111_vm1 = vcmp.gt.f32.partialorder %v1107_v45, 0.0  ;;  %vm1112_vm2 = vcmp.gt.f32.partialorder %v1108_v46, 0.0 }
 0x36b   :  { %v1113_v47 = vmul.f32 0.2, %v1105_v43  ;;  %v1114_v27 = vmul.f32 0.2, %v1106_v44  ;;  %v1115_v48 = vmul.f32 0.2, %v1107_v45 }
 0x36c   :  { %v1116_v23 = vmul.f32 0.2, %v1108_v46 }
 0x36d   :  { %v12841_v50 = vsel %vm1109_vm7, %v1105_v43, %v1113_v47  ;;  %v12843_v33 = vsel %vm1110_vm10, %v1106_v44, %v1114_v27  ;;  %v12845_v32 = vsel %vm1111_vm1, %v1107_v45, %v1115_v48  ;;  %v1143_v43 = vld [vmem:[%s14738_s18 + $0x70] sm:$0xff]  ;;  %v1144_v44 = vld [vmem:[%s14738_s18 + $0x78] sm:$0xff]  ;;  %v7828_v47 = vld [vmem:[%s14738_s18 + $0x108] sm:$0xff]  ;;  %vm14739_vm1 = vcmask 64512  }
 0x36e   :  { %v12847_v51 = vsel %vm1112_vm2, %v1108_v46, %v1116_v23  ;;  %1121 = vst [vmem:[#allocation3 + $0x4] sm:$0xff] %v12841_v50  ;;  %1122 = vst [vmem:[#allocation3 + $0xc] sm:$0xff] %v12843_v33  ;;  %v11048_v45 = vpack.c.bf16 %v1144_v44, %v1143_v43  ;;  %v7827_v46 = vld [vmem:[%s14738_s18 + $0x100] sm:$0xff]  ;;  %v7829_v48 = vld [vmem:[%s14738_s18 + $0x110] sm:$0xff] }
 0x36f   :  { %1123 = vst [vmem:[#allocation3 + $0x14] sm:$0xff] %v12845_v32  ;;  %1124 = vst [vmem:[#allocation3 + $0x1c] sm:$0xff] %v12847_v51  ;;  %v11052_v27 = vpack.c.bf16 %v7828_v47, %v7827_v46  ;;  %v7830_v23 = vld [vmem:[%s14738_s18 + $0x118] sm:$0xff]  ;;  %v7845_v44 = vld [vmem:[%s14738_s18 + $0x190] sm:$0xff] }
 0x370   :  { %v11056_v53 = vpack.c.bf16 %v7830_v23, %v7829_v48  ;;  %v7847_v47 = vld [vmem:[%s14738_s18 + $0x1a0] sm:$0xff]  ;;  %v7849_v23 = vld [vmem:[%s14738_s18 + $0x1b0] sm:$0xff] }
 0x375   :  { %v1145_v63 = vld [vmem:[#allocation3 + $0x2] sm:$0xff]  ;;  %v1146_v0 = vld [vmem:[#allocation3 + $0xa] sm:$0xff] }
 0x376   :  { %9369 = vmatprep.mubr.f32.mxu1 %v1145_v63  ;;  %v1147_v13 = vld [vmem:[#allocation3 + $0x12] sm:$0xff]  ;;  %v1148_v19 = vld [vmem:[#allocation3 + $0x1a] sm:$0xff]  ;;  %v12907_v54 = vld [vmem:[#allocation3 + $0x8] sm:$0xff] }
 0x377   :  { %9370 = vmatmul.mubr.f32.vlgmr.msra.gmra.mrb[8].mxu1 %v1146_v0  ;;  %v1125_v31 = vld [vmem:[#allocation3] sm:$0xff]  ;;  %v7831_v63 = vld [vmem:[%s14738_s18 + $0x120] sm:$0xff] }
 0x378   :  { %11023 = vmatpush3.bf16.msra.mxu1 %v11020_v29  ;;  %9372 = vmatprep.mubr.f32.mxu1 %v1147_v13  ;;  %v1137_v29 = vld [vmem:[%s14738_s18 + $0x40] sm:$0xff]  ;;  %v7832_v0 = vld [vmem:[%s14738_s18 + $0x128] sm:$0xff]  ;;  %v7833_v13 = vld [vmem:[%s14738_s18 + $0x130] sm:$0xff] }
 0x379   :  { %11025 = vmatprep.subr.bf16.mxu1 %v11024_v3  ;;  %v11036_v36 = vpack.c.bf16 %v1138_v35, %v1137_v29  ;;  %v11060_v8 = vpack.c.bf16 %v7832_v0, %v7831_v63  ;;  %v12919_v9 = vld [vmem:[#allocation3 + $0x18] sm:$0xff]  ;;  %v1446_v63 = vld [vmem:[#allocation3 + $0x6] sm:$0xff] }
 0x37a   :  { %v7839_v35 = vld [vmem:[%s14738_s18 + $0x160] sm:$0xff]  ;;  %v7852_v0 = vld [vmem:[%s14738_s18 + $0x1c8] sm:$0xff] }
 0x37b   :  { %9373 = vmatmul.mubr.f32.gmra.mrb[10].mxu1 %v1148_v19 }
 0x37c   :  { %11027 = vmatpush3.bf16.msra.mxu1 %v11024_v3  ;;  %9407 = vmatprep.mubr.f32.mxu1 %v1125_v31  ;;  %v12916_v3 = vld [vmem:[#allocation3 + $0x10] sm:$0xff]  ;;  %v11068_v31 = vpack.c.bf16 %v7836_v24, %v7835_v20  ;;  %v7856_v20 = vld [vmem:[%s14738_s18 + $0x1e8] sm:$0xff] }
 0x37d   :  { %11029 = vmatprep.subr.bf16.mxu1 %v11028_v14 }
 0x380   :  { %11031 = vmatpush3.bf16.msra.mxu1 %v11028_v14  ;;  %v7834_v14 = vld [vmem:[%s14738_s18 + $0x138] sm:$0xff] }
 0x381   :  { %11033 = vmatprep.subr.bf16.mxu1 %v11032_v34  ;;  %v11064_v19 = vpack.c.bf16 %v7834_v14, %v7833_v13  ;;  %v7854_v13 = vld [vmem:[%s14738_s18 + $0x1d8] sm:$0xff] }
 0x384   :  { %11035 = vmatpush3.bf16.msra.mxu1 %v11032_v34  ;;  %v7837_v34 = vld [vmem:[%s14738_s18 + $0x150] sm:$0xff] }
 0x385   :  { %11037 = vmatprep.subr.bf16.mxu1 %v11036_v36 }
 0x388   :  { %11039 = vmatpush3.bf16.msra.mxu1 %v11036_v36  ;;  %v7840_v36 = vld [vmem:[%s14738_s18 + $0x168] sm:$0xff] }
 0x389   :  { %11041 = vmatprep.subr.bf16.mxu1 %v11040_v39  ;;  %v11076_v37 = vpack.c.bf16 %v7840_v36, %v7839_v35  ;;  %v7860_v35 = vld [vmem:[%s14738_s18 + $0x208] sm:$0xff] }
 0x38c   :  { %11043 = vmatpush3.bf16.msra.mxu1 %v11040_v39  ;;  %v7842_v39 = vld [vmem:[%s14738_s18 + $0x178] sm:$0xff] }
 0x38d   :  { %11045 = vmatprep.subr.bf16.mxu1 %v11044_v42  ;;  %v11080_v40 = vpack.c.bf16 %v7842_v39, %v7841_v38  ;;  %v7862_v38 = vld [vmem:[%s14738_s18 + $0x218] sm:$0xff] }
 0x390   :  { %11047 = vmatpush3.bf16.msra.mxu1 %v11044_v42  ;;  %v7844_v42 = vld [vmem:[%s14738_s18 + $0x188] sm:$0xff] }
 0x391   :  { %11049 = vmatprep.subr.bf16.mxu1 %v11048_v45  ;;  %v11084_v43 = vpack.c.bf16 %v7844_v42, %v7843_v41  ;;  %v7863_v41 = vld [vmem:[%s14738_s18 + $0x220] sm:$0xff]  ;;  %v7864_v42 = vld [vmem:[%s14738_s18 + $0x228] sm:$0xff] }
 0x394   :  { %11051 = vmatpush3.bf16.msra.mxu1 %v11048_v45  ;;  %v7846_v45 = vld [vmem:[%s14738_s18 + $0x198] sm:$0xff] }
 0x395   :  { %11053 = vmatprep.subr.bf16.mxu1 %v11052_v27  ;;  %v11088_v46 = vpack.c.bf16 %v7846_v45, %v7845_v44  ;;  %v11124_v44 = vpack.c.bf16 %v7864_v42, %v7863_v41  ;;  %v1449_v45 = vld [vmem:[#allocation3 + $0x1e] sm:$0xff] }
 0x397   :  { %9408 = vmatmul.mubr.f32.vlgmr.msra.gmra.mrb[8].mxu1 %v12907_v54 }
 0x398   :  { %9410 = vmatprep.mubr.f32.mxu1 %v12916_v3  ;;  %11055 = vmatpush3.bf16.msra.mxu1 %v11052_v27  ;;  %v7848_v27 = vld [vmem:[%s14738_s18 + $0x1a8] sm:$0xff] }
 0x399   :  { %11057 = vmatprep.subr.bf16.mxu1 %v11056_v53  ;;  %v11092_v48 = vpack.c.bf16 %v7848_v27, %v7847_v47  ;;  %v7866_v47 = vld [vmem:[%s14738_s18 + $0x238] sm:$0xff] }
 0x39b   :  { %9411 = vmatmul.mubr.f32.gmra.mrb[10].mxu1 %v12919_v9 }
 0x39c   :  { %11059 = vmatpush3.bf16.msra.mxu1 %v11056_v53  ;;  %9445 = vmatprep.mubr.f32.mxu1 %v12841_v50  ;;  %v7838_v50 = vld [vmem:[%s14738_s18 + $0x158] sm:$0xff] }
 0x39d   :  { %11061 = vmatprep.subr.bf16.mxu1 %v11060_v8  ;;  %v11072_v29 = vpack.c.bf16 %v7838_v50, %v7837_v34  ;;  %v7850_v53 = vld [vmem:[%s14738_s18 + $0x1b8] sm:$0xff] }
 0x39e   :  { %v7858_v34 = vld [vmem:[%s14738_s18 + $0x1f8] sm:$0xff] }
 0x3a0   :  { %11063 = vmatpush3.bf16.msra.mxu1 %v11060_v8 }
 0x3a1   :  { %11065 = vmatprep.subr.bf16.mxu1 %v11064_v19 }
 0x3a4   :  { %11067 = vmatpush3.bf16.msra.mxu1 %v11064_v19  ;;  %v7855_v19 = vld [vmem:[%s14738_s18 + $0x1e0] sm:$0xff] }
 0x3a5   :  { %11069 = vmatprep.subr.bf16.mxu1 %v11068_v31  ;;  %v11108_v24 = vpack.c.bf16 %v7856_v20, %v7855_v19  ;;  %v1559_v19 = vld [vmem:[#allocation3 + $0x20] sm:$0xff] }
 0x3a8   :  { %11071 = vmatpush3.bf16.msra.mxu1 %v11068_v31  ;;  %v7857_v31 = vld [vmem:[%s14738_s18 + $0x1f0] sm:$0xff] }
 0x3a9   :  { %11073 = vmatprep.subr.bf16.mxu1 %v11072_v29  ;;  %v11112_v50 = vpack.c.bf16 %v7858_v34, %v7857_v31 }
 0x3ac   :  { %11075 = vmatpush3.bf16.msra.mxu1 %v11072_v29  ;;  %v7859_v29 = vld [vmem:[%s14738_s18 + $0x200] sm:$0xff] }
 0x3ad   :  { %11077 = vmatprep.subr.bf16.mxu1 %v11076_v37  ;;  %v11116_v36 = vpack.c.bf16 %v7860_v35, %v7859_v29 }
 0x3b0   :  { %11079 = vmatpush3.bf16.msra.mxu1 %v11076_v37  ;;  %v7861_v37 = vld [vmem:[%s14738_s18 + $0x210] sm:$0xff] }
 0x3b1   :  { %11081 = vmatprep.subr.bf16.mxu1 %v11080_v40  ;;  %v11120_v39 = vpack.c.bf16 %v7862_v38, %v7861_v37 }
 0x3b4   :  { %11083 = vmatpush3.bf16.msra.mxu1 %v11080_v40  ;;  %v1447_v40 = vld [vmem:[#allocation3 + $0xe] sm:$0xff] }
 0x3b5   :  { %11085 = vmatprep.subr.bf16.mxu1 %v11084_v43 }
 0x3b7   :  { %9446 = vmatmul.mubr.f32.vlgmr.msra.gmra.mrb[8].mxu1 %v12843_v33  ;;  %v11096_v33 = vpack.c.bf16 %v7850_v53, %v7849_v23  ;;  %v7868_v23 = vld [vmem:[%s14738_s18 + $0x248] sm:$0xff] }
 0x3b8   :  { %9448 = vmatprep.mubr.f32.mxu1 %v12845_v32  ;;  %11087 = vmatpush3.bf16.msra.mxu1 %v11084_v43  ;;  %v7851_v32 = vld [vmem:[%s14738_s18 + $0x1c0] sm:$0xff] }
 0x3b9   :  { %11089 = vmatprep.subr.bf16.mxu1 %v11088_v46  ;;  %v11100_v8 = vpack.c.bf16 %v7852_v0, %v7851_v32  ;;  %v1448_v43 = vld [vmem:[#allocation3 + $0x16] sm:$0xff]  ;;  %v7872_v0 = vld [vmem:[%s14738_s18 + $0x268] sm:$0xff] }
 0x3ba   :  { %v7871_v32 = vld [vmem:[%s14738_s18 + $0x260] sm:$0xff] }
 0x3bb   :  { %9449 = vmatmul.mubr.f32.gmra.mrb[10].mxu1 %v12847_v51  ;;  %v7853_v51 = vld [vmem:[%s14738_s18 + $0x1d0] sm:$0xff] }
 0x3bc   :  { %11091 = vmatpush3.bf16.msra.mxu1 %v11088_v46  ;;  %9483 = vmatprep.mubr.f32.mxu1 %v1446_v63  ;;  %v11104_v14 = vpack.c.bf16 %v7854_v13, %v7853_v51  ;;  %v7865_v46 = vld [vmem:[%s14738_s18 + $0x230] sm:$0xff]  ;;  %v7874_v13 = vld [vmem:[%s14738_s18 + $0x278] sm:$0xff] }
 0x3bd   :  { %11093 = vmatprep.subr.bf16.mxu1 %v11092_v48  ;;  %v11128_v27 = vpack.c.bf16 %v7866_v47, %v7865_v46  ;;  %v7869_v63 = vld [vmem:[%s14738_s18 + $0x250] sm:$0xff] }
 0x3be   :  { %v7873_v51 = vld [vmem:[%s14738_s18 + $0x270] sm:$0xff] }
 0x3c0   :  { %11095 = vmatpush3.bf16.msra.mxu1 %v11092_v48  ;;  %v7867_v48 = vld [vmem:[%s14738_s18 + $0x240] sm:$0xff] }
 0x3c1   :  { %11097 = vmatprep.subr.bf16.mxu1 %v11096_v33  ;;  %v11132_v53 = vpack.c.bf16 %v7868_v23, %v7867_v48 }
 0x3c4   :  { %11099 = vmatpush3.bf16.msra.mxu1 %v11096_v33 }
 0x3c5   :  { %11101 = vmatprep.subr.bf16.mxu1 %v11100_v8 }
 0x3c8   :  { %11103 = vmatpush3.bf16.msra.mxu1 %v11100_v8  ;;  %v11140_v8 = vpack.c.bf16 %v7872_v0, %v7871_v32  ;;  %v1833_v32 = vld [vmem:[%s14684_s11] sm:$0x1] }
 0x3c9   :  { %11105 = vmatprep.subr.bf16.mxu1 %v11104_v14 }
 0x3cc   :  { %11107 = vmatpush3.bf16.msra.mxu1 %v11104_v14  ;;  %v11144_v14 = vpack.c.bf16 %v7874_v13, %v7873_v51  ;;  %v1834_v51 = vld [vmem:[%s14684_s11 + $0x1] sm:$0x1]  ;;  %s14758_s11 = sld [smem:[#allocation24_spill]] }
 0x3cd   :  { %11109 = vmatprep.subr.bf16.mxu1 %v11108_v24 }
 0x3d0   :  { %11111 = vmatpush3.bf16.msra.mxu1 %v11108_v24 }
 0x3d1   :  { %11113 = vmatprep.subr.bf16.mxu1 %v11112_v50 }
 0x3d4   :  { %11115 = vmatpush3.bf16.msra.mxu1 %v11112_v50 }
 0x3d5   :  { %11117 = vmatprep.subr.bf16.mxu1 %v11116_v36 }
 0x3d7   :  { %9484 = vmatmul.mubr.f32.vlgmr.msra.gmra.mrb[8].mxu1 %v1447_v40 }
 0x3d8   :  { %9486 = vmatprep.mubr.f32.mxu1 %v1448_v43  ;;  %11119 = vmatpush3.bf16.msra.mxu1 %v11116_v36 }
 0x3d9   :  { %11121 = vmatprep.subr.bf16.mxu1 %v11120_v39 }
 0x3db   :  { %9487 = vmatmul.mubr.f32.gmra.mrb[10].mxu1 %v1449_v45 }
 0x3dc   :  { %11123 = vmatpush3.bf16.msra.mxu1 %v11120_v39  ;;  %9521 = vmatprep.mubr.f32.mxu1 %v12907_v54  ;;  %v7870_v54 = vld [vmem:[%s14738_s18 + $0x258] sm:$0xff] }
 0x3dd   :  { %11125 = vmatprep.subr.bf16.mxu1 %v11124_v44  ;;  %v11136_v33 = vpack.c.bf16 %v7870_v54, %v7869_v63 }
 0x3e0   :  { %11127 = vmatpush3.bf16.msra.mxu1 %v11124_v44 }
 0x3e1   :  { %11129 = vmatprep.subr.bf16.mxu1 %v11128_v27 }
 0x3e4   :  { %11131 = vmatpush3.bf16.msra.mxu1 %v11128_v27 }
 0x3e5   :  { %11133 = vmatprep.subr.bf16.mxu1 %v11132_v53 }
 0x3e8   :  { %11135 = vmatpush3.bf16.msra.mxu1 %v11132_v53 }
 0x3e9   :  { %11137 = vmatprep.subr.bf16.mxu1 %v11136_v33 }
 0x3ec   :  { %11139 = vmatpush3.bf16.msra.mxu1 %v11136_v33 }
 0x3ed   :  { %11141 = vmatprep.subr.bf16.mxu1 %v11140_v8 }
 0x3f0   :  { %11143 = vmatpush3.bf16.msra.mxu1 %v11140_v8 }
 0x3f1   :  { %11145 = vmatprep.subr.bf16.mxu1 %v11144_v14 }
 0x3f4   :  { %11147 = vmatpush3.bf16.msra.mxu1 %v11144_v14 }
 0x3f7   :  { %9522 = vmatmul.mubr.f32.vlgmr.msra.gmra.mrb[8].mxu1 %v12916_v3 }
 0x3f8   :  { %9524 = vmatprep.mubr.f32.mxu1 %v12919_v9 }
 0x3fb   :  { %9525 = vmatmul.mubr.f32.gmra.mrb[10].mxu1 %v1559_v19  ;;  %v13131_v19 = vld [vmem:[%s14692_s19] sm:$0xff] }
 0x4ca   :  { %v13055_v20 = vpop.f32.mrb[8].mxu1 }
 0x4cb   :  { %v1746_v24 = vmul.f32 %v13055_v20, %v13055_v20  ;;  %v13059_v31 = vpop.f32.mrb[9].mxu1 }
 0x4cc   :  { %v1666_v34 = vadd.f32 %v13055_v20, %v13059_v31  ;;  %v1745_v50 = vmul.f32 %v13059_v31, %v13059_v31 }
 0x4ce   :  { %v1749_v29 = vadd.f32 %v1746_v24, %v1745_v50  ;;  %v13065_v35 = vpop.f32.mrb[10].mxu1 }
 0x4cf   :  { %v13067_v3 = vpop.f32.mrb[11].mxu1  ;;  %v1748_v37 = vmul.f32 %v13065_v35, %v13065_v35 }
 0x4d0   :  { %v1667_v9 = vadd.f32 %v1666_v34, %v13067_v3  ;;  %v1747_v36 = vmul.f32 %v13067_v3, %v13067_v3 }
 0x4d2   :  { %v1668_v38 = vadd.f32 %v13065_v35, %v1667_v9  ;;  %v1750_v39 = vadd.f32 %v1749_v29, %v1747_v36 }
 0x4d4   :  { %v1669_v40 = vrot.slane %v1668_v38, 4  ;;  %v1751_v41 = vadd.f32 %v1750_v39, %v1748_v37 }
 0x4d6   :  { %v1670_v42 = vadd.f32 %v1669_v40, %v1668_v38  ;;  %v1752_v47 = vrot.slane %v1751_v41, 4 }
 0x4d8   :  { %v1671_v43 = vrot.slane %v1670_v42, 2  ;;  %v1753_v49 = vadd.f32 %v1752_v47, %v1751_v41 }
 0x4da   :  { %v1672_v44 = vadd.f32 %v1671_v43, %v1670_v42  ;;  %v1754_v55 = vrot.slane %v1753_v49, 2 }
 0x4dc   :  { %v1673_v45 = vrot.slane %v1672_v44, 1  ;;  %v1755_v60 = vadd.f32 %v1754_v55, %v1753_v49 }
 0x4de   :  { %v1674_v46 = vadd.f32 %v1673_v45, %v1672_v44  ;;  %v1756_v61 = vrot.slane %v1755_v60, 1 }
 0x4e0   :  { %9560 = vmatmul.mubr.f32.vlgmr.msra.gmra.mrb[4].mxu0 %v1674_v46  ;;  %v1757_v4 = vadd.f32 %v1756_v61, %v1755_v60 }
 0x4e1   :  { %11174 = vmatpush3.bf16.msk.msra.mxu0 %vm12507_vm6, %v12274_v52  ;;  %9594 = vmatprep.mubr.msk.f32.mxu0 %vm12275_vm5, %v12272_v1  ;;  %vm14740_vm6 = vmmov %vm14739_vm1 }
 0x4e2   :  { %11175 = vmatprep.subr.bf16.mxu0 %v12273_v2 }
 0x4e5   :  { %11177 = vmatpush3.bf16.msk.msra.mxu0 %vm12521_vm9, %v12274_v52  ;;  %vm2024_vm9 = vcmask 244736  }
 0x4e6   :  { %11178 = vmatprep.subr.bf16.mxu0 %v12273_v2  ;;  %9753 = vmatprep.mubr.msk.f32.mxu1 %vm2024_vm9, %v13131_v19 }
 0x4e9   :  { %11180 = vmatpush3.bf16.msk.msra.mxu0 %vm12537_vm13, %v12274_v52 }
 0x4ea   :  { %11181 = vmatprep.subr.bf16.mxu0 %v12273_v2 }
 0x4ed   :  { %11183 = vmatpush3.bf16.msk.msra.mxu0 %vm12595_vm0, %v12274_v52 }
 0x4ee   :  { %11184 = vmatprep.subr.bf16.mxu0 %v12273_v2 }
 0x4f1   :  { %11186 = vmatpush3.bf16.msk.msra.mxu0 %vm12611_vm4, %v12274_v52 }
 0x4f2   :  { %11187 = vmatprep.subr.bf16.mxu0 %v12273_v2 }
 0x4f5   :  { %11189 = vmatpush3.bf16.msk.msra.mxu0 %vm12645_vm14, %v12274_v52 }
 0x4f6   :  { %11190 = vmatprep.subr.bf16.mxu0 %v12273_v2 }
 0x4f9   :  { %11192 = vmatpush3.bf16.msk.msra.mxu0 %vm12667_vm3, %v12274_v52  ;;  %vm2031_vm3 = vcmask 1045504  }
 0x4fa   :  { %11193 = vmatprep.subr.bf16.mxu0 %v12273_v2 }
 0x4fd   :  { %11195 = vmatpush3.bf16.msk.msra.mxu0 %vm12684_vm11, %v12274_v52  ;;  %vm12277_vm11 = vmmov 1  }
 0x4fe   :  { %9597 = vmatprep.subr.mxu0 %v12272_v1 }
 0x500   :  { %9595 = vmatmul.mubr.f32.vlgmr.msra.gmra.mrb[6].mxu0 %v1757_v4 }
 0x501   :  { %9598 = vmatpush3.msk.msra.mxu0 %vm12757_vm15, %v12276_v62  ;;  %9599 = vmatprep.mubr.msk.f32.mxu0 %vm12275_vm5, %v12272_v1 }
 0x502   :  { %9602 = vmatprep.subr.mxu0 %v12272_v1 }
 0x5b3   :  { %v1741_v12 = vpop.f32.mrb[4].mxu0 }
 0x5b4   :  { %v9561_v18 = vpop.f32.mrb[5].mxu0  ;;  %v1828_v27 = vmul.f32 0.001953125, %v1741_v12 }
 0x5b6   :  { %v1830_v23 = vmul.f32 %v1828_v27, %v1828_v27 }
 0x5d3   :  { %v1824_v48 = vpop.f32.mrb[6].mxu0 }
 0x5d4   :  { %v1829_v22 = vmul.f32 0.001953125, %v1824_v48  ;;  %v9596_v53 = vpop.f32.mrb[7].mxu0 }
 0x5d6   :  { %v1831_v63 = vsub.f32 %v1829_v22, %v1830_v23 }
 0x5d8   :  { %v1832_v54 = vmax.f32 %v1831_v63, 0.0 }
 0x5da   :  { %v1835_v33 = vadd.f32 1e-05, %v1832_v54 }
 0x5dc   :  { %12183 = vrsqrt.f32 %v1835_v33 }
 0x5e6   :  { %v12184_v0 = vpop.eup %12183 }
 0x5e7   :  { %v1837_v8 = vmul.f32 %v12184_v0, %v1833_v32 }
 0x5e9   :  { %9600 = vmatmul.mubr.msk.f32.vlgmr.msra.gmra.mrb[8].mxu0 %vm14739_vm1, %v1837_v8  ;;  %v1838_v13 = vmul.f32 %v1837_v8, %v1828_v27  ;;  %v13161_v8 = vld [vmem:[%s14692_s19 + $0x8] sm:$0xff] }
 0x5ea   :  { %9603 = vmatpush3.msk.msra.mxu0 %vm12757_vm15, %v12276_v62  ;;  %9604 = vmatprep.mubr.msk.f32.mxu0 %vm12275_vm5, %v12272_v1  ;;  %vm13148_vm15 = vmpackc.low %vm2031_vm3, %vm12277_vm11 }
 0x5eb   :  { %v1839_v14 = vsub.f32 %v1834_v51, %v1838_v13 }
 0x5ed   :  { %9605 = vmatmul.mubr.msk.f32.vlgmr.msra.gmra.mrb[10].mxu0 %vm14740_vm6, %v1839_v14 }
 0x5ee   :  { %9615 = vmatprep.mubr.msk.f32.mxu0 %vm2024_vm9, %v13131_v19 }
 0x6bc   :  { %v1909_v57 = vpop.f32.mrb[8].mxu0 }
 0x6bd   :  { %v1989_v62 = vrot.slane %v1909_v57, %v12833_v30  ;;  %v9601_v24 = vpop.f32.mrb[9].mxu0 }
 0x6be   :  { %v7918_v24 = vld [vmem:[%s14743_s22 + $0x88] sm:$0xff] }
 0x6bf   :  { %v1990_v34 = vmul.f32 %v1989_v62, %v13059_v31  ;;  %v1991_v50 = vmul.f32 %v13055_v20, %v1989_v62  ;;  %v1992_v29 = vmul.f32 %v1989_v62, %v13067_v3  ;;  %v1993_v9 = vmul.f32 %v13065_v35, %v1989_v62  ;;  %v7917_v62 = vld [vmem:[%s14743_s22 + $0x80] sm:$0xff] }
 0x6c0   :  { %v1982_v36 = vpop.f32.mrb[10].mxu0 }
 0x6c1   :  { %v1997_v37 = vrot.slane %v1982_v36, %v12833_v30  ;;  %v9606_v38 = vpop.f32.mrb[11].mxu0  ;;  %v7920_v36 = vld [vmem:[%s14743_s22 + $0x98] sm:$0xff] }
 0x6c2   :  { %v7921_v38 = vld [vmem:[%s14743_s22 + $0xa0] sm:$0xff] }
 0x6c3   :  { %v1998_v39 = vadd.f32 %v1997_v37, %v1990_v34  ;;  %v1999_v40 = vadd.f32 %v1997_v37, %v1991_v50  ;;  %v2000_v41 = vadd.f32 %v1997_v37, %v1992_v29  ;;  %v2001_v42 = vadd.f32 %v1997_v37, %v1993_v9  ;;  %v7919_v9 = vld [vmem:[%s14743_s22 + $0x90] sm:$0xff] }
 0x6c4   :  { %v11216_v29 = vpack.c.bf16 %v7918_v24, %v7917_v62  ;;  %v11220_v37 = vpack.c.bf16 %v7920_v36, %v7919_v9  ;;  %v2117_v62 = vld [vmem:[%s14743_s22 + $0x38] sm:$0xff]  ;;  %v2120_v9 = vld [vmem:[%s14743_s22 + $0x50] sm:$0xff] }
 0x6c5   :  { %vm2002_vm13 = vcmp.gt.f32.partialorder %v1998_v39, 0.0  ;;  %vm2003_vm0 = vcmp.gt.f32.partialorder %v1999_v40, 0.0  ;;  %vm2004_vm4 = vcmp.gt.f32.partialorder %v2000_v41, 0.0  ;;  %vm2005_vm14 = vcmp.gt.f32.partialorder %v2001_v42, 0.0  ;;  %v2121_v36 = vld [vmem:[%s14743_s22 + $0x58] sm:$0xff] }
 0x6c6   :  { %v2006_v43 = vmul.f32 0.2, %v1998_v39  ;;  %v2007_v31 = vmul.f32 0.2, %v1999_v40  ;;  %v2008_v44 = vmul.f32 0.2, %v2000_v41 }
 0x6c7   :  { %v2009_v20 = vmul.f32 0.2, %v2001_v42 }
 0x6c8   :  { %v2010_v45 = vsel %vm2002_vm13, %v1998_v39, %v2006_v43  ;;  %v2011_v3 = vsel %vm2003_vm0, %v1999_v40, %v2007_v31  ;;  %v13143_v46 = vsel %vm2004_vm4, %v2000_v41, %v2008_v44  ;;  %v7922_v39 = vld [vmem:[%s14743_s22 + $0xa8] sm:$0xff]  ;;  %v7923_v41 = vld [vmem:[%s14743_s22 + $0xb0] sm:$0xff]  ;;  %v7925_v31 = vld [vmem:[%s14743_s22 + $0xc0] sm:$0xff] }
 0x6c9   :  { %v2013_v35 = vsel %vm2005_vm14, %v2001_v42, %v2009_v20  ;;  %2014 = vst [vmem:[#allocation4 + $0x4] sm:$0xff] %v2010_v45  ;;  %2015 = vst [vmem:[#allocation4 + $0xc] sm:$0xff] %v2011_v3  ;;  %v13146_v47 = vpack.c.bf16 %v2011_v3, %v2010_v45  ;;  %v11224_v40 = vpack.c.bf16 %v7922_v39, %v7921_v38  ;;  %v7924_v42 = vld [vmem:[%s14743_s22 + $0xb8] sm:$0xff]  ;;  %v7926_v44 = vld [vmem:[%s14743_s22 + $0xc8] sm:$0xff] }
 0x6ca   :  { %2016 = vst [vmem:[#allocation4 + $0x14] sm:$0xff] %v13143_v46  ;;  %2017 = vst [vmem:[#allocation4 + $0x1c] sm:$0xff] %v2013_v35  ;;  %v11228_v43 = vpack.c.bf16 %v7924_v42, %v7923_v41  ;;  %v11232_v20 = vpack.c.bf16 %v7926_v44, %v7925_v31  ;;  %v7927_v45 = vld [vmem:[%s14743_s22 + $0xd0] sm:$0xff]  ;;  %v7928_v3 = vld [vmem:[%s14743_s22 + $0xd8] sm:$0xff] }
 0x6cb   :  { %v11236_v35 = vpack.c.bf16 %v7928_v3, %v7927_v45  ;;  %v2122_v38 = vld [vmem:[%s14743_s22 + $0x60] sm:$0xff]  ;;  %v2123_v39 = vld [vmem:[%s14743_s22 + $0x68] sm:$0xff]  ;;  %v2124_v41 = vld [vmem:[%s14743_s22 + $0x70] sm:$0xff] }
 0x6cc   :  { %v2125_v42 = vld [vmem:[%s14743_s22 + $0x78] sm:$0xff]  ;;  %v7936_v44 = vld [vmem:[%s14743_s22 + $0x100] sm:$0xff] }
 0x6d0   :  { %v2018_v49 = vld [vmem:[#allocation4] sm:$0xff]  ;;  %v2019_v55 = vld [vmem:[#allocation4 + $0x8] sm:$0xff] }
 0x6d1   :  { %v2551_v60 = vld [vmem:[#allocation4 + $0x6] sm:$0xff]  ;;  %v11196_v61 = vpack.c.bf16 %v2019_v55, %v2018_v49  ;;  %v2552_v4 = vld [vmem:[#allocation4 + $0xe] sm:$0xff]  ;;  %v2021_v18 = vld [vmem:[#allocation4 + $0x18] sm:$0x3f] }
 0x6d2   :  { %v2020_v12 = vld [vmem:[#allocation4 + $0x10] sm:$0xff]  ;;  %v11322_v27 = vpack.c.bf16 %v2552_v4, %v2551_v60  ;;  %v2554_v22 = vld [vmem:[#allocation4 + $0x1e] sm:$0x3f]  ;;  %v7932_v4 = vld [vmem:[%s14743_s22 + $0xf8] sm:$0xff] }
 0x6d3   :  { %v2553_v23 = vld [vmem:[#allocation4 + $0x16] sm:$0xff]  ;;  %11197 = vmatprep.subr.bf16.mxu0 %v11196_v61  ;;  %v11200_v53 = vpack.c.bf16 %v2021_v18, %v2020_v12  ;;  %v2126_v54 = vld [vmem:[#allocation4 + $0x2] sm:$0xff]  ;;  %v2127_v33 = vld [vmem:[#allocation4 + $0xa] sm:$0xff]  ;;  %v11364_v0 = vpack.c.bf16 %v2020_v12, %v2019_v55 }
 0x6d4   :  { %11323 = vmatprep.subr.bf16.mxu1 %v11322_v27  ;;  %11199 = vmatpush3.bf16.msra.mxu0 %v11196_v61  ;;  %v11326_v63 = vpack.c.bf16 %v2554_v22, %v2553_v23  ;;  %v11206_v32 = vpack.c.bf16 %v2127_v33, %v2126_v54  ;;  %v2128_v51 = vld [vmem:[#allocation4 + $0x12] sm:$0xff]  ;;  %v2129_v13 = vld [vmem:[#allocation4 + $0x1a] sm:$0x3f]  ;;  %v2730_v57 = vld [vmem:[#allocation4 + $0x20] sm:$0x3f] }
 0x6d5   :  { %11325 = vmatpush3.bf16.msra.mxu1 %v11322_v27  ;;  %11202 = vmatprep.subr.msk.bf16.mxu0 %vm13148_vm15, %v11200_v53  ;;  %v2729_v14 = vld [vmem:[#allocation4 + $0x18] sm:$0xff]  ;;  %v11210_v34 = vpack.c.bf16 %v2129_v13, %v2128_v51  ;;  %v7929_v49 = vld [vmem:[%s14743_s22 + $0xe0] sm:$0xff]  ;;  %v7931_v60 = vld [vmem:[%s14743_s22 + $0xf0] sm:$0xff] }
 0x6d6   :  { %11328 = vmatprep.subr.msk.bf16.mxu1 %vm13148_vm15, %v11326_v63  ;;  %v11368_v50 = vpack.c.bf16 %v2730_v57, %v2729_v14  ;;  %v7930_v55 = vld [vmem:[%s14743_s22 + $0xe8] sm:$0xff]  ;;  %v11244_v12 = vpack.c.bf16 %v7932_v4, %v7931_v60  ;;  %v2110_v18 = vld [vmem:[%s14743_s22] sm:$0xff]  ;;  %v2113_v54 = vld [vmem:[%s14743_s22 + $0x18] sm:$0xff] }
 0x6d7   :  { %v11240_v61 = vpack.c.bf16 %v7930_v55, %v7929_v49  ;;  %v2111_v27 = vld [vmem:[%s14743_s22 + $0x8] sm:$0xff]  ;;  %v2114_v51 = vld [vmem:[%s14743_s22 + $0x20] sm:$0xff]  ;;  %v2116_v57 = vld [vmem:[%s14743_s22 + $0x30] sm:$0xff] }
 0x6d8   :  { %11205 = vmatpush3.bf16.msk.msra.mxu0 %vm13148_vm15, %v11200_v53  ;;  %v11248_v23 = vpack.c.bf16 %v2111_v27, %v2110_v18  ;;  %v2115_v13 = vld [vmem:[%s14743_s22 + $0x28] sm:$0xff]  ;;  %v11260_v24 = vpack.c.bf16 %v2117_v62, %v2116_v57  ;;  %v7939_v49 = vld [vmem:[%s14743_s22 + $0x118] sm:$0xff]  ;;  %v7942_v60 = vld [vmem:[%s14743_s22 + $0x130] sm:$0xff] }
 0x6d9   :  { %11331 = vmatpush3.bf16.msk.msra.mxu1 %vm13148_vm15, %v11326_v63  ;;  %11207 = vmatprep.subr.bf16.mxu0 %v11206_v32  ;;  %v2112_v63 = vld [vmem:[%s14743_s22 + $0x10] sm:$0xff]  ;;  %v11256_v14 = vpack.c.bf16 %v2115_v13, %v2114_v51  ;;  %v7955_v51 = vld [vmem:[%s14743_s22 + $0x180] sm:$0xff]  ;;  %v7956_v13 = vld [vmem:[%s14743_s22 + $0x188] sm:$0xff] }
 0x6da   :  { %11365 = vmatprep.subr.bf16.mxu1 %v11364_v0  ;;  %v2378_v31 = vld [vmem:[#allocation4 + $0x1c] sm:$0x3f] }
 0x6db   :  { %9616 = vmatmul.mubr.msk.f32.vlgmr.msra.gmra.mrb[12].mxu0 %vm2024_vm9, %v13161_v8  ;;  %v11284_v45 = vpack.c.bf16 %v2378_v31, %v13143_v46  ;;  %v7946_v27 = vld [vmem:[%s14743_s22 + $0x150] sm:$0xff]  ;;  %v7959_v31 = vld [vmem:[%s14743_s22 + $0x1a0] sm:$0xff] }
 0x6dc   :  { %11209 = vmatpush3.bf16.msra.mxu0 %v11206_v32  ;;  %9754 = vmatmul.mubr.msk.f32.vlgmr.msra.gmra.mrb[12].mxu1 %vm2024_vm9, %v13161_v8 }
 0x6dd   :  { %11367 = vmatpush3.bf16.msra.mxu1 %v11364_v0  ;;  %11212 = vmatprep.subr.msk.bf16.mxu0 %vm13148_vm15, %v11210_v34  ;;  %v11252_v0 = vpack.c.bf16 %v2113_v54, %v2112_v63  ;;  %v7949_v63 = vld [vmem:[%s14743_s22 + $0x168] sm:$0xff] }
 0x6de   :  { %11370 = vmatprep.subr.msk.bf16.mxu1 %vm13148_vm15, %v11368_v50  ;;  %9626 = vmatprep.mubr.msk.f32.mxu0 %vm2024_vm9, %v13131_v19 }
 0x6df   :  { %9799 = vmatprep.mubr.msk.f32.mxu1 %vm2024_vm9, %v13131_v19 }
 0x6e0   :  { %11215 = vmatpush3.bf16.msk.msra.mxu0 %vm13148_vm15, %v11210_v34  ;;  %v2118_v34 = vld [vmem:[%s14743_s22 + $0x40] sm:$0xff] }
 0x6e1   :  { %11373 = vmatpush3.bf16.msk.msra.mxu1 %vm13148_vm15, %v11368_v50  ;;  %11217 = vmatprep.subr.bf16.mxu0 %v11216_v29  ;;  %v2119_v50 = vld [vmem:[%s14743_s22 + $0x48] sm:$0xff] }
 0x6e2   :  { %11406 = vmatprep.subr.bf16.mxu1 %v12273_v2 }
 0x6e3   :  { %9627 = vmatmul.mubr.msk.f32.vlgmr.msra.gmra.mrb[14].mxu0 %vm2024_vm9, %v13161_v8 }
 0x6e4   :  { %11219 = vmatpush3.bf16.msra.mxu0 %v11216_v29  ;;  %9800 = vmatmul.mubr.msk.f32.vlgmr.msra.gmra.mrb[14].mxu1 %vm2024_vm9, %v13161_v8  ;;  %v11264_v29 = vpack.c.bf16 %v2119_v50, %v2118_v34  ;;  %v2903_v50 = vand.u32 15, %v12468_v16 }
 0x6e5   :  { %11221 = vmatprep.subr.bf16.mxu0 %v11220_v37  ;;  %9869 = vmatprep.mubr.msk.f32.mxu1 %vm12275_vm5, %v12272_v1 }
 0x6e6   :  { %vm2919_vm2 = vcmp.eq.s32.totalorder %v2903_v50, %v12485_v28 }
 0x6e8   :  { %11223 = vmatpush3.bf16.msra.mxu0 %v11220_v37  ;;  %v11268_v37 = vpack.c.bf16 %v2121_v36, %v2120_v9  ;;  %v2905_v9 = vand.u32 15, %v12480_v25  ;;  %v2906_v36 = vand.u32 15, %v12483_v26 }
 0x6e9   :  { %11225 = vmatprep.subr.bf16.mxu0 %v11224_v40 }
 0x6ea   :  { %vm2921_vm10 = vcmp.eq.s32.totalorder %v2905_v9, %v12485_v28  ;;  %vm2922_vm1 = vcmp.eq.s32.totalorder %v2906_v36, %v12485_v28  ;;  %v7985_v9 = vld [vmem:[%s14743_s22 + $0x258] sm:$0xff] }
 0x6ec   :  { %11227 = vmatpush3.bf16.msra.mxu0 %v11224_v40  ;;  %v11272_v40 = vpack.c.bf16 %v2123_v39, %v2122_v38  ;;  %v7957_v39 = vld [vmem:[%s14743_s22 + $0x190] sm:$0xff] }
 0x6ed   :  { %11229 = vmatprep.subr.bf16.mxu0 %v11228_v43 }
 0x6f0   :  { %11231 = vmatpush3.bf16.msra.mxu0 %v11228_v43  ;;  %v11276_v43 = vpack.c.bf16 %v2125_v42, %v2124_v41 }
 0x6f1   :  { %11233 = vmatprep.subr.bf16.mxu0 %v11232_v20 }
 0x6f4   :  { %11235 = vmatpush3.bf16.msra.mxu0 %v11232_v20  ;;  %v7937_v20 = vld [vmem:[%s14743_s22 + $0x108] sm:$0xff] }
 0x6f5   :  { %11237 = vmatprep.subr.bf16.mxu0 %v11236_v35  ;;  %v11290_v3 = vpack.c.bf16 %v7937_v20, %v7936_v44  ;;  %v7960_v44 = vld [vmem:[%s14743_s22 + $0x1a8] sm:$0xff] }
 0x6f6   :  { %v11340_v20 = vpack.c.bf16 %v7960_v44, %v7959_v31  ;;  %v2912_v44 = vand.u32 15, %v12593_v59  ;;  %v2915_v59 = vand.u32 15, %v12638_v10  ;;  %v2917_v10 = vand.u32 15, %v12661_v15 }
 0x6f8   :  { %11239 = vmatpush3.bf16.msra.mxu0 %v11236_v35  ;;  %v7938_v35 = vld [vmem:[%s14743_s22 + $0x110] sm:$0xff]  ;;  %vm2928_vm0 = vcmp.eq.s32.totalorder %v2912_v44, %v12485_v28 }
 0x6f9   :  { %11241 = vmatprep.subr.bf16.mxu0 %v11240_v61  ;;  %v11294_v46 = vpack.c.bf16 %v7939_v49, %v7938_v35  ;;  %v7963_v49 = vld [vmem:[%s14743_s22 + $0x1c0] sm:$0xff] }
 0x6fc   :  { %11243 = vmatpush3.bf16.msra.mxu0 %v11240_v61  ;;  %v7943_v61 = vld [vmem:[%s14743_s22 + $0x138] sm:$0xff] }
 0x6fd   :  { %11245 = vmatprep.subr.bf16.mxu0 %v11244_v12  ;;  %v11302_v4 = vpack.c.bf16 %v7943_v61, %v7942_v60  ;;  %v7967_v61 = vld [vmem:[%s14743_s22 + $0x1e0] sm:$0xff] }
 0x700   :  { %11247 = vmatpush3.bf16.msra.mxu0 %v11244_v12  ;;  %v7944_v12 = vld [vmem:[%s14743_s22 + $0x140] sm:$0xff] }
 0x701   :  { %11249 = vmatprep.subr.bf16.mxu0 %v11248_v23 }
 0x7ae   :  { %v9617_v22 = vpop.f32.mrb[12].mxu0 }
 0x7af   :  { %v2101_v53 = vpop.f32.mrb[13].mxu0  ;;  %v13349_v57 = vpop.f32.mrb[12].mxu1 }
 0x7b0   :  { %v2624_v62 = vpop.f32.mrb[13].mxu1 }
 0x7b6   :  { %v9628_v33 = vpop.f32.mrb[14].mxu0 }
 0x7b7   :  { %v2199_v32 = vpop.f32.mrb[15].mxu0 }
 0x7b8   :  { %9661 = vmatprep.mubr.f32.mxu0 %v2199_v32  ;;  %v7951_v32 = vld [vmem:[%s14743_s22 + $0x178] sm:$0xff] }
 0x7b9   :  { %9662 = vmatmul.mubr.f32.vlgmr.msra.gmra.mrb[16].mxu0 %v9628_v33  ;;  %v7950_v33 = vld [vmem:[%s14743_s22 + $0x170] sm:$0xff] }
 0x7ba   :  { %11251 = vmatpush3.bf16.msra.mxu0 %v11248_v23  ;;  %9696 = vmatprep.mubr.f32.mxu0 %v2101_v53  ;;  %v7947_v23 = vld [vmem:[%s14743_s22 + $0x158] sm:$0xff]  ;;  %v7948_v53 = vld [vmem:[%s14743_s22 + $0x160] sm:$0xff] }
 0x7bb   :  { %11253 = vmatprep.subr.bf16.mxu0 %v11252_v0  ;;  %v11314_v54 = vpack.c.bf16 %v7949_v63, %v7948_v53  ;;  %v7976_v63 = vld [vmem:[%s14743_s22 + $0x210] sm:$0xff] }
 0x7be   :  { %11255 = vmatpush3.bf16.msra.mxu0 %v11252_v0  ;;  %v11318_v0 = vpack.c.bf16 %v7951_v32, %v7950_v33  ;;  %v7978_v32 = vld [vmem:[%s14743_s22 + $0x220] sm:$0xff] }
 0x7bf   :  { %11257 = vmatprep.subr.bf16.mxu0 %v11256_v14 }
 0x7c2   :  { %11259 = vmatpush3.bf16.msra.mxu0 %v11256_v14  ;;  %v11332_v14 = vpack.c.bf16 %v7956_v13, %v7955_v51  ;;  %v7980_v13 = vld [vmem:[%s14743_s22 + $0x230] sm:$0xff] }
 0x7c3   :  { %11261 = vmatprep.subr.bf16.mxu0 %v11260_v24 }
 0x7c6   :  { %11263 = vmatpush3.bf16.msra.mxu0 %v11260_v24  ;;  %v13351_v24 = vpop.f32.mrb[14].mxu1 }
 0x7c7   :  { %11265 = vmatprep.subr.bf16.mxu0 %v11264_v29  ;;  %v13353_v34 = vpop.f32.mrb[15].mxu1 }
 0x7ca   :  { %11267 = vmatpush3.bf16.msra.mxu0 %v11264_v29  ;;  %v2904_v29 = vand.u32 15, %v12476_v21 }
 0x7cb   :  { %11269 = vmatprep.subr.bf16.mxu0 %v11268_v37 }
 0x7cc   :  { %vm2920_vm7 = vcmp.eq.s32.totalorder %v2904_v29, %v12485_v28  ;;  %v7984_v29 = vld [vmem:[%s14743_s22 + $0x250] sm:$0xff] }
 0x7cd   :  { %vm13363_vm6 = vmpackc.low %vm2920_vm7, %vm2919_vm2  ;;  %v11394_v36 = vpack.c.bf16 %v7985_v9, %v7984_v29  ;;  %vm2931_vm2 = vcmp.eq.s32.totalorder %v2915_v59, %v12485_v28  ;;  %v3117_v9 = vld [vmem:[%s14685_s12] sm:$0x1]  ;;  %v3316_v59 = vld [vmem:[#allocation14 + $0xa0] sm:$0xff] }
 0x7ce   :  { %11271 = vmatpush3.bf16.msra.mxu0 %v11268_v37  ;;  %11408 = vmatpush3.bf16.msk.msra.mxu1 %vm13363_vm6, %v12274_v52 }
 0x7cf   :  { %11273 = vmatprep.subr.bf16.mxu0 %v11272_v40  ;;  %11409 = vmatprep.subr.bf16.mxu1 %v12273_v2 }
 0x7d2   :  { %11275 = vmatpush3.bf16.msra.mxu0 %v11272_v40  ;;  %v7958_v40 = vld [vmem:[%s14743_s22 + $0x198] sm:$0xff] }
 0x7d3   :  { %11277 = vmatprep.subr.bf16.mxu0 %v11276_v43 }
 0x7d6   :  { %11279 = vmatpush3.bf16.msra.mxu0 %v11276_v43  ;;  %v11336_v43 = vpack.c.bf16 %v7958_v40, %v7957_v39  ;;  %v7986_v39 = vld [vmem:[%s14743_s22 + $0x260] sm:$0xff]  ;;  %v7987_v40 = vld [vmem:[%s14743_s22 + $0x268] sm:$0xff] }
 0x7d7   :  { %11281 = vmatprep.subr.bf16.mxu0 %v13146_v47 }
 0x7d9   :  { %9697 = vmatmul.mubr.f32.vlgmr.msra.gmra.mrb[16].mxu0 %v9617_v22  ;;  %v11310_v22 = vpack.c.bf16 %v7947_v23, %v7946_v27  ;;  %v7974_v23 = vld [vmem:[%s14743_s22 + $0x200] sm:$0xff] }
 0x7da   :  { %11283 = vmatpush3.bf16.msra.mxu0 %v13146_v47  ;;  %9707 = vmatprep.mubr.msk.f32.mxu0 %vm2024_vm9, %v13131_v19  ;;  %v7940_v19 = vld [vmem:[%s14743_s22 + $0x120] sm:$0xff]  ;;  %v7941_v47 = vld [vmem:[%s14743_s22 + $0x128] sm:$0xff] }
 0x7db   :  { %11286 = vmatprep.subr.msk.bf16.mxu0 %vm13148_vm15, %v11284_v45  ;;  %v11298_v55 = vpack.c.bf16 %v7941_v47, %v7940_v19  ;;  %v7965_v47 = vld [vmem:[%s14743_s22 + $0x1d0] sm:$0xff] }
 0x7de   :  { %11289 = vmatpush3.bf16.msk.msra.mxu0 %vm13148_vm15, %v11284_v45  ;;  %v7961_v45 = vld [vmem:[%s14743_s22 + $0x1b0] sm:$0xff] }
 0x7df   :  { %11291 = vmatprep.subr.bf16.mxu0 %v11290_v3 }
 0x7e1   :  { %9708 = vmatmul.mubr.msk.f32.vlgmr.msra.gmra.mrb[18].mxu0 %vm2024_vm9, %v13161_v8  ;;  %v7945_v8 = vld [vmem:[%s14743_s22 + $0x148] sm:$0xff]  ;;  %vm13371_vm9 = vmpackc.low %vm2922_vm1, %vm2921_vm10  ;;  %vm2933_vm1 = vcmp.eq.s32.totalorder %v2917_v10, %v12485_v28 }
 0x7e2   :  { %11293 = vmatpush3.bf16.msra.mxu0 %v11290_v3  ;;  %v11306_v18 = vpack.c.bf16 %v7945_v8, %v7944_v12  ;;  %11411 = vmatpush3.bf16.msk.msra.mxu1 %vm13371_vm9, %v12274_v52  ;;  %v7962_v3 = vld [vmem:[%s14743_s22 + $0x1b8] sm:$0xff]  ;;  %v7969_v8 = vld [vmem:[%s14743_s22 + $0x1f0] sm:$0xff] }
 0x7e3   :  { %11295 = vmatprep.subr.bf16.mxu0 %v11294_v46  ;;  %11412 = vmatprep.subr.bf16.mxu1 %v12273_v2  ;;  %v11344_v35 = vpack.c.bf16 %v7962_v3, %v7961_v45  ;;  %v2913_v45 = vand.u32 15, %v12616_v5  ;;  %v2914_v3 = vand.u32 15, %v12619_v6  ;;  %v2916_v5 = vand.u32 15, %v12641_v11 }
 0x7e4   :  { %v2918_v11 = vand.u32 15, %v12664_v17 }
 0x7e5   :  { %vm2929_vm14 = vcmp.eq.s32.totalorder %v2913_v45, %v12485_v28  ;;  %vm2930_vm3 = vcmp.eq.s32.totalorder %v2914_v3, %v12485_v28  ;;  %vm2932_vm7 = vcmp.eq.s32.totalorder %v2916_v5, %v12485_v28  ;;  %v3317_v5 = vld [vmem:[#allocation14 + $0xa8] sm:$0xff] }
 0x7e6   :  { %11297 = vmatpush3.bf16.msra.mxu0 %v11294_v46  ;;  %11414 = vmatpush3.bf16.msk.msra.mxu1 %vm12528_vm12, %v12274_v52  ;;  %v7964_v46 = vld [vmem:[%s14743_s22 + $0x1c8] sm:$0xff]  ;;  %vm13519_vm11 = vmpackc.low %vm2930_vm3, %vm2929_vm14  ;;  %v11468_v10 = vpack.c.bf16 %v3317_v5, %v3316_v59  ;;  %v3300_v59 = vld [vmem:[#allocation14 + $0x38] sm:$0xff] }
 0x7e7   :  { %11299 = vmatprep.subr.bf16.mxu0 %v11298_v55  ;;  %11415 = vmatprep.subr.bf16.mxu1 %v12273_v2  ;;  %v11348_v19 = vpack.c.bf16 %v7964_v46, %v7963_v49  ;;  %vm13535_vm10 = vmpackc.low %vm2932_vm7, %vm2931_vm2  ;;  %vm3124_vm7 = vcmask 130048  }
 0x7ea   :  { %11301 = vmatpush3.bf16.msra.mxu0 %v11298_v55  ;;  %11417 = vmatpush3.bf16.msk.msra.mxu1 %vm12629_vm8, %v12274_v52  ;;  %v7966_v55 = vld [vmem:[%s14743_s22 + $0x1d8] sm:$0xff] }
 0x7eb   :  { %11303 = vmatprep.subr.bf16.mxu0 %v11302_v4  ;;  %11418 = vmatprep.subr.bf16.mxu1 %v12273_v2  ;;  %v11352_v60 = vpack.c.bf16 %v7966_v55, %v7965_v47 }
 0x7ee   :  { %11305 = vmatpush3.bf16.msra.mxu0 %v11302_v4  ;;  %v7968_v4 = vld [vmem:[%s14743_s22 + $0x1e8] sm:$0xff] }
 0x7ef   :  { %11307 = vmatprep.subr.bf16.mxu0 %v11306_v18  ;;  %v11356_v12 = vpack.c.bf16 %v7968_v4, %v7967_v61 }
 0x7f2   :  { %11309 = vmatpush3.bf16.msra.mxu0 %v11306_v18  ;;  %v7970_v18 = vld [vmem:[%s14743_s22 + $0x1f8] sm:$0xff] }
 0x7f3   :  { %11311 = vmatprep.subr.bf16.mxu0 %v11310_v22  ;;  %v11360_v27 = vpack.c.bf16 %v7970_v18, %v7969_v8 }
 0x7f6   :  { %11313 = vmatpush3.bf16.msra.mxu0 %v11310_v22  ;;  %v7975_v22 = vld [vmem:[%s14743_s22 + $0x208] sm:$0xff] }
 0x7f7   :  { %11315 = vmatprep.subr.bf16.mxu0 %v11314_v54  ;;  %v11374_v53 = vpack.c.bf16 %v7975_v22, %v7974_v23 }
 0x7fa   :  { %11317 = vmatpush3.bf16.msra.mxu0 %v11314_v54  ;;  %v7977_v54 = vld [vmem:[%s14743_s22 + $0x218] sm:$0xff] }
 0x7fb   :  { %11319 = vmatprep.subr.bf16.mxu0 %v11318_v0  ;;  %v11378_v33 = vpack.c.bf16 %v7977_v54, %v7976_v63  ;;  %v2951_v54 = vand.u32 15, %v12485_v28 }
 0x7fd   :  { %vm2952_vm14 = vcmp.eq.s32.totalorder %v2951_v54, %v12468_v16  ;;  %vm2953_vm3 = vcmp.eq.s32.totalorder %v2951_v54, %v12476_v21 }
 0x7fe   :  { %11321 = vmatpush3.bf16.msra.mxu0 %v11318_v0  ;;  %v7979_v0 = vld [vmem:[%s14743_s22 + $0x228] sm:$0xff]  ;;  %vm13612_vm2 = vmpackc.low %vm2953_vm3, %vm2952_vm14 }
 0x7ff   :  { %11333 = vmatprep.subr.bf16.mxu0 %v11332_v14  ;;  %v11382_v51 = vpack.c.bf16 %v7979_v0, %v7978_v32 }
 0x8b4   :  { %v9709_v41 = vpop.f32.mrb[18].mxu0 }
 0x8b5   :  { %v2448_v42 = vpop.f32.mrb[19].mxu0 }
 0x8b6   :  { %9742 = vmatprep.mubr.f32.mxu0 %v2448_v42  ;;  %v7988_v42 = vld [vmem:[%s14743_s22 + $0x270] sm:$0xff] }
 0x8b7   :  { %9743 = vmatmul.mubr.f32.vlgmr.msra.gmra.mrb[16].mxu0 %v9709_v41  ;;  %v11398_v41 = vpack.c.bf16 %v7987_v40, %v7986_v39  ;;  %v3313_v39 = vld [vmem:[#allocation14 + $0x88] sm:$0xff] }
 0x8b8   :  { %11335 = vmatpush3.bf16.msra.mxu0 %v11332_v14  ;;  %9788 = vmatprep.mubr.f32.mxu0 %v2624_v62  ;;  %v7981_v14 = vld [vmem:[%s14743_s22 + $0x238] sm:$0xff] }
 0x8b9   :  { %11337 = vmatprep.subr.bf16.mxu0 %v11336_v43  ;;  %v11386_v62 = vpack.c.bf16 %v7981_v14, %v7980_v13 }
 0x8bc   :  { %11339 = vmatpush3.bf16.msra.mxu0 %v11336_v43  ;;  %v7989_v43 = vld [vmem:[%s14743_s22 + $0x278] sm:$0xff] }
 0x8bd   :  { %11341 = vmatprep.subr.bf16.mxu0 %v11340_v20  ;;  %v11402_v31 = vpack.c.bf16 %v7989_v43, %v7988_v42  ;;  %v3118_v43 = vld [vmem:[%s14685_s12 + $0x1] sm:$0x1] }
 0x8c0   :  { %11343 = vmatpush3.bf16.msra.mxu0 %v11340_v20 }
 0x8c1   :  { %11345 = vmatprep.subr.bf16.mxu0 %v11344_v35 }
 0x8c4   :  { %11347 = vmatpush3.bf16.msra.mxu0 %v11344_v35 }
 0x8c5   :  { %11349 = vmatprep.subr.bf16.mxu0 %v11348_v19 }
 0x8c8   :  { %11351 = vmatpush3.bf16.msra.mxu0 %v11348_v19 }
 0x8c9   :  { %11353 = vmatprep.subr.bf16.mxu0 %v11352_v60 }
 0x8cc   :  { %11355 = vmatpush3.bf16.msra.mxu0 %v11352_v60 }
 0x8cd   :  { %11357 = vmatprep.subr.bf16.mxu0 %v11356_v12 }
 0x8d0   :  { %11359 = vmatpush3.bf16.msra.mxu0 %v11356_v12 }
 0x8d1   :  { %11361 = vmatprep.subr.bf16.mxu0 %v11360_v27 }
 0x8d4   :  { %11363 = vmatpush3.bf16.msra.mxu0 %v11360_v27 }
 0x8d5   :  { %11375 = vmatprep.subr.bf16.mxu0 %v11374_v53 }
 0x8d7   :  { %9789 = vmatmul.mubr.f32.vlgmr.msra.gmra.mrb[16].mxu0 %v13349_v57  ;;  %v7982_v57 = vld [vmem:[%s14743_s22 + $0x240] sm:$0xff] }
 0x8d8   :  { %11377 = vmatpush3.bf16.msra.mxu0 %v11374_v53  ;;  %9834 = vmatprep.mubr.f32.mxu0 %v13353_v34  ;;  %v7983_v34 = vld [vmem:[%s14743_s22 + $0x248] sm:$0xff] }
 0x8d9   :  { %11379 = vmatprep.subr.bf16.mxu0 %v11378_v33  ;;  %v11390_v50 = vpack.c.bf16 %v7983_v34, %v7982_v57 }
 0x8dc   :  { %11381 = vmatpush3.bf16.msra.mxu0 %v11378_v33  ;;  %v8193_v33 = vld [vmem:[%s14680_s7 + $0x40] sm:$0xff] }
 0x8dd   :  { %11383 = vmatprep.subr.bf16.mxu0 %v11382_v51 }
 0x8e0   :  { %11385 = vmatpush3.bf16.msra.mxu0 %v11382_v51 }
 0x8e1   :  { %11387 = vmatprep.subr.bf16.mxu0 %v11386_v62 }
 0x8e4   :  { %11389 = vmatpush3.bf16.msra.mxu0 %v11386_v62 }
 0x8e5   :  { %11391 = vmatprep.subr.bf16.mxu0 %v11390_v50 }
 0x8e8   :  { %11393 = vmatpush3.bf16.msra.mxu0 %v11390_v50 }
 0x8e9   :  { %11395 = vmatprep.subr.bf16.mxu0 %v11394_v36 }
 0x8ec   :  { %11397 = vmatpush3.bf16.msra.mxu0 %v11394_v36  ;;  %v3312_v36 = vld [vmem:[#allocation14 + $0x80] sm:$0xff] }
 0x8ed   :  { %11399 = vmatprep.subr.bf16.mxu0 %v11398_v41  ;;  %v11460_v42 = vpack.c.bf16 %v3313_v39, %v3312_v36 }
 0x8f0   :  { %11401 = vmatpush3.bf16.msra.mxu0 %v11398_v41 }
 0x8f1   :  { %11403 = vmatprep.subr.bf16.mxu0 %v11402_v31 }
 0x8f4   :  { %11405 = vmatpush3.bf16.msra.mxu0 %v11402_v31  ;;  %v3314_v31 = vld [vmem:[#allocation14 + $0x90] sm:$0xff] }
 0x8f5   :  { %11620 = vmatprep.subr.bf16.mxu0 %v12273_v2 }
 0x8f7   :  { %9835 = vmatmul.mubr.f32.vlgmr.msra.gmra.mrb[16].mxu0 %v13351_v24  ;;  %v2911_v24 = vand.u32 15, %v12590_v58 }
 0x8f8   :  { %11622 = vmatpush3.bf16.msk.msra.mxu0 %vm13363_vm6, %v12274_v52  ;;  %10128 = vmatprep.mubr.msk.f32.mxu0 %vm12275_vm5, %v12272_v1 }
 0x8f9   :  { %11623 = vmatprep.subr.bf16.mxu0 %v12273_v2  ;;  %vm2927_vm13 = vcmp.eq.s32.totalorder %v2911_v24, %v12485_v28  ;;  %v3315_v24 = vld [vmem:[#allocation14 + $0x98] sm:$0xff] }
 0x8fa   :  { %vm13503_vm4 = vmpackc.low %vm2928_vm0, %vm2927_vm13  ;;  %vm2934_vm13 = vcmp.eq.s32.totalorder %v2918_v11, %v12485_v28  ;;  %v11464_v3 = vpack.c.bf16 %v3315_v24, %v3314_v31  ;;  %v3318_v11 = vld [vmem:[#allocation14 + $0xb0] sm:$0xff]  ;;  %v3297_v31 = vld [vmem:[#allocation14 + $0x20] sm:$0xff] }
 0x8fb   :  { %11420 = vmatpush3.bf16.msk.msra.mxu1 %vm13503_vm4, %v12274_v52  ;;  %vm13551_vm0 = vmpackc.low %vm2934_vm13, %vm2933_vm1  ;;  %v3298_v24 = vld [vmem:[#allocation14 + $0x28] sm:$0xff] }
 0x8fc   :  { %11625 = vmatpush3.bf16.msk.msra.mxu0 %vm13371_vm9, %v12274_v52  ;;  %11421 = vmatprep.subr.bf16.mxu1 %v12273_v2 }
 0x8fd   :  { %11626 = vmatprep.subr.bf16.mxu0 %v12273_v2 }
 0x8ff   :  { %11423 = vmatpush3.bf16.msk.msra.mxu1 %vm13519_vm11, %v12274_v52 }
 0x900   :  { %11628 = vmatpush3.bf16.msk.msra.mxu0 %vm12528_vm12, %v12274_v52  ;;  %11424 = vmatprep.subr.bf16.mxu1 %v12273_v2 }
 0x901   :  { %11629 = vmatprep.subr.bf16.mxu0 %v12273_v2 }
 0x903   :  { %11426 = vmatpush3.bf16.msk.msra.mxu1 %vm13535_vm10, %v12274_v52 }
 0x904   :  { %11631 = vmatpush3.bf16.msk.msra.mxu0 %vm12629_vm8, %v12274_v52  ;;  %11427 = vmatprep.subr.bf16.mxu1 %v12273_v2 }
 0x905   :  { %11632 = vmatprep.subr.bf16.mxu0 %v12273_v2 }
 0x907   :  { %11429 = vmatpush3.bf16.msk.msra.mxu1 %vm13551_vm0, %v12274_v52 }
 0x908   :  { %11634 = vmatpush3.bf16.msk.msra.mxu0 %vm13503_vm4, %v12274_v52  ;;  %11430 = vmatprep.subr.bf16.mxu1 %v12273_v2 }
 0x909   :  { %11635 = vmatprep.subr.bf16.mxu0 %v12273_v2 }
 0x90c   :  { %11637 = vmatpush3.bf16.msk.msra.mxu0 %vm13519_vm11, %v12274_v52 }
 0x90d   :  { %11638 = vmatprep.subr.bf16.mxu0 %v12273_v2 }
 0x910   :  { %11640 = vmatpush3.bf16.msk.msra.mxu0 %vm13535_vm10, %v12274_v52 }
 0x911   :  { %11641 = vmatprep.subr.bf16.mxu0 %v12273_v2 }
 0x914   :  { %11643 = vmatpush3.bf16.msk.msra.mxu0 %vm13551_vm0, %v12274_v52 }
 0x915   :  { %11644 = vmatprep.subr.bf16.mxu0 %v12273_v2 }
 0x9ca   :  { %v13563_v15 = vpop.f32.mrb[16].mxu0 }
 0x9cb   :  { %v3034_v17 = vmul.f32 %v13563_v15, %v13563_v15  ;;  %v13567_v49 = vpop.f32.mrb[17].mxu0 }
 0x9cc   :  { %v2956_v46 = vadd.f32 %v13563_v15, %v13567_v49  ;;  %v3033_v19 = vmul.f32 %v13567_v49, %v13567_v49 }
 0x9ce   :  { %v2957_v47 = vrot.slane %v2956_v46, 4  ;;  %v3035_v55 = vadd.f32 %v3034_v17, %v3033_v19  ;;  %v3319_v17 = vld [vmem:[#allocation14 + $0xb8] sm:$0xff]  ;;  %v3320_v19 = vld [vmem:[#allocation14 + $0xc0] sm:$0xff] }
 0x9d0   :  { %v2958_v60 = vadd.f32 %v2957_v47, %v2956_v46  ;;  %v3036_v18 = vrot.slane %v3035_v55, 4  ;;  %v11472_v46 = vpack.c.bf16 %v3319_v17, %v3318_v11  ;;  %v3321_v47 = vld [vmem:[#allocation14 + $0xc8] sm:$0xff] }
 0x9d1   :  { %v3302_v11 = vld [vmem:[#allocation14 + $0x48] sm:$0xff] }
 0x9d2   :  { %v2959_v61 = vrot.slane %v2958_v60, 2  ;;  %v3037_v27 = vadd.f32 %v3036_v18, %v3035_v55  ;;  %v11476_v55 = vpack.c.bf16 %v3321_v47, %v3320_v19  ;;  %v3304_v19 = vld [vmem:[#allocation14 + $0x58] sm:$0xff] }
 0x9d4   :  { %v2960_v4 = vadd.f32 %v2959_v61, %v2958_v60  ;;  %v3038_v23 = vrot.slane %v3037_v27, 2  ;;  %v3322_v60 = vld [vmem:[#allocation14 + $0xd0] sm:$0xff]  ;;  %v3323_v61 = vld [vmem:[#allocation14 + $0xd8] sm:$0xff] }
 0x9d6   :  { %v2961_v12 = vrot.slane %v2960_v4, 1  ;;  %v3039_v22 = vadd.f32 %v3038_v23, %v3037_v27  ;;  %v3326_v27 = vld [vmem:[#allocation14 + $0xf0] sm:$0xff]  ;;  %v3327_v23 = vld [vmem:[#allocation14 + $0xf8] sm:$0xff] }
 0x9d8   :  { %v2962_v8 = vadd.f32 %v2961_v12, %v2960_v4  ;;  %v3040_v53 = vrot.slane %v3039_v22, 1  ;;  %v11480_v4 = vpack.c.bf16 %v3323_v61, %v3322_v60  ;;  %v3324_v12 = vld [vmem:[#allocation14 + $0xe0] sm:$0xff]  ;;  %v3306_v60 = vld [vmem:[#allocation14 + $0x68] sm:$0xff] }
 0x9da   :  { %9870 = vmatmul.mubr.f32.vlgmr.msra.gmra.mrb[16].mxu1 %v2962_v8  ;;  %v3041_v63 = vadd.f32 %v3040_v53, %v3039_v22  ;;  %v3325_v8 = vld [vmem:[#allocation14 + $0xe8] sm:$0xff]  ;;  %v11488_v22 = vpack.c.bf16 %v3327_v23, %v3326_v27  ;;  %v3293_v53 = vld [vmem:[#allocation14] sm:$0xff] }
 0x9db   :  { %11432 = vmatpush3.bf16.msk.msra.mxu1 %vm13363_vm6, %v12274_v52  ;;  %9904 = vmatprep.mubr.msk.f32.mxu1 %vm12275_vm5, %v12272_v1  ;;  %v11484_v18 = vpack.c.bf16 %v3325_v8, %v3324_v12  ;;  %v3308_v12 = vld [vmem:[#allocation14 + $0x78] sm:$0xff]  ;;  %v3482_v27 = vld [vmem:[#allocation14 + $0x108] sm:$0xff] }
 0x9dc   :  { %11433 = vmatprep.subr.bf16.mxu1 %v12273_v2 }
 0x9df   :  { %11435 = vmatpush3.bf16.msk.msra.mxu1 %vm13371_vm9, %v12274_v52 }
 0x9e0   :  { %11436 = vmatprep.subr.bf16.mxu1 %v12273_v2 }
 0x9e3   :  { %11438 = vmatpush3.bf16.msk.msra.mxu1 %vm12528_vm12, %v12274_v52 }
 0x9e4   :  { %11439 = vmatprep.subr.bf16.mxu1 %v12273_v2 }
 0x9e7   :  { %11441 = vmatpush3.bf16.msk.msra.mxu1 %vm12629_vm8, %v12274_v52 }
 0x9e8   :  { %11442 = vmatprep.subr.bf16.mxu1 %v12273_v2 }
 0x9eb   :  { %11444 = vmatpush3.bf16.msk.msra.mxu1 %vm13503_vm4, %v12274_v52 }
 0x9ec   :  { %11445 = vmatprep.subr.bf16.mxu1 %v12273_v2 }
 0x9ef   :  { %11447 = vmatpush3.bf16.msk.msra.mxu1 %vm13519_vm11, %v12274_v52 }
 0x9f0   :  { %11448 = vmatprep.subr.bf16.mxu1 %v12273_v2 }
 0x9f3   :  { %11450 = vmatpush3.bf16.msk.msra.mxu1 %vm13535_vm10, %v12274_v52 }
 0x9f4   :  { %11451 = vmatprep.subr.bf16.mxu1 %v12273_v2 }
 0x9f7   :  { %11453 = vmatpush3.bf16.msk.msra.mxu1 %vm13551_vm0, %v12274_v52 }
 0x9f8   :  { %11454 = vmatprep.subr.bf16.mxu1 %v12273_v2 }
 0x9fa   :  { %9905 = vmatmul.mubr.f32.vlgmr.msra.gmra.mrb[18].mxu1 %v3041_v63  ;;  %v3294_v63 = vld [vmem:[#allocation14 + $0x8] sm:$0xff] }
 0x9fb   :  { %9911 = vmatprep.mubr.msk.f32.mxu1 %vm12275_vm5, %v12272_v1  ;;  %11456 = vmatpush3.bf16.msk.msra.mxu1 %vm13612_vm2, %v12274_v52  ;;  %v11492_v54 = vpack.c.bf16 %v3294_v63, %v3293_v53  ;;  %v3484_v53 = vld [vmem:[#allocation14 + $0x118] sm:$0xff] }
 0x9fc   :  { %11457 = vmatprep.subr.bf16.mxu1 %v12273_v2 }
 0xaad   :  { %v3029_v32 = vpop.f32.mrb[16].mxu1 }
 0xaae   :  { %v9871_v0 = vpop.f32.mrb[17].mxu1  ;;  %v3112_v51 = vmul.f32 0.0078125, %v3029_v32 }
 0xab0   :  { %v3114_v14 = vmul.f32 %v3112_v51, %v3112_v51 }
 0xacd   :  { %v3108_v13 = vpop.f32.mrb[18].mxu1 }
 0xace   :  { %v3113_v62 = vmul.f32 0.0078125, %v3108_v13  ;;  %v9906_v57 = vpop.f32.mrb[19].mxu1 }
 0xad0   :  { %v3115_v34 = vsub.f32 %v3113_v62, %v3114_v14 }
 0xad2   :  { %v3116_v50 = vmax.f32 %v3115_v34, 0.0 }
 0xad4   :  { %v3119_v29 = vadd.f32 1e-05, %v3116_v50 }
 0xad6   :  { %12185 = vrsqrt.f32 %v3119_v29 }
 0xae0   :  { %v12186_v40 = vpop.eup %12185 }
 0xae1   :  { %v3121_v41 = vmul.f32 %v12186_v40, %v3117_v9 }
 0xae3   :  { %9912 = vmatmul.mubr.msk.f32.vlgmr.msra.gmra.mrb[20].mxu1 %vm3124_vm7, %v3121_v41  ;;  %v3122_v44 = vmul.f32 %v3121_v41, %v3112_v51  ;;  %v3295_v41 = vld [vmem:[#allocation14 + $0x10] sm:$0xff] }
 0xae4   :  { %11459 = vmatpush3.bf16.msk.msra.mxu1 %vm13612_vm2, %v12274_v52  ;;  %9918 = vmatprep.mubr.msk.f32.mxu1 %vm12275_vm5, %v12272_v1 }
 0xae5   :  { %v3123_v45 = vsub.f32 %v3118_v43, %v3122_v44  ;;  %11461 = vmatprep.subr.bf16.mxu1 %v11460_v42 }
 0xae7   :  { %9919 = vmatmul.mubr.msk.f32.vlgmr.msra.gmra.mrb[22].mxu1 %vm3124_vm7, %v3123_v45  ;;  %v11500_v45 = vpack.c.bf16 %v3298_v24, %v3297_v31  ;;  %v3577_v31 = vld [vmem:[#allocation14 + $0x180] sm:$0xff]  ;;  %v3578_v24 = vld [vmem:[#allocation14 + $0x188] sm:$0xff] }
 0xae8   :  { %11463 = vmatpush3.bf16.msra.mxu1 %v11460_v42 }
 0xae9   :  { %11465 = vmatprep.subr.bf16.mxu1 %v11464_v3 }
 0xaec   :  { %11467 = vmatpush3.bf16.msra.mxu1 %v11464_v3  ;;  %v3299_v3 = vld [vmem:[#allocation14 + $0x30] sm:$0xff] }
 0xaed   :  { %11469 = vmatprep.subr.bf16.mxu1 %v11468_v10  ;;  %v11504_v5 = vpack.c.bf16 %v3300_v59, %v3299_v3  ;;  %v3580_v3 = vld [vmem:[#allocation14 + $0x198] sm:$0xff] }
 0xaf0   :  { %11471 = vmatpush3.bf16.msra.mxu1 %v11468_v10  ;;  %v3301_v10 = vld [vmem:[#allocation14 + $0x40] sm:$0xff] }
 0xaf1   :  { %11473 = vmatprep.subr.bf16.mxu1 %v11472_v46  ;;  %v11508_v17 = vpack.c.bf16 %v3302_v11, %v3301_v10  ;;  %v3582_v10 = vld [vmem:[#allocation14 + $0x1a8] sm:$0xff] }
 0xaf4   :  { %11475 = vmatpush3.bf16.msra.mxu1 %v11472_v46  ;;  %v3303_v46 = vld [vmem:[#allocation14 + $0x50] sm:$0xff] }
 0xaf5   :  { %11477 = vmatprep.subr.bf16.mxu1 %v11476_v55  ;;  %v11512_v47 = vpack.c.bf16 %v3304_v19, %v3303_v46  ;;  %v3583_v46 = vld [vmem:[#allocation14 + $0x1b0] sm:$0xff]  ;;  %v3584_v19 = vld [vmem:[#allocation14 + $0x1b8] sm:$0xff] }
 0xaf8   :  { %11479 = vmatpush3.bf16.msra.mxu1 %v11476_v55  ;;  %v3305_v55 = vld [vmem:[#allocation14 + $0x60] sm:$0xff] }
 0xaf9   :  { %11481 = vmatprep.subr.bf16.mxu1 %v11480_v4  ;;  %v11516_v61 = vpack.c.bf16 %v3306_v60, %v3305_v55  ;;  %v3585_v55 = vld [vmem:[#allocation14 + $0x1c0] sm:$0xff]  ;;  %v3586_v60 = vld [vmem:[#allocation14 + $0x1c8] sm:$0xff] }
 0xafc   :  { %11483 = vmatpush3.bf16.msra.mxu1 %v11480_v4  ;;  %v3307_v4 = vld [vmem:[#allocation14 + $0x70] sm:$0xff] }
 0xafd   :  { %11485 = vmatprep.subr.bf16.mxu1 %v11484_v18  ;;  %v11520_v8 = vpack.c.bf16 %v3308_v12, %v3307_v4  ;;  %v3587_v4 = vld [vmem:[#allocation14 + $0x1d0] sm:$0xff]  ;;  %v3588_v12 = vld [vmem:[#allocation14 + $0x1d8] sm:$0xff] }
 0xb00   :  { %11487 = vmatpush3.bf16.msra.mxu1 %v11484_v18  ;;  %v3481_v18 = vld [vmem:[#allocation14 + $0x100] sm:$0xff] }
 0xb01   :  { %11489 = vmatprep.subr.bf16.mxu1 %v11488_v22  ;;  %v11524_v23 = vpack.c.bf16 %v3482_v27, %v3481_v18  ;;  %v3590_v18 = vld [vmem:[#allocation14 + $0x1e8] sm:$0xff] }
 0xb04   :  { %11491 = vmatpush3.bf16.msra.mxu1 %v11488_v22  ;;  %v3483_v22 = vld [vmem:[#allocation14 + $0x110] sm:$0xff] }
 0xb05   :  { %11493 = vmatprep.subr.bf16.mxu1 %v11492_v54  ;;  %v11528_v63 = vpack.c.bf16 %v3484_v53, %v3483_v22  ;;  %v3592_v22 = vld [vmem:[#allocation14 + $0x1f8] sm:$0xff] }
 0xbb6   :  { %v3194_v32 = vpop.f32.mrb[20].mxu1 }
 0xbb7   :  { %v3274_v0 = vrot.slane %v3194_v32, %v12833_v30  ;;  %v9913_v51 = vpop.f32.mrb[21].mxu1  ;;  %v3485_v32 = vld [vmem:[#allocation14 + $0x120] sm:$0xff] }
 0xbb9   :  { %v3275_v13 = vmul.f32 %v3274_v0, %v13567_v49  ;;  %v3276_v14 = vmul.f32 %v13563_v15, %v3274_v0  ;;  %v3296_v49 = vld [vmem:[#allocation14 + $0x18] sm:$0xff]  ;;  %v3486_v0 = vld [vmem:[#allocation14 + $0x128] sm:$0xff] }
 0xbba   :  { %v3267_v62 = vpop.f32.mrb[22].mxu1  ;;  %v11496_v43 = vpack.c.bf16 %v3296_v49, %v3295_v41  ;;  %v11532_v51 = vpack.c.bf16 %v3486_v0, %v3485_v32  ;;  %v3493_v41 = vld [vmem:[#allocation14 + $0x160] sm:$0xff]  ;;  %v3494_v49 = vld [vmem:[#allocation14 + $0x168] sm:$0xff] }
 0xbbb   :  { %v3280_v57 = vrot.slane %v3267_v62, %v12833_v30  ;;  %v9920_v34 = vpop.f32.mrb[23].mxu1  ;;  %v3674_v32 = vld [vmem:[#allocation14 + $0x208] sm:$0xff] }
 0xbbc   :  { %v3490_v34 = vld [vmem:[#allocation14 + $0x148] sm:$0xff] }
 0xbbd   :  { %v3281_v50 = vadd.f32 %v3280_v57, %v3275_v13  ;;  %v3282_v29 = vadd.f32 %v3280_v57, %v3276_v14  ;;  %v3487_v13 = vld [vmem:[#allocation14 + $0x130] sm:$0xff]  ;;  %v3488_v14 = vld [vmem:[#allocation14 + $0x138] sm:$0xff]  ;;  %v3489_v57 = vld [vmem:[#allocation14 + $0x140] sm:$0xff] }
 0xbbe   :  { %v11536_v62 = vpack.c.bf16 %v3488_v14, %v3487_v13  ;;  %v3676_v13 = vld [vmem:[#allocation14 + $0x218] sm:$0xff] }
 0xbbf   :  { %vm3283_vm1 = vcmp.gt.f32.partialorder %v3281_v50, 0.0  ;;  %vm3284_vm13 = vcmp.gt.f32.partialorder %v3282_v29, 0.0  ;;  %v3285_v9 = vmul.f32 0.2, %v3281_v50  ;;  %v3286_v36 = vmul.f32 0.2, %v3282_v29 }
 0xbc1   :  { %v3287_v39 = vsel %vm3283_vm1, %v3281_v50, %v3285_v9  ;;  %v13637_v40 = vsel %vm3284_vm13, %v3282_v29, %v3286_v36  ;;  %v11540_v50 = vpack.c.bf16 %v3490_v34, %v3489_v57  ;;  %v3491_v29 = vld [vmem:[#allocation14 + $0x150] sm:$0xff]  ;;  %v3492_v9 = vld [vmem:[#allocation14 + $0x158] sm:$0xff]  ;;  %v3677_v57 = vld [vmem:[#allocation14 + $0x220] sm:$0xff] }
 0xbc2   :  { %3289 = vst [vmem:[#allocation5 + $0x4] sm:$0xff] %v3287_v39  ;;  %3290 = vst [vmem:[#allocation5 + $0xc] sm:$0xff] %v13637_v40  ;;  %v11544_v36 = vpack.c.bf16 %v3492_v9, %v3491_v29  ;;  %v3678_v34 = vld [vmem:[#allocation14 + $0x228] sm:$0xff]  ;;  %v3679_v29 = vld [vmem:[#allocation14 + $0x230] sm:$0xff] }
 0xbc3   :  { %v3680_v9 = vld [vmem:[#allocation14 + $0x238] sm:$0xff] }
 0xbc9   :  { %v3309_v42 = vld [vmem:[#allocation5 + $0x2] sm:$0xff]  ;;  %v3310_v15 = vld [vmem:[#allocation5 + $0xa] sm:$0xff] }
 0xbca   :  { %9953 = vmatprep.mubr.f32.mxu1 %v3309_v42  ;;  %v3291_v44 = vld [vmem:[#allocation5] sm:$0xff] }
 0xbcb   :  { %9954 = vmatmul.mubr.f32.vlgmr.msra.gmra.mrb[24].mxu1 %v3310_v15  ;;  %v3495_v42 = vld [vmem:[#allocation14 + $0x170] sm:$0xff]  ;;  %v3496_v15 = vld [vmem:[#allocation14 + $0x178] sm:$0xff] }
 0xbcc   :  { %11495 = vmatpush3.bf16.msra.mxu1 %v11492_v54  ;;  %9988 = vmatprep.mubr.f32.mxu1 %v3291_v44  ;;  %v13640_v54 = vld [vmem:[#allocation5 + $0x8] sm:$0xff]  ;;  %v11556_v44 = vpack.c.bf16 %v3578_v24, %v3577_v31  ;;  %v3686_v24 = vld [vmem:[#allocation14 + $0x268] sm:$0xff] }
 0xbcd   :  { %11497 = vmatprep.subr.bf16.mxu1 %v11496_v43  ;;  %v3574_v11 = vld [vmem:[#allocation5 + $0x6] sm:$0xff] }
 0xbce   :  { %v3685_v31 = vld [vmem:[#allocation14 + $0x260] sm:$0xff] }
 0xbd0   :  { %11499 = vmatpush3.bf16.msra.mxu1 %v11496_v43  ;;  %v11552_v43 = vpack.c.bf16 %v3496_v15, %v3495_v42  ;;  %v3683_v42 = vld [vmem:[#allocation14 + $0x250] sm:$0xff]  ;;  %v3684_v15 = vld [vmem:[#allocation14 + $0x258] sm:$0xff] }
 0xbd1   :  { %11501 = vmatprep.subr.bf16.mxu1 %v11500_v45 }
 0xbd4   :  { %11503 = vmatpush3.bf16.msra.mxu1 %v11500_v45  ;;  %v3579_v45 = vld [vmem:[#allocation14 + $0x190] sm:$0xff] }
 0xbd5   :  { %11505 = vmatprep.subr.bf16.mxu1 %v11504_v5  ;;  %v11560_v59 = vpack.c.bf16 %v3580_v3, %v3579_v45  ;;  %v3688_v45 = vld [vmem:[#allocation14 + $0x278] sm:$0xff] }
 0xbd8   :  { %11507 = vmatpush3.bf16.msra.mxu1 %v11504_v5  ;;  %v3581_v5 = vld [vmem:[#allocation14 + $0x1a0] sm:$0xff] }
 0xbd9   :  { %11509 = vmatprep.subr.bf16.mxu1 %v11508_v17 }
 0xbdc   :  { %11511 = vmatpush3.bf16.msra.mxu1 %v11508_v17  ;;  %v11564_v17 = vpack.c.bf16 %v3582_v10, %v3581_v5 }
 0xbdd   :  { %11513 = vmatprep.subr.bf16.mxu1 %v11512_v47 }
 0xbe0   :  { %11515 = vmatpush3.bf16.msra.mxu1 %v11512_v47  ;;  %v11568_v47 = vpack.c.bf16 %v3584_v19, %v3583_v46 }
 0xbe1   :  { %11517 = vmatprep.subr.bf16.mxu1 %v11516_v61 }
 0xbe4   :  { %11519 = vmatpush3.bf16.msra.mxu1 %v11516_v61  ;;  %v11572_v61 = vpack.c.bf16 %v3586_v60, %v3585_v55 }
 0xbe5   :  { %11521 = vmatprep.subr.bf16.mxu1 %v11520_v8 }
 0xbe8   :  { %11523 = vmatpush3.bf16.msra.mxu1 %v11520_v8  ;;  %v3589_v8 = vld [vmem:[#allocation14 + $0x1e0] sm:$0xff] }
 0xbe9   :  { %11525 = vmatprep.subr.bf16.mxu1 %v11524_v23  ;;  %v11580_v27 = vpack.c.bf16 %v3590_v18, %v3589_v8 }
 0xbeb   :  { %9989 = vmatmul.mubr.f32.vlgmr.msra.gmra.mrb[24].mxu1 %v13640_v54 }
 0xbec   :  { %11527 = vmatpush3.bf16.msra.mxu1 %v11524_v23  ;;  %10023 = vmatprep.mubr.f32.mxu1 %v3287_v39  ;;  %v11548_v39 = vpack.c.bf16 %v3494_v49, %v3493_v41  ;;  %v3591_v23 = vld [vmem:[#allocation14 + $0x1f0] sm:$0xff]  ;;  %v3681_v41 = vld [vmem:[#allocation14 + $0x240] sm:$0xff]  ;;  %v3682_v49 = vld [vmem:[#allocation14 + $0x248] sm:$0xff] }
 0xbed   :  { %11529 = vmatprep.subr.bf16.mxu1 %v11528_v63  ;;  %v11584_v53 = vpack.c.bf16 %v3592_v22, %v3591_v23 }
 0xbf0   :  { %11531 = vmatpush3.bf16.msra.mxu1 %v11528_v63  ;;  %v3673_v63 = vld [vmem:[#allocation14 + $0x200] sm:$0xff] }
 0xbf1   :  { %11533 = vmatprep.subr.bf16.mxu1 %v11532_v51  ;;  %v11588_v0 = vpack.c.bf16 %v3674_v32, %v3673_v63 }
 0xbf4   :  { %11535 = vmatpush3.bf16.msra.mxu1 %v11532_v51  ;;  %v3675_v51 = vld [vmem:[#allocation14 + $0x210] sm:$0xff] }
 0xbf5   :  { %11537 = vmatprep.subr.bf16.mxu1 %v11536_v62  ;;  %v11592_v14 = vpack.c.bf16 %v3676_v13, %v3675_v51 }
 0xbf8   :  { %11539 = vmatpush3.bf16.msra.mxu1 %v11536_v62  ;;  %v3575_v62 = vld [vmem:[#allocation5 + $0xe] sm:$0xff] }
 0xbf9   :  { %11541 = vmatprep.subr.bf16.mxu1 %v11540_v50 }
 0xbfc   :  { %11543 = vmatpush3.bf16.msra.mxu1 %v11540_v50  ;;  %v11596_v50 = vpack.c.bf16 %v3678_v34, %v3677_v57  ;;  %v3928_v34 = vld [vmem:[%s14686_s13 + $0x1] sm:$0x1] }
 0xbfd   :  { %11545 = vmatprep.subr.bf16.mxu1 %v11544_v36 }
 0xc00   :  { %11547 = vmatpush3.bf16.msra.mxu1 %v11544_v36  ;;  %v11600_v36 = vpack.c.bf16 %v3680_v9, %v3679_v29 }
 0xc01   :  { %11549 = vmatprep.subr.bf16.mxu1 %v11548_v39 }
 0xc04   :  { %11551 = vmatpush3.bf16.msra.mxu1 %v11548_v39  ;;  %v11604_v39 = vpack.c.bf16 %v3682_v49, %v3681_v41 }
 0xc05   :  { %11553 = vmatprep.subr.bf16.mxu1 %v11552_v43 }
 0xc08   :  { %11555 = vmatpush3.bf16.msra.mxu1 %v11552_v43  ;;  %v11608_v43 = vpack.c.bf16 %v3684_v15, %v3683_v42 }
 0xc09   :  { %11557 = vmatprep.subr.bf16.mxu1 %v11556_v44 }
 0xc0b   :  { %10024 = vmatmul.mubr.f32.vlgmr.msra.gmra.mrb[24].mxu1 %v13637_v40  ;;  %v11576_v40 = vpack.c.bf16 %v3588_v12, %v3587_v4 }
 0xc0c   :  { %11559 = vmatpush3.bf16.msra.mxu1 %v11556_v44  ;;  %10058 = vmatprep.mubr.f32.mxu1 %v3574_v11  ;;  %v3687_v44 = vld [vmem:[#allocation14 + $0x270] sm:$0xff] }
 0xc0d   :  { %11561 = vmatprep.subr.bf16.mxu1 %v11560_v59  ;;  %v11616_v3 = vpack.c.bf16 %v3688_v45, %v3687_v44 }
 0xc10   :  { %11563 = vmatpush3.bf16.msra.mxu1 %v11560_v59  ;;  %v3671_v59 = vld [vmem:[#allocation5 + $0x10] sm:$0xff] }
 0xc11   :  { %11565 = vmatprep.subr.bf16.mxu1 %v11564_v17 }
 0xc14   :  { %11567 = vmatpush3.bf16.msra.mxu1 %v11564_v17 }
 0xc15   :  { %11569 = vmatprep.subr.bf16.mxu1 %v11568_v47 }
 0xc18   :  { %11571 = vmatpush3.bf16.msra.mxu1 %v11568_v47 }
 0xc19   :  { %11573 = vmatprep.subr.bf16.mxu1 %v11572_v61 }
 0xc1c   :  { %11575 = vmatpush3.bf16.msra.mxu1 %v11572_v61 }
 0xc1d   :  { %11577 = vmatprep.subr.bf16.mxu1 %v11576_v40 }
 0xc20   :  { %11579 = vmatpush3.bf16.msra.mxu1 %v11576_v40 }
 0xc21   :  { %11581 = vmatprep.subr.bf16.mxu1 %v11580_v27 }
 0xc24   :  { %11583 = vmatpush3.bf16.msra.mxu1 %v11580_v27 }
 0xc25   :  { %11585 = vmatprep.subr.bf16.mxu1 %v11584_v53 }
 0xc28   :  { %11587 = vmatpush3.bf16.msra.mxu1 %v11584_v53 }
 0xc29   :  { %11589 = vmatprep.subr.bf16.mxu1 %v11588_v0 }
 0xc2b   :  { %10059 = vmatmul.mubr.f32.vlgmr.msra.gmra.mrb[24].mxu1 %v3575_v62 }
 0xc2c   :  { %11591 = vmatpush3.bf16.msra.mxu1 %v11588_v0  ;;  %10093 = vmatprep.mubr.f32.mxu1 %v13640_v54  ;;  %v11612_v54 = vpack.c.bf16 %v3686_v24, %v3685_v31 }
 0xc2d   :  { %11593 = vmatprep.subr.bf16.mxu1 %v11592_v14 }
 0xc30   :  { %11595 = vmatpush3.bf16.msra.mxu1 %v11592_v14  ;;  %v3927_v14 = vld [vmem:[%s14686_s13] sm:$0x1] }
 0xc31   :  { %11597 = vmatprep.subr.bf16.mxu1 %v11596_v50 }
 0xc34   :  { %11599 = vmatpush3.bf16.msra.mxu1 %v11596_v50 }
 0xc35   :  { %11601 = vmatprep.subr.bf16.mxu1 %v11600_v36 }
 0xc38   :  { %11603 = vmatpush3.bf16.msra.mxu1 %v11600_v36 }
 0xc39   :  { %11605 = vmatprep.subr.bf16.mxu1 %v11604_v39 }
 0xc3c   :  { %11607 = vmatpush3.bf16.msra.mxu1 %v11604_v39 }
 0xc3d   :  { %11609 = vmatprep.subr.bf16.mxu1 %v11608_v43 }
 0xc40   :  { %11611 = vmatpush3.bf16.msra.mxu1 %v11608_v43 }
 0xc41   :  { %11613 = vmatprep.subr.bf16.mxu1 %v11612_v54 }
 0xc44   :  { %11615 = vmatpush3.bf16.msra.mxu1 %v11612_v54 }
 0xc45   :  { %11617 = vmatprep.subr.bf16.mxu1 %v11616_v3 }
 0xc48   :  { %11619 = vmatpush3.bf16.msra.mxu1 %v11616_v3 }
 0xc49   :  { %11758 = vmatprep.subr.bf16.mxu1 %v12273_v2 }
 0xc4b   :  { %10094 = vmatmul.mubr.f32.vlgmr.msra.gmra.mrb[24].mxu1 %v3671_v59 }
 0xc4c   :  { %10310 = vmatprep.mubr.msk.f32.mxu1 %vm12275_vm5, %v12272_v1 }
 0xd1e   :  { %v13648_v5 = vpop.f32.mrb[24].mxu1 }
 0xd1f   :  { %v3844_v10 = vmul.f32 %v13648_v5, %v13648_v5  ;;  %v13652_v11 = vpop.f32.mrb[25].mxu1 }
 0xd20   :  { %v3766_v17 = vadd.f32 %v13648_v5, %v13652_v11  ;;  %v3843_v46 = vmul.f32 %v13652_v11, %v13652_v11 }
 0xd22   :  { %v3767_v19 = vrot.slane %v3766_v17, 4  ;;  %v3845_v47 = vadd.f32 %v3844_v10, %v3843_v46 }
 0xd24   :  { %v3768_v55 = vadd.f32 %v3767_v19, %v3766_v17  ;;  %v3846_v40 = vrot.slane %v3845_v47, 4 }
 0xd26   :  { %v3769_v60 = vrot.slane %v3768_v55, 2  ;;  %v3847_v8 = vadd.f32 %v3846_v40, %v3845_v47 }
 0xd28   :  { %v3770_v61 = vadd.f32 %v3769_v60, %v3768_v55  ;;  %v3848_v18 = vrot.slane %v3847_v8, 2  ;;  %v13726_v55 = vld [vmem:[%s14693_s20] sm:$0xff] }
 0xd2a   :  { %v3771_v4 = vrot.slane %v3770_v61, 1  ;;  %v3849_v27 = vadd.f32 %v3848_v18, %v3847_v8 }
 0xd2c   :  { %v3772_v12 = vadd.f32 %v3771_v4, %v3770_v61  ;;  %v3850_v23 = vrot.slane %v3849_v27, 1  ;;  %v8070_v4 = vld [vmem:[%s14758_s11 + $0x80] sm:$0xff] }
 0xd2e   :  { %10129 = vmatmul.mubr.f32.vlgmr.msra.gmra.mrb[20].mxu0 %v3772_v12  ;;  %v3851_v20 = vadd.f32 %v3850_v23, %v3849_v27  ;;  %v8071_v12 = vld [vmem:[%s14758_s11 + $0x88] sm:$0xff]  ;;  %v8072_v27 = vld [vmem:[%s14758_s11 + $0x90] sm:$0xff]  ;;  %v8073_v23 = vld [vmem:[%s14758_s11 + $0x98] sm:$0xff] }
 0xd2f   :  { %11646 = vmatpush3.bf16.msk.msra.mxu0 %vm13363_vm6, %v12274_v52  ;;  %10163 = vmatprep.mubr.msk.f32.mxu0 %vm12275_vm5, %v12272_v1  ;;  %v11683_v18 = vpack.c.bf16 %v8071_v12, %v8070_v4  ;;  %v4192_v12 = vld [vmem:[%s14758_s11 + $0x60] sm:$0xff] }
 0xd30   :  { %11647 = vmatprep.subr.bf16.mxu0 %v12273_v2 }
 0xd33   :  { %11649 = vmatpush3.bf16.msk.msra.mxu0 %vm13371_vm9, %v12274_v52 }
 0xd34   :  { %11650 = vmatprep.subr.bf16.mxu0 %v12273_v2 }
 0xd37   :  { %11652 = vmatpush3.bf16.msk.msra.mxu0 %vm12528_vm12, %v12274_v52 }
 0xd38   :  { %11653 = vmatprep.subr.bf16.mxu0 %v12273_v2 }
 0xd3b   :  { %11655 = vmatpush3.bf16.msk.msra.mxu0 %vm12629_vm8, %v12274_v52 }
 0xd3c   :  { %11656 = vmatprep.subr.bf16.mxu0 %v12273_v2 }
 0xd3f   :  { %11658 = vmatpush3.bf16.msk.msra.mxu0 %vm13503_vm4, %v12274_v52 }
 0xd40   :  { %11659 = vmatprep.subr.bf16.mxu0 %v12273_v2 }
 0xd43   :  { %11661 = vmatpush3.bf16.msk.msra.mxu0 %vm13519_vm11, %v12274_v52 }
 0xd44   :  { %11662 = vmatprep.subr.bf16.mxu0 %v12273_v2 }
 0xd47   :  { %11664 = vmatpush3.bf16.msk.msra.mxu0 %vm13535_vm10, %v12274_v52  ;;  %vm4103_vm10 = vcmask 113664  }
 0xd48   :  { %11665 = vmatprep.subr.bf16.mxu0 %v12273_v2 }
 0xd4b   :  { %11667 = vmatpush3.bf16.msk.msra.mxu0 %vm13551_vm0, %v12274_v52 }
 0xd4c   :  { %11668 = vmatprep.subr.bf16.mxu0 %v12273_v2 }
 0xd4e   :  { %10164 = vmatmul.mubr.f32.vlgmr.msra.gmra.mrb[22].mxu0 %v3851_v20  ;;  %v11686_v20 = vpack.c.bf16 %v8073_v23, %v8072_v27  ;;  %v4195_v27 = vld [vmem:[%s14758_s11 + $0x78] sm:$0xff] }
 0xd4f   :  { %11670 = vmatpush3.bf16.msk.msra.mxu0 %vm13612_vm2, %v12274_v52  ;;  %10170 = vmatprep.mubr.msk.f32.mxu0 %vm12275_vm5, %v12272_v1 }
 0xd50   :  { %11671 = vmatprep.subr.bf16.mxu0 %v12273_v2 }
 0xe01   :  { %v3839_v58 = vpop.f32.mrb[20].mxu0 }
 0xe02   :  { %v10130_v6 = vpop.f32.mrb[21].mxu0  ;;  %v3922_v22 = vmul.f32 0.0078125, %v3839_v58  ;;  %v8074_v58 = vld [vmem:[%s14758_s11 + $0xa0] sm:$0xff] }
 0xe03   :  { %v8075_v6 = vld [vmem:[%s14758_s11 + $0xa8] sm:$0xff] }
 0xe04   :  { %v3924_v63 = vmul.f32 %v3922_v22, %v3922_v22 }
 0xe21   :  { %v3918_v53 = vpop.f32.mrb[22].mxu0 }
 0xe22   :  { %v3923_v35 = vmul.f32 0.0078125, %v3918_v53  ;;  %v10165_v32 = vpop.f32.mrb[23].mxu0  ;;  %v8076_v53 = vld [vmem:[%s14758_s11 + $0xb0] sm:$0xff] }
 0xe23   :  { %v8078_v32 = vld [vmem:[%s14758_s11 + $0xc0] sm:$0xff] }
 0xe24   :  { %v3925_v0 = vsub.f32 %v3923_v35, %v3924_v63  ;;  %v8077_v63 = vld [vmem:[%s14758_s11 + $0xb8] sm:$0xff] }
 0xe25   :  { %v11692_v35 = vpack.c.bf16 %v8077_v63, %v8076_v53  ;;  %v8090_v63 = vld [vmem:[%s14758_s11 + $0x110] sm:$0xff] }
 0xe26   :  { %v3926_v51 = vmax.f32 %v3925_v0, 0.0  ;;  %v8079_v0 = vld [vmem:[%s14758_s11 + $0xc8] sm:$0xff] }
 0xe28   :  { %v3929_v13 = vadd.f32 1e-05, %v3926_v51  ;;  %v11695_v51 = vpack.c.bf16 %v8079_v0, %v8078_v32  ;;  %v8093_v32 = vld [vmem:[%s14758_s11 + $0x128] sm:$0xff] }
 0xe2a   :  { %12187 = vrsqrt.f32 %v3929_v13  ;;  %v8080_v13 = vld [vmem:[%s14758_s11 + $0xd0] sm:$0xff] }
 0xe34   :  { %v12188_v62 = vpop.eup %12187 }
 0xe35   :  { %v3931_v57 = vmul.f32 %v12188_v62, %v3927_v14  ;;  %v8081_v14 = vld [vmem:[%s14758_s11 + $0xd8] sm:$0xff] }
 0xe36   :  { %v11698_v62 = vpack.c.bf16 %v8081_v14, %v8080_v13  ;;  %v8096_v14 = vld [vmem:[%s14758_s11 + $0x140] sm:$0xff] }
 0xe37   :  { %10171 = vmatmul.mubr.msk.f32.vlgmr.msra.gmra.mrb[24].mxu0 %vm3124_vm7, %v3931_v57  ;;  %v3932_v50 = vmul.f32 %v3931_v57, %v3922_v22  ;;  %v11689_v22 = vpack.c.bf16 %v8075_v6, %v8074_v58  ;;  %v8082_v57 = vld [vmem:[%s14758_s11 + $0xe0] sm:$0xff]  ;;  %v8089_v6 = vld [vmem:[%s14758_s11 + $0x108] sm:$0xff] }
 0xe38   :  { %11673 = vmatpush3.bf16.msk.msra.mxu0 %vm13612_vm2, %v12274_v52  ;;  %10177 = vmatprep.mubr.msk.f32.mxu0 %vm12275_vm5, %v12272_v1  ;;  %v8088_v58 = vld [vmem:[%s14758_s11 + $0x100] sm:$0xff] }
 0xe39   :  { %v3933_v29 = vsub.f32 %v3928_v34, %v3932_v50  ;;  %11674 = vmatprep.subr.bf16.mxu0 %v12273_v2  ;;  %v8083_v34 = vld [vmem:[%s14758_s11 + $0xe8] sm:$0xff]  ;;  %v11735_v53 = vpack.c.bf16 %v8089_v6, %v8088_v58 }
 0xe3a   :  { %v11701_v50 = vpack.c.bf16 %v8083_v34, %v8082_v57  ;;  %v8098_v34 = vld [vmem:[%s14758_s11 + $0x150] sm:$0xff]  ;;  %v8119_v58 = vld [vmem:[%s14758_s11 + $0x1e8] sm:$0xff] }
 0xe3b   :  { %10178 = vmatmul.mubr.msk.f32.vlgmr.msra.gmra.mrb[26].mxu0 %vm3124_vm7, %v3933_v29  ;;  %v8084_v29 = vld [vmem:[%s14758_s11 + $0xf0] sm:$0xff] }
 0xe3c   :  { %10184 = vmatprep.mubr.msk.f32.mxu0 %vm12275_vm5, %v12272_v1 }
 0xf0a   :  { %v4003_v9 = vpop.f32.mrb[24].mxu0 }
 0xf0b   :  { %v4083_v36 = vrot.slane %v4003_v9, %v12833_v30  ;;  %v10172_v41 = vpop.f32.mrb[25].mxu0  ;;  %v8085_v9 = vld [vmem:[%s14758_s11 + $0xf8] sm:$0xff] }
 0xf0c   :  { %v4180_v41 = vld [vmem:[%s14758_s11] sm:$0xff] }
 0xf0d   :  { %v4084_v49 = vmul.f32 %v4083_v36, %v13652_v11  ;;  %v4085_v39 = vmul.f32 %v13648_v5, %v4083_v36  ;;  %v11704_v36 = vpack.c.bf16 %v8085_v9, %v8084_v29  ;;  %v8100_v9 = vld [vmem:[%s14758_s11 + $0x160] sm:$0xff] }
 0xf0e   :  { %v4076_v42 = vpop.f32.mrb[26].mxu0 }
 0xf0f   :  { %v4089_v15 = vrot.slane %v4076_v42, %v12833_v30  ;;  %v10179_v43 = vpop.f32.mrb[27].mxu0 }
 0xf10   :  { %v4182_v43 = vld [vmem:[%s14758_s11 + $0x10] sm:$0xff] }
 0xf11   :  { %v4090_v31 = vadd.f32 %v4089_v15, %v4084_v49  ;;  %v4091_v24 = vadd.f32 %v4089_v15, %v4085_v39  ;;  %v4181_v49 = vld [vmem:[%s14758_s11 + $0x8] sm:$0xff] }
 0xf12   :  { %v11707_v15 = vpack.c.bf16 %v4181_v49, %v4180_v41  ;;  %v8102_v49 = vld [vmem:[%s14758_s11 + $0x170] sm:$0xff] }
 0xf13   :  { %vm4092_vm4 = vcmp.gt.f32.partialorder %v4090_v31, 0.0  ;;  %vm4093_vm11 = vcmp.gt.f32.partialorder %v4091_v24, 0.0  ;;  %v4094_v54 = vmul.f32 0.2, %v4090_v31  ;;  %v4095_v44 = vmul.f32 0.2, %v4091_v24 }
 0xf15   :  { %v13718_v45 = vsel %vm4092_vm4, %v4090_v31, %v4094_v54  ;;  %v4097_v3 = vsel %vm4093_vm11, %v4091_v24, %v4095_v44  ;;  %v4183_v31 = vld [vmem:[%s14758_s11 + $0x18] sm:$0xff] }
 0xf16   :  { %4098 = vst [vmem:[#allocation6 + $0x4] sm:$0xff] %v13718_v45  ;;  %4099 = vst [vmem:[#allocation6 + $0xc] sm:$0xff] %v4097_v3  ;;  %v11710_v44 = vpack.c.bf16 %v4183_v31, %v4182_v43  ;;  %v4184_v3 = vld [vmem:[%s14758_s11 + $0x20] sm:$0xff] }
 0xf1d   :  { %v4100_v59 = vld [vmem:[#allocation6] sm:$0xff]  ;;  %v4101_v10 = vld [vmem:[#allocation6 + $0x8] sm:$0x3f]  ;;  %v4592_v17 = vld [vmem:[#allocation6 + $0xe] sm:$0x3f] }
 0xf1e   :  { %v4591_v11 = vld [vmem:[#allocation6 + $0x6] sm:$0xff]  ;;  %v11675_v5 = vpack.c.bf16 %v4101_v10, %v4100_v59  ;;  %v4755_v61 = vld [vmem:[#allocation6 + $0x10] sm:$0x3f]  ;;  %v4185_v59 = vld [vmem:[%s14758_s11 + $0x28] sm:$0xff] }
 0xf1f   :  { %v11759_v46 = vpack.c.bf16 %v4592_v17, %v4591_v11  ;;  %v4196_v19 = vld [vmem:[#allocation6 + $0x2] sm:$0xff]  ;;  %v4197_v47 = vld [vmem:[#allocation6 + $0xa] sm:$0x3f]  ;;  %v11713_v10 = vpack.c.bf16 %v4185_v59, %v4184_v3 }
 0xf20   :  { %11677 = vmatpush3.bf16.msk.msra.mxu0 %vm13148_vm15, %v11675_v5  ;;  %v4754_v60 = vld [vmem:[#allocation6 + $0x8] sm:$0xff]  ;;  %v11679_v40 = vpack.c.bf16 %v4197_v47, %v4196_v19  ;;  %v4186_v11 = vld [vmem:[%s14758_s11 + $0x30] sm:$0xff]  ;;  %v4189_v19 = vld [vmem:[%s14758_s11 + $0x48] sm:$0xff] }
 0xf21   :  { %11761 = vmatpush3.bf16.msk.msra.mxu1 %vm13148_vm15, %v11759_v46  ;;  %11678 = vmatprep.subr.bf16.mxu0 %v12273_v2  ;;  %v11787_v8 = vpack.c.bf16 %v4755_v61, %v4754_v60  ;;  %v4187_v5 = vld [vmem:[%s14758_s11 + $0x38] sm:$0xff]  ;;  %v4188_v46 = vld [vmem:[%s14758_s11 + $0x40] sm:$0xff]  ;;  %v4190_v60 = vld [vmem:[%s14758_s11 + $0x50] sm:$0xff] }
 0xf22   :  { %11786 = vmatprep.subr.bf16.mxu1 %v12273_v2  ;;  %v11716_v17 = vpack.c.bf16 %v4187_v5, %v4186_v11  ;;  %v11719_v47 = vpack.c.bf16 %v4189_v19, %v4188_v46  ;;  %v4191_v61 = vld [vmem:[%s14758_s11 + $0x58] sm:$0xff]  ;;  %v8108_v59 = vld [vmem:[%s14758_s11 + $0x190] sm:$0xff]  ;;  %v8110_v46 = vld [vmem:[%s14758_s11 + $0x1a0] sm:$0xff] }
 0xf23   :  { %10185 = vmatmul.mubr.msk.f32.vlgmr.msra.gmra.mrb[28].mxu0 %vm4103_vm10, %v13726_v55  ;;  %v11722_v4 = vpack.c.bf16 %v4191_v61, %v4190_v60  ;;  %v8111_v19 = vld [vmem:[%s14758_s11 + $0x1a8] sm:$0xff]  ;;  %v8112_v60 = vld [vmem:[%s14758_s11 + $0x1b0] sm:$0xff]  ;;  %v8113_v61 = vld [vmem:[%s14758_s11 + $0x1b8] sm:$0xff] }
 0xf24   :  { %11681 = vmatpush3.bf16.msk.msra.mxu0 %vm13148_vm15, %v11679_v40  ;;  %10311 = vmatmul.mubr.msk.f32.vlgmr.msra.gmra.mrb[26].mxu1 %vm4103_vm10, %v13726_v55  ;;  %v4193_v40 = vld [vmem:[%s14758_s11 + $0x68] sm:$0xff] }
 0xf25   :  { %11789 = vmatpush3.bf16.msk.msra.mxu1 %vm13148_vm15, %v11787_v8  ;;  %10191 = vmatprep.mubr.msk.f32.mxu0 %vm12275_vm5, %v12272_v1  ;;  %v11725_v8 = vpack.c.bf16 %v4193_v40, %v4192_v12  ;;  %v8114_v12 = vld [vmem:[%s14758_s11 + $0x1c0] sm:$0xff]  ;;  %v8115_v40 = vld [vmem:[%s14758_s11 + $0x1c8] sm:$0xff] }
 0xf26   :  { %11682 = vmatprep.subr.bf16.mxu0 %v12273_v2  ;;  %10352 = vmatprep.mubr.msk.f32.mxu1 %vm12275_vm5, %v12272_v1 }
 0xf27   :  { %10192 = vmatmul.mubr.msk.f32.vlgmr.msra.gmra.mrb[30].mxu0 %vm4103_vm10, %v13726_v55  ;;  %11814 = vmatprep.subr.bf16.mxu1 %v12273_v2 }
 0xf28   :  { %11684 = vmatpush3.bf16.msra.mxu0 %v11683_v18  ;;  %10226 = vmatprep.mubr.msk.f32.mxu0 %vm12275_vm5, %v12272_v1  ;;  %v4194_v18 = vld [vmem:[%s14758_s11 + $0x70] sm:$0xff] }
 0xf29   :  { %11685 = vmatprep.subr.bf16.mxu0 %v12273_v2  ;;  %10353 = vmatmul.mubr.msk.f32.vlgmr.msra.gmra.mrb[28].mxu1 %vm4103_vm10, %v13726_v55  ;;  %v11728_v23 = vpack.c.bf16 %v4195_v27, %v4194_v18  ;;  %v8116_v18 = vld [vmem:[%s14758_s11 + $0x1d0] sm:$0xff]  ;;  %v8117_v27 = vld [vmem:[%s14758_s11 + $0x1d8] sm:$0xff] }
 0xf2a   :  { %11816 = vmatpush3.bf16.msk.msra.mxu1 %vm13363_vm6, %v12274_v52  ;;  %10406 = vmatprep.mubr.msk.f32.mxu1 %vm12275_vm5, %v12272_v1 }
 0xf2b   :  { %11817 = vmatprep.subr.bf16.mxu1 %v12273_v2 }
 0xf2c   :  { %11687 = vmatpush3.bf16.msra.mxu0 %v11686_v20  ;;  %v4429_v20 = vld [vmem:[#allocation6 + $0xc] sm:$0x3f] }
 0xf2d   :  { %11688 = vmatprep.subr.bf16.mxu0 %v12273_v2 }
 0xf2e   :  { %11819 = vmatpush3.bf16.msk.msra.mxu1 %vm13371_vm9, %v12274_v52 }
 0xf2f   :  { %11820 = vmatprep.subr.bf16.mxu1 %v12273_v2 }
 0xf30   :  { %11690 = vmatpush3.bf16.msra.mxu0 %v11689_v22  ;;  %v11731_v22 = vpack.c.bf16 %v4429_v20, %v13718_v45  ;;  %v8092_v45 = vld [vmem:[%s14758_s11 + $0x120] sm:$0xff] }
 0xf31   :  { %11691 = vmatprep.subr.bf16.mxu0 %v12273_v2  ;;  %v11741_v0 = vpack.c.bf16 %v8093_v32, %v8092_v45  ;;  %v8118_v20 = vld [vmem:[%s14758_s11 + $0x1e0] sm:$0xff]  ;;  %v8126_v32 = vld [vmem:[%s14758_s11 + $0x210] sm:$0xff] }
 0xf32   :  { %11822 = vmatpush3.bf16.msk.msra.mxu1 %vm12528_vm12, %v12274_v52  ;;  %v11781_v6 = vpack.c.bf16 %v8119_v58, %v8118_v20 }
 0xf33   :  { %11823 = vmatprep.subr.bf16.mxu1 %v12273_v2 }
 0xf34   :  { %11693 = vmatpush3.bf16.msra.mxu0 %v11692_v35  ;;  %v8091_v35 = vld [vmem:[%s14758_s11 + $0x118] sm:$0xff] }
 0xf35   :  { %11694 = vmatprep.subr.bf16.mxu0 %v12273_v2  ;;  %v11738_v48 = vpack.c.bf16 %v8091_v35, %v8090_v63  ;;  %v8124_v35 = vld [vmem:[%s14758_s11 + $0x200] sm:$0xff] }
 0xf36   :  { %11825 = vmatpush3.bf16.msk.msra.mxu1 %vm12629_vm8, %v12274_v52 }
 0xf37   :  { %11826 = vmatprep.subr.bf16.mxu1 %v12273_v2 }
 0xf38   :  { %11696 = vmatpush3.bf16.msra.mxu0 %v11695_v51  ;;  %v8095_v51 = vld [vmem:[%s14758_s11 + $0x138] sm:$0xff] }
 0xf39   :  { %11697 = vmatprep.subr.bf16.mxu0 %v12273_v2 }
 0xf3c   :  { %11699 = vmatpush3.bf16.msra.mxu0 %v11698_v62  ;;  %v8097_v62 = vld [vmem:[%s14758_s11 + $0x148] sm:$0xff] }
 0xf3d   :  { %11700 = vmatprep.subr.bf16.mxu0 %v12273_v2  ;;  %v11747_v57 = vpack.c.bf16 %v8097_v62, %v8096_v14  ;;  %v8130_v62 = vld [vmem:[%s14758_s11 + $0x230] sm:$0xff] }
 0xf40   :  { %11702 = vmatpush3.bf16.msra.mxu0 %v11701_v50  ;;  %v8099_v50 = vld [vmem:[%s14758_s11 + $0x158] sm:$0xff] }
 0xf41   :  { %11703 = vmatprep.subr.bf16.mxu0 %v12273_v2  ;;  %v11750_v29 = vpack.c.bf16 %v8099_v50, %v8098_v34  ;;  %v8132_v50 = vld [vmem:[%s14758_s11 + $0x240] sm:$0xff] }
 0xf44   :  { %11705 = vmatpush3.bf16.msra.mxu0 %v11704_v36  ;;  %v8101_v36 = vld [vmem:[%s14758_s11 + $0x168] sm:$0xff] }
 0xf45   :  { %11706 = vmatprep.subr.bf16.mxu0 %v12273_v2  ;;  %v11753_v41 = vpack.c.bf16 %v8101_v36, %v8100_v9  ;;  %v8134_v36 = vld [vmem:[%s14758_s11 + $0x250] sm:$0xff] }
 0xff6   :  { %v4176_v39 = vpop.f32.mrb[28].mxu0 }
 0xff7   :  { %v10186_v42 = vpop.f32.mrb[29].mxu0 }
 0xffa   :  { %v4267_v24 = vpop.f32.mrb[30].mxu0 }
 0xffb   :  { %v10193_v54 = vpop.f32.mrb[31].mxu0  ;;  %10227 = vmatmul.mubr.f32.vlgmr.msra.gmra.mrb[32].mxu0 %v4267_v24 }
 0xffc   :  { %11708 = vmatpush3.bf16.msra.mxu0 %v11707_v15  ;;  %10261 = vmatprep.mubr.msk.f32.mxu0 %vm12275_vm5, %v12272_v1  ;;  %v4662_v15 = vpop.f32.mrb[26].mxu1  ;;  %v8106_v54 = vld [vmem:[%s14758_s11 + $0x180] sm:$0xff] }
 0xffd   :  { %11709 = vmatprep.subr.bf16.mxu0 %v12273_v2  ;;  %v10312_v43 = vpop.f32.mrb[27].mxu1 }
 0xffe   :  { %v13950_v31 = vpop.f32.mrb[28].mxu1  ;;  %v8138_v43 = vld [vmem:[%s14758_s11 + $0x270] sm:$0xff] }
 0xfff   :  { %v10354_v24 = vpop.f32.mrb[29].mxu1 }
0x1000   :  { %11711 = vmatpush3.bf16.msra.mxu0 %v11710_v44  ;;  %v8107_v44 = vld [vmem:[%s14758_s11 + $0x188] sm:$0xff]  ;;  %v8139_v24 = vld [vmem:[%s14758_s11 + $0x278] sm:$0xff] }
0x1001   :  { %11712 = vmatprep.subr.bf16.mxu0 %v12273_v2  ;;  %v11763_v3 = vpack.c.bf16 %v8107_v44, %v8106_v54  ;;  %v11812_v54 = vpack.c.bf16 %v8139_v24, %v8138_v43 }
0x1004   :  { %11714 = vmatpush3.bf16.msra.mxu0 %v11713_v10  ;;  %v8109_v10 = vld [vmem:[%s14758_s11 + $0x198] sm:$0xff] }
0x1005   :  { %11715 = vmatprep.subr.bf16.mxu0 %v12273_v2 }
0x1008   :  { %11717 = vmatpush3.bf16.msra.mxu0 %v11716_v17  ;;  %v11766_v17 = vpack.c.bf16 %v8109_v10, %v8108_v59 }
0x1009   :  { %11718 = vmatprep.subr.bf16.mxu0 %v12273_v2 }
0x100c   :  { %11720 = vmatpush3.bf16.msra.mxu0 %v11719_v47  ;;  %v11769_v47 = vpack.c.bf16 %v8111_v19, %v8110_v46 }
0x100d   :  { %11721 = vmatprep.subr.bf16.mxu0 %v12273_v2 }
0x1010   :  { %11723 = vmatpush3.bf16.msra.mxu0 %v11722_v4  ;;  %v11772_v4 = vpack.c.bf16 %v8113_v61, %v8112_v60 }
0x1011   :  { %11724 = vmatprep.subr.bf16.mxu0 %v12273_v2 }
0x1014   :  { %11726 = vmatpush3.bf16.msra.mxu0 %v11725_v8  ;;  %v11775_v8 = vpack.c.bf16 %v8115_v40, %v8114_v12 }
0x1015   :  { %11727 = vmatprep.subr.bf16.mxu0 %v12273_v2 }
0x1018   :  { %11729 = vmatpush3.bf16.msra.mxu0 %v11728_v23  ;;  %v11778_v23 = vpack.c.bf16 %v8117_v27, %v8116_v18 }
0x1019   :  { %11730 = vmatprep.subr.bf16.mxu0 %v12273_v2 }
0x101b   :  { %10262 = vmatmul.mubr.f32.vlgmr.msra.gmra.mrb[32].mxu0 %v4176_v39  ;;  %v8103_v39 = vld [vmem:[%s14758_s11 + $0x178] sm:$0xff] }
0x101c   :  { %11733 = vmatpush3.bf16.msk.msra.mxu0 %vm13148_vm15, %v11731_v22  ;;  %10268 = vmatprep.mubr.msk.f32.mxu0 %vm12275_vm5, %v12272_v1  ;;  %v11756_v42 = vpack.c.bf16 %v8103_v39, %v8102_v49  ;;  %v8120_v22 = vld [vmem:[%s14758_s11 + $0x1f0] sm:$0xff]  ;;  %v8136_v39 = vld [vmem:[%s14758_s11 + $0x260] sm:$0xff]  ;;  %vm14759_vm15 = vcmask 523264  }
0x101d   :  { %11734 = vmatprep.subr.bf16.mxu0 %v12273_v2  ;;  %vm14760_vm0 = vmmov %vm14759_vm15 }
0x101e   :  { %vm14761_vm14 = vmmov %vm14760_vm0 }
0x101f   :  { %10269 = vmatmul.mubr.msk.f32.vlgmr.msra.gmra.mrb[34].mxu0 %vm4103_vm10, %v13726_v55  ;;  %v8094_v55 = vld [vmem:[%s14758_s11 + $0x130] sm:$0xff]  ;;  %vm14762_vm3 = vmmov %vm14760_vm0 }
0x1020   :  { %11736 = vmatpush3.bf16.msra.mxu0 %v11735_v53  ;;  %10303 = vmatprep.mubr.msk.f32.mxu0 %vm12275_vm5, %v12272_v1  ;;  %v11744_v13 = vpack.c.bf16 %v8095_v51, %v8094_v55  ;;  %v8121_v53 = vld [vmem:[%s14758_s11 + $0x1f8] sm:$0xff]  ;;  %v8128_v51 = vld [vmem:[%s14758_s11 + $0x220] sm:$0xff]  ;;  %vm14763_vm13 = vmmov %vm14760_vm0 }
0x1021   :  { %11737 = vmatprep.subr.bf16.mxu0 %v12273_v2  ;;  %v11784_v63 = vpack.c.bf16 %v8121_v53, %v8120_v22  ;;  %vm14764_vm4 = vmmov %vm14760_vm0 }
0x1022   :  { %vm14765_vm11 = vmmov %vm14760_vm0 }
0x1023   :  { %vm14766_vm10 = vmmov %vm14760_vm0 }
0x1024   :  { %11739 = vmatpush3.bf16.msra.mxu0 %v11738_v48  ;;  %v8125_v48 = vld [vmem:[%s14758_s11 + $0x208] sm:$0xff] }
0x1025   :  { %11740 = vmatprep.subr.bf16.mxu0 %v12273_v2  ;;  %v11791_v45 = vpack.c.bf16 %v8125_v48, %v8124_v35  ;;  %v5083_v48 = vld [vmem:[%s14687_s14] sm:$0x1] }
0x1028   :  { %11742 = vmatpush3.bf16.msra.mxu0 %v11741_v0  ;;  %v8127_v0 = vld [vmem:[%s14758_s11 + $0x218] sm:$0xff] }
0x1029   :  { %11743 = vmatprep.subr.bf16.mxu0 %v12273_v2  ;;  %v11794_v55 = vpack.c.bf16 %v8127_v0, %v8126_v32  ;;  %v5084_v0 = vld [vmem:[%s14687_s14 + $0x1] sm:$0x1] }
0x102c   :  { %11745 = vmatpush3.bf16.msra.mxu0 %v11744_v13  ;;  %v8129_v13 = vld [vmem:[%s14758_s11 + $0x228] sm:$0xff] }
0x102d   :  { %11746 = vmatprep.subr.bf16.mxu0 %v12273_v2  ;;  %v11797_v14 = vpack.c.bf16 %v8129_v13, %v8128_v51  ;;  %v5261_v13 = vld [vmem:[#allocation16 + $0x40] sm:$0xff] }
0x1030   :  { %11748 = vmatpush3.bf16.msra.mxu0 %v11747_v57  ;;  %v8131_v57 = vld [vmem:[%s14758_s11 + $0x238] sm:$0xff] }
0x1031   :  { %11749 = vmatprep.subr.bf16.mxu0 %v12273_v2  ;;  %v11800_v34 = vpack.c.bf16 %v8131_v57, %v8130_v62  ;;  %v5263_v57 = vld [vmem:[#allocation16 + $0x50] sm:$0xff] }
0x1034   :  { %11751 = vmatpush3.bf16.msra.mxu0 %v11750_v29  ;;  %v8133_v29 = vld [vmem:[%s14758_s11 + $0x248] sm:$0xff] }
0x1035   :  { %11752 = vmatprep.subr.bf16.mxu0 %v12273_v2  ;;  %v11803_v9 = vpack.c.bf16 %v8133_v29, %v8132_v50  ;;  %v5265_v29 = vld [vmem:[#allocation16 + $0x60] sm:$0xff] }
0x1038   :  { %11754 = vmatpush3.bf16.msra.mxu0 %v11753_v41  ;;  %v8135_v41 = vld [vmem:[%s14758_s11 + $0x258] sm:$0xff] }
0x1039   :  { %11755 = vmatprep.subr.bf16.mxu0 %v12273_v2  ;;  %v11806_v49 = vpack.c.bf16 %v8135_v41, %v8134_v36  ;;  %v5267_v41 = vld [vmem:[#allocation16 + $0x70] sm:$0xff] }
0x103c   :  { %11757 = vmatpush3.bf16.msra.mxu0 %v11756_v42  ;;  %v8137_v42 = vld [vmem:[%s14758_s11 + $0x268] sm:$0xff] }
0x103d   :  { %11762 = vmatprep.subr.bf16.mxu0 %v12273_v2 }
0x10f2   :  { %v4499_v11 = vpop.f32.mrb[34].mxu0 }
0x10f3   :  { %v10270_v5 = vpop.f32.mrb[35].mxu0  ;;  %10304 = vmatmul.mubr.f32.vlgmr.msra.gmra.mrb[32].mxu0 %v4499_v11 }
0x10f4   :  { %11764 = vmatpush3.bf16.msra.mxu0 %v11763_v3  ;;  %10345 = vmatprep.mubr.msk.f32.mxu0 %vm12275_vm5, %v12272_v1 }
0x10f5   :  { %11765 = vmatprep.subr.bf16.mxu0 %v12273_v2 }
0x10f8   :  { %11767 = vmatpush3.bf16.msra.mxu0 %v11766_v17 }
0x10f9   :  { %11768 = vmatprep.subr.bf16.mxu0 %v12273_v2 }
0x10fc   :  { %11770 = vmatpush3.bf16.msra.mxu0 %v11769_v47 }
0x10fd   :  { %11771 = vmatprep.subr.bf16.mxu0 %v12273_v2 }
0x1100   :  { %11773 = vmatpush3.bf16.msra.mxu0 %v11772_v4 }
0x1101   :  { %11774 = vmatprep.subr.bf16.mxu0 %v12273_v2 }
0x1104   :  { %11776 = vmatpush3.bf16.msra.mxu0 %v11775_v8 }
0x1105   :  { %11777 = vmatprep.subr.bf16.mxu0 %v12273_v2 }
0x1108   :  { %11779 = vmatpush3.bf16.msra.mxu0 %v11778_v23 }
0x1109   :  { %11780 = vmatprep.subr.bf16.mxu0 %v12273_v2 }
0x110c   :  { %11782 = vmatpush3.bf16.msra.mxu0 %v11781_v6 }
0x110d   :  { %11783 = vmatprep.subr.bf16.mxu0 %v12273_v2 }
0x1110   :  { %11785 = vmatpush3.bf16.msra.mxu0 %v11784_v63 }
0x1111   :  { %11790 = vmatprep.subr.bf16.mxu0 %v12273_v2 }
0x1113   :  { %10346 = vmatmul.mubr.f32.vlgmr.msra.gmra.mrb[32].mxu0 %v4662_v15  ;;  %v11809_v15 = vpack.c.bf16 %v8137_v42, %v8136_v39 }
0x1114   :  { %11792 = vmatpush3.bf16.msra.mxu0 %v11791_v45  ;;  %10387 = vmatprep.mubr.msk.f32.mxu0 %vm12275_vm5, %v12272_v1 }
0x1115   :  { %11793 = vmatprep.subr.bf16.mxu0 %v12273_v2 }
0x1118   :  { %11795 = vmatpush3.bf16.msra.mxu0 %v11794_v55 }
0x1119   :  { %11796 = vmatprep.subr.bf16.mxu0 %v12273_v2 }
0x111c   :  { %11798 = vmatpush3.bf16.msra.mxu0 %v11797_v14  ;;  %v5262_v14 = vld [vmem:[#allocation16 + $0x48] sm:$0xff] }
0x111d   :  { %11799 = vmatprep.subr.bf16.mxu0 %v12273_v2  ;;  %v11845_v62 = vpack.c.bf16 %v5262_v14, %v5261_v13  ;;  %v5503_v14 = vld [vmem:[#allocation16 + $0xd0] sm:$0xff] }
0x1120   :  { %11801 = vmatpush3.bf16.msra.mxu0 %v11800_v34  ;;  %v5264_v34 = vld [vmem:[#allocation16 + $0x58] sm:$0xff] }
0x1121   :  { %11802 = vmatprep.subr.bf16.mxu0 %v12273_v2  ;;  %v11848_v50 = vpack.c.bf16 %v5264_v34, %v5263_v57 }
0x1124   :  { %11804 = vmatpush3.bf16.msra.mxu0 %v11803_v9  ;;  %v5266_v9 = vld [vmem:[#allocation16 + $0x68] sm:$0xff] }
0x1125   :  { %11805 = vmatprep.subr.bf16.mxu0 %v12273_v2  ;;  %v11851_v36 = vpack.c.bf16 %v5266_v9, %v5265_v29  ;;  %v5506_v29 = vld [vmem:[#allocation16 + $0xe8] sm:$0xff] }
0x1128   :  { %11807 = vmatpush3.bf16.msra.mxu0 %v11806_v49  ;;  %v5268_v49 = vld [vmem:[#allocation16 + $0x78] sm:$0xff] }
0x1129   :  { %11808 = vmatprep.subr.bf16.mxu0 %v12273_v2  ;;  %v11854_v39 = vpack.c.bf16 %v5268_v49, %v5267_v41  ;;  %v5508_v41 = vld [vmem:[#allocation16 + $0xf8] sm:$0xff] }
0x112c   :  { %11810 = vmatpush3.bf16.msra.mxu0 %v11809_v15 }
0x112d   :  { %11811 = vmatprep.subr.bf16.mxu0 %v12273_v2 }
0x1130   :  { %11813 = vmatpush3.bf16.msra.mxu0 %v11812_v54 }
0x1131   :  { %11904 = vmatprep.subr.bf16.mxu0 %v12273_v2 }
0x1133   :  { %10388 = vmatmul.mubr.f32.vlgmr.msra.gmra.mrb[32].mxu0 %v13950_v31 }
0x1134   :  { %11906 = vmatpush3.bf16.msk.msra.mxu0 %vm13363_vm6, %v12274_v52  ;;  %10553 = vmatprep.mubr.msk.f32.mxu0 %vm12275_vm5, %v12272_v1 }
0x1135   :  { %11907 = vmatprep.subr.bf16.mxu0 %v12273_v2 }
0x1138   :  { %11909 = vmatpush3.bf16.msk.msra.mxu0 %vm13371_vm9, %v12274_v52 }
0x1139   :  { %11910 = vmatprep.subr.bf16.mxu0 %v12273_v2 }
0x113c   :  { %11912 = vmatpush3.bf16.msk.msra.mxu0 %vm12528_vm12, %v12274_v52 }
0x113d   :  { %11913 = vmatprep.subr.bf16.mxu0 %v12273_v2 }
0x1140   :  { %11915 = vmatpush3.bf16.msk.msra.mxu0 %vm12629_vm8, %v12274_v52 }
0x1141   :  { %11916 = vmatprep.subr.bf16.mxu0 %v12273_v2 }
0x1206   :  { %v14087_v31 = vpop.f32.mrb[32].mxu0 }
0x1207   :  { %v4917_v44 = vsel %vm14759_vm15, %v14087_v31, 0.0  ;;  %v4997_v3 = vmul.f32 %v14087_v31, %v14087_v31  ;;  %v10389_v59 = vpop.f32.mrb[33].mxu0  ;;  %vm14767_vm15 = vmmov %vm14760_vm0 }
0x1208   :  { %v4918_v10 = vrot.slane %v4917_v44, 4 }
0x1209   :  { %v4998_v5 = vsel %vm14760_vm0, %v4997_v3, 0.0 }
0x120a   :  { %v4919_v11 = vadd.f32 %v4918_v10, %v4917_v44  ;;  %v4999_v19 = vrot.slane %v4998_v5, 4 }
0x120c   :  { %v4920_v17 = vrot.slane %v4919_v11, 2  ;;  %v5000_v61 = vadd.f32 %v4999_v19, %v4998_v5  ;;  %v5251_v5 = vld [vmem:[#allocation16] sm:$0xff]  ;;  %v5253_v19 = vld [vmem:[#allocation16 + $0x10] sm:$0xff] }
0x120e   :  { %v4921_v46 = vadd.f32 %v4920_v17, %v4919_v11  ;;  %v5001_v4 = vrot.slane %v5000_v61, 2  ;;  %v5252_v17 = vld [vmem:[#allocation16 + $0x8] sm:$0xff] }
0x1210   :  { %v4922_v47 = vrot.slane %v4921_v46, 1  ;;  %v5002_v12 = vadd.f32 %v5001_v4, %v5000_v61  ;;  %v5255_v61 = vld [vmem:[#allocation16 + $0x20] sm:$0xff]  ;;  %v5256_v4 = vld [vmem:[#allocation16 + $0x28] sm:$0xff] }
0x1212   :  { %v4923_v60 = vadd.f32 %v4922_v47, %v4921_v46  ;;  %v5003_v40 = vrot.slane %v5002_v12, 1  ;;  %v11857_v46 = vpack.c.bf16 %v5252_v17, %v5251_v5  ;;  %v5254_v47 = vld [vmem:[#allocation16 + $0x18] sm:$0xff] }
0x1213   :  { %v5592_v5 = vld [vmem:[#allocation16 + $0x138] sm:$0xff] }
0x1214   :  { %10407 = vmatmul.mubr.msk.f32.vlgmr.msra.gmra.mrb[30].mxu1 %vm14761_vm14, %v4923_v60  ;;  %v5004_v8 = vadd.f32 %v5003_v40, %v5002_v12  ;;  %v11863_v12 = vpack.c.bf16 %v5256_v4, %v5255_v61  ;;  %v5257_v40 = vld [vmem:[#allocation16 + $0x30] sm:$0xff]  ;;  %vm14768_vm14 = vmmov %vm14760_vm0 }
0x1215   :  { %11828 = vmatpush3.bf16.msk.msra.mxu1 %vm13363_vm6, %v12274_v52  ;;  %10425 = vmatprep.mubr.msk.f32.mxu1 %vm12275_vm5, %v12272_v1 }
0x1216   :  { %11829 = vmatprep.subr.bf16.mxu1 %v12273_v2 }
0x1219   :  { %11831 = vmatpush3.bf16.msk.msra.mxu1 %vm13371_vm9, %v12274_v52 }
0x121a   :  { %11832 = vmatprep.subr.bf16.mxu1 %v12273_v2 }
0x121d   :  { %11834 = vmatpush3.bf16.msk.msra.mxu1 %vm12528_vm12, %v12274_v52 }
0x121e   :  { %11835 = vmatprep.subr.bf16.mxu1 %v12273_v2 }
0x1221   :  { %11837 = vmatpush3.bf16.msk.msra.mxu1 %vm12629_vm8, %v12274_v52 }
0x1222   :  { %11838 = vmatprep.subr.bf16.mxu1 %v12273_v2 }
0x1224   :  { %10426 = vmatmul.mubr.msk.f32.vlgmr.msra.gmra.mrb[32].mxu1 %vm14762_vm3, %v5004_v8  ;;  %v5258_v8 = vld [vmem:[#allocation16 + $0x38] sm:$0xff]  ;;  %vm14769_vm3 = vmmov %vm14760_vm0 }
0x1225   :  { %11840 = vmatpush3.bf16.msk.msra.mxu1 %vm13612_vm2, %v12274_v52  ;;  %10432 = vmatprep.mubr.msk.f32.mxu1 %vm12275_vm5, %v12272_v1 }
0x1226   :  { %11841 = vmatprep.subr.bf16.mxu1 %v12273_v2 }
0x12e7   :  { %v4993_v18 = vpop.f32.mrb[30].mxu1 }
0x12e8   :  { %v10408_v27 = vpop.f32.mrb[31].mxu1  ;;  %v5078_v23 = vmul.f32 0.03125, %v4993_v18  ;;  %v11866_v18 = vpack.c.bf16 %v5258_v8, %v5257_v40 }
0x12e9   :  { %v5417_v27 = vld [vmem:[#allocation16 + $0x80] sm:$0xff] }
0x12ea   :  { %v5080_v58 = vmul.f32 %v5078_v23, %v5078_v23 }
0x12f7   :  { %v5074_v20 = vpop.f32.mrb[32].mxu1 }
0x12f8   :  { %v5079_v6 = vmul.f32 0.03125, %v5074_v20  ;;  %v10427_v22 = vpop.f32.mrb[33].mxu1 }
0x12fa   :  { %v5081_v53 = vsub.f32 %v5079_v6, %v5080_v58  ;;  %v5419_v58 = vld [vmem:[#allocation16 + $0x90] sm:$0xff]  ;;  %v5420_v6 = vld [vmem:[#allocation16 + $0x98] sm:$0xff] }
0x12fc   :  { %v5082_v63 = vmax.f32 %v5081_v53, 0.0  ;;  %v11872_v53 = vpack.c.bf16 %v5420_v6, %v5419_v58 }
0x12fe   :  { %v5085_v35 = vadd.f32 1e-05, %v5082_v63  ;;  %v5421_v63 = vld [vmem:[#allocation16 + $0xa0] sm:$0xff] }
0x1300   :  { %12189 = vrsqrt.f32 %v5085_v35  ;;  %v5422_v35 = vld [vmem:[#allocation16 + $0xa8] sm:$0xff] }
0x130a   :  { %v12190_v45 = vpop.eup %12189 }
0x130b   :  { %v5087_v32 = vmul.f32 %v12190_v45, %v5083_v48  ;;  %v11875_v48 = vpack.c.bf16 %v5422_v35, %v5421_v63  ;;  %v5423_v45 = vld [vmem:[#allocation16 + $0xb0] sm:$0xff] }
0x130d   :  { %10433 = vmatmul.mubr.msk.f32.vlgmr.msra.gmra.mrb[34].mxu1 %vm3124_vm7, %v5087_v32  ;;  %v5088_v55 = vmul.f32 %v5087_v32, %v5078_v23  ;;  %v5418_v23 = vld [vmem:[#allocation16 + $0x88] sm:$0xff]  ;;  %v5424_v32 = vld [vmem:[#allocation16 + $0xb8] sm:$0xff] }
0x130e   :  { %11843 = vmatpush3.bf16.msk.msra.mxu1 %vm13612_vm2, %v12274_v52  ;;  %10439 = vmatprep.mubr.msk.f32.mxu1 %vm12275_vm5, %v12272_v1  ;;  %v11869_v20 = vpack.c.bf16 %v5418_v23, %v5417_v27 }
0x130f   :  { %v5089_v51 = vsub.f32 %v5084_v0, %v5088_v55  ;;  %11844 = vmatprep.subr.bf16.mxu1 %v12273_v2  ;;  %v11878_v0 = vpack.c.bf16 %v5424_v32, %v5423_v45  ;;  %v5501_v55 = vld [vmem:[#allocation16 + $0xc0] sm:$0xff] }
0x1311   :  { %10440 = vmatmul.mubr.msk.f32.vlgmr.msra.gmra.mrb[36].mxu1 %vm3124_vm7, %v5089_v51  ;;  %v5502_v51 = vld [vmem:[#allocation16 + $0xc8] sm:$0xff] }
0x1312   :  { %10458 = vmatprep.mubr.msk.f32.mxu1 %vm12275_vm5, %v12272_v1  ;;  %11846 = vmatpush3.bf16.msra.mxu1 %v11845_v62  ;;  %v11881_v13 = vpack.c.bf16 %v5502_v51, %v5501_v55  ;;  %v5504_v62 = vld [vmem:[#allocation16 + $0xd8] sm:$0xff]  ;;  %v8194_v55 = vld [vmem:[%s14680_s7 + $0x48] sm:$0xff] }
0x1313   :  { %11847 = vmatprep.subr.bf16.mxu1 %v12273_v2  ;;  %v11884_v34 = vpack.c.bf16 %v5504_v62, %v5503_v14  ;;  %v5833_v51 = vld [vmem:[%s14688_s15] sm:$0x1]  ;;  %v11935_v14 = vpack.c.bf16 %v8194_v55, %v8193_v33  ;;  %v8213_v55 = vld [vmem:[%s14680_s7 + $0xc8] sm:$0xff] }
0x1314   :  { %v8212_v33 = vld [vmem:[%s14680_s7 + $0xc0] sm:$0xff] }
0x1316   :  { %11849 = vmatpush3.bf16.msra.mxu1 %v11848_v50  ;;  %v5505_v50 = vld [vmem:[#allocation16 + $0xe0] sm:$0xff] }
0x1317   :  { %11850 = vmatprep.subr.bf16.mxu1 %v12273_v2  ;;  %v11887_v9 = vpack.c.bf16 %v5506_v29, %v5505_v50  ;;  %v5834_v50 = vld [vmem:[%s14688_s15 + $0x1] sm:$0x1] }
0x131a   :  { %11852 = vmatpush3.bf16.msra.mxu1 %v11851_v36  ;;  %v5507_v36 = vld [vmem:[#allocation16 + $0xf0] sm:$0xff] }
0x131b   :  { %11853 = vmatprep.subr.bf16.mxu1 %v12273_v2  ;;  %v11890_v49 = vpack.c.bf16 %v5508_v41, %v5507_v36  ;;  %v8197_v41 = vld [vmem:[%s14680_s7 + $0x60] sm:$0xff] }
0x131e   :  { %11855 = vmatpush3.bf16.msra.mxu1 %v11854_v39  ;;  %v5585_v39 = vld [vmem:[#allocation16 + $0x100] sm:$0xff] }
0x131f   :  { %11856 = vmatprep.subr.bf16.mxu1 %v12273_v2 }
0x13e0   :  { %v5159_v42 = vpop.f32.mrb[34].mxu1 }
0x13e1   :  { %v5239_v15 = vrot.slane %v5159_v42, %v12833_v30  ;;  %v10434_v43 = vpop.f32.mrb[35].mxu1  ;;  %v5586_v42 = vld [vmem:[#allocation16 + $0x108] sm:$0xff] }
0x13e2   :  { %v5587_v43 = vld [vmem:[#allocation16 + $0x110] sm:$0xff] }
0x13e3   :  { %v5240_v24 = vmul.f32 %v5239_v15, %v14087_v31  ;;  %v11860_v31 = vpack.c.bf16 %v5254_v47, %v5253_v19  ;;  %v11893_v15 = vpack.c.bf16 %v5586_v42, %v5585_v39  ;;  %v8199_v42 = vld [vmem:[%s14680_s7 + $0x70] sm:$0xff] }
0x13e4   :  { %v5232_v54 = vpop.f32.mrb[36].mxu1 }
0x13e5   :  { %v5244_v44 = vrot.slane %v5232_v54, %v12833_v30  ;;  %v10441_v3 = vpop.f32.mrb[37].mxu1 }
0x13e6   :  { %v5589_v3 = vld [vmem:[#allocation16 + $0x120] sm:$0xff] }
0x13e7   :  { %v5245_v59 = vadd.f32 %v5244_v44, %v5240_v24  ;;  %v5588_v24 = vld [vmem:[#allocation16 + $0x118] sm:$0xff] }
0x13e8   :  { %v11896_v44 = vpack.c.bf16 %v5588_v24, %v5587_v43  ;;  %v6001_v24 = vld [vmem:[%s14680_s7] sm:$0xff] }
0x13e9   :  { %vm5246_vm1 = vcmp.gt.f32.partialorder %v5245_v59, 0.0  ;;  %v5247_v10 = vmul.f32 0.2, %v5245_v59 }
0x13eb   :  { %v5248_v11 = vsel %vm5246_vm1, %v5245_v59, %v5247_v10  ;;  %v5590_v59 = vld [vmem:[#allocation16 + $0x128] sm:$0xff]  ;;  %vm14770_vm1 = vmmov %vm14760_vm0 }
0x13ec   :  { %5249 = vst.msk [vmem:[#allocation7 + $0x4] sm:$0xff] %vm14763_vm13, %v5248_v11  ;;  %v11899_v10 = vpack.c.bf16 %v5590_v59, %v5589_v3  ;;  %v5591_v11 = vld [vmem:[#allocation16 + $0x130] sm:$0xff]  ;;  %vm14775_vm13 = vmmov %vm14760_vm0 }
0x13ed   :  { %v11902_v17 = vpack.c.bf16 %v5592_v5, %v5591_v11  ;;  %v6003_v59 = vld [vmem:[%s14680_s7 + $0x10] sm:$0xff]  ;;  %v6005_v5 = vld [vmem:[%s14680_s7 + $0x20] sm:$0xff] }
0x13f3   :  { %v5259_v60 = vld [vmem:[#allocation7 + $0x2] sm:$0xff] }
0x13f4   :  { %10459 = vmatmul.mubr.msk.f32.vlgmr.msra.gmra.mrb[38].mxu1 %vm14764_vm4, %v5259_v60  ;;  %v5250_v22 = vld [vmem:[#allocation7] sm:$0xff]  ;;  %vm14776_vm4 = vmmov %vm14760_vm0 }
0x13f5   :  { %11858 = vmatpush3.bf16.msra.mxu1 %v11857_v46  ;;  %10477 = vmatprep.mubr.msk.f32.mxu1 %vm12275_vm5, %v12272_v1  ;;  %v5415_v57 = vld [vmem:[#allocation7 + $0x4] sm:$0xff] }
0x13f6   :  { %11859 = vmatprep.subr.bf16.mxu1 %v12273_v2  ;;  %v5499_v54 = vld [vmem:[#allocation7 + $0x6] sm:$0xff] }
0x13f7   :  { %v5583_v46 = vld [vmem:[#allocation7 + $0x8] sm:$0xff] }
0x13f9   :  { %11861 = vmatpush3.bf16.msra.mxu1 %v11860_v31 }
0x13fa   :  { %11862 = vmatprep.subr.bf16.mxu1 %v12273_v2 }
0x13fd   :  { %11864 = vmatpush3.bf16.msra.mxu1 %v11863_v12 }
0x13fe   :  { %11865 = vmatprep.subr.bf16.mxu1 %v12273_v2 }
0x1401   :  { %11867 = vmatpush3.bf16.msra.mxu1 %v11866_v18 }
0x1402   :  { %11868 = vmatprep.subr.bf16.mxu1 %v12273_v2 }
0x1404   :  { %10478 = vmatmul.mubr.msk.f32.vlgmr.msra.gmra.mrb[38].mxu1 %vm14765_vm11, %v5250_v22  ;;  %vm14777_vm11 = vmmov %vm14760_vm0 }
0x1405   :  { %11870 = vmatpush3.bf16.msra.mxu1 %v11869_v20  ;;  %10496 = vmatprep.mubr.msk.f32.mxu1 %vm12275_vm5, %v12272_v1 }
0x1406   :  { %11871 = vmatprep.subr.bf16.mxu1 %v12273_v2 }
0x1409   :  { %11873 = vmatpush3.bf16.msra.mxu1 %v11872_v53 }
0x140a   :  { %11874 = vmatprep.subr.bf16.mxu1 %v12273_v2 }
0x140d   :  { %11876 = vmatpush3.bf16.msra.mxu1 %v11875_v48 }
0x140e   :  { %11877 = vmatprep.subr.bf16.mxu1 %v12273_v2 }
0x1411   :  { %11879 = vmatpush3.bf16.msra.mxu1 %v11878_v0 }
0x1412   :  { %11880 = vmatprep.subr.bf16.mxu1 %v12273_v2 }
0x1414   :  { %10497 = vmatmul.mubr.msk.f32.vlgmr.msra.gmra.mrb[38].mxu1 %vm14766_vm10, %v5415_v57  ;;  %v8195_v57 = vld [vmem:[%s14680_s7 + $0x50] sm:$0xff] }
0x1415   :  { %11882 = vmatpush3.bf16.msra.mxu1 %v11881_v13  ;;  %10515 = vmatprep.mubr.msk.f32.mxu1 %vm12275_vm5, %v12272_v1 }
0x1416   :  { %11883 = vmatprep.subr.bf16.mxu1 %v12273_v2 }
0x1419   :  { %11885 = vmatpush3.bf16.msra.mxu1 %v11884_v34  ;;  %v8196_v34 = vld [vmem:[%s14680_s7 + $0x58] sm:$0xff] }
0x141a   :  { %11886 = vmatprep.subr.bf16.mxu1 %v12273_v2 }
0x141d   :  { %11888 = vmatpush3.bf16.msra.mxu1 %v11887_v9  ;;  %v11938_v9 = vpack.c.bf16 %v8196_v34, %v8195_v57  ;;  %v8216_v57 = vld [vmem:[%s14680_s7 + $0xe0] sm:$0xff]  ;;  %v8217_v34 = vld [vmem:[%s14680_s7 + $0xe8] sm:$0xff] }
0x141e   :  { %11889 = vmatprep.subr.bf16.mxu1 %v12273_v2 }
0x1421   :  { %11891 = vmatpush3.bf16.msra.mxu1 %v11890_v49  ;;  %v8198_v49 = vld [vmem:[%s14680_s7 + $0x68] sm:$0xff] }
0x1422   :  { %11892 = vmatprep.subr.bf16.mxu1 %v12273_v2  ;;  %v11941_v39 = vpack.c.bf16 %v8198_v49, %v8197_v41  ;;  %v8221_v41 = vld [vmem:[%s14680_s7 + $0x100] sm:$0xff]  ;;  %v8222_v49 = vld [vmem:[%s14680_s7 + $0x108] sm:$0xff] }
0x1424   :  { %10516 = vmatmul.mubr.msk.f32.vlgmr.msra.gmra.mrb[38].mxu1 %vm14767_vm15, %v5499_v54  ;;  %v6002_v54 = vld [vmem:[%s14680_s7 + $0x8] sm:$0xff] }
0x1425   :  { %11894 = vmatpush3.bf16.msra.mxu1 %v11893_v15  ;;  %10534 = vmatprep.mubr.msk.f32.mxu1 %vm12275_vm5, %v12272_v1  ;;  %v8200_v15 = vld [vmem:[%s14680_s7 + $0x78] sm:$0xff]  ;;  %v11947_v3 = vpack.c.bf16 %v6002_v54, %v6001_v24  ;;  %v8225_v54 = vld [vmem:[%s14680_s7 + $0x120] sm:$0xff] }
0x1426   :  { %11895 = vmatprep.subr.bf16.mxu1 %v12273_v2  ;;  %v11944_v43 = vpack.c.bf16 %v8200_v15, %v8199_v42  ;;  %v8223_v42 = vld [vmem:[%s14680_s7 + $0x110] sm:$0xff]  ;;  %v8224_v15 = vld [vmem:[%s14680_s7 + $0x118] sm:$0xff] }
0x1427   :  { %v11986_v24 = vpack.c.bf16 %v8224_v15, %v8223_v42  ;;  %v6774_v42 = vld [vmem:[%s14681_s8 + $0x8] sm:$0xff] }
0x1429   :  { %11897 = vmatpush3.bf16.msra.mxu1 %v11896_v44  ;;  %v6009_v44 = vld [vmem:[#allocation8 + $0x2] sm:$0x3] }
0x142a   :  { %11898 = vmatprep.subr.bf16.mxu1 %v12273_v2 }
0x142d   :  { %11900 = vmatpush3.bf16.msra.mxu1 %v11899_v10  ;;  %v6004_v10 = vld [vmem:[%s14680_s7 + $0x18] sm:$0xff] }
0x142e   :  { %11901 = vmatprep.subr.bf16.mxu1 %v12273_v2  ;;  %v11950_v11 = vpack.c.bf16 %v6004_v10, %v6003_v59  ;;  %v8227_v59 = vld [vmem:[%s14680_s7 + $0x130] sm:$0xff]  ;;  %v8228_v10 = vld [vmem:[%s14680_s7 + $0x138] sm:$0xff] }
0x1431   :  { %11903 = vmatpush3.bf16.msra.mxu1 %v11902_v17  ;;  %v6006_v17 = vld [vmem:[%s14680_s7 + $0x28] sm:$0xff] }
0x1432   :  { %11928 = vmatprep.subr.bf16.mxu1 %v12273_v2 }
0x1434   :  { %10535 = vmatmul.mubr.msk.f32.vlgmr.msra.gmra.mrb[38].mxu1 %vm14760_vm0, %v5583_v46  ;;  %v11953_v46 = vpack.c.bf16 %v6006_v17, %v6005_v5  ;;  %v6417_v17 = vand.u32 31, %v12468_v16 }
0x1435   :  { %11930 = vmatpush3.bf16.msk.msra.mxu1 %vm13612_vm2, %v12274_v52  ;;  %10579 = vmatprep.mubr.msk.f32.mxu1 %vm12275_vm5, %v12272_v1 }
0x1436   :  { %11934 = vmatprep.subr.bf16.mxu1 %v12273_v2  ;;  %vm6421_vm10 = vcmp.eq.s32.totalorder %v6417_v17, %v12485_v28  ;;  %v8259_v17 = vld [vmem:[%s14681_s8 + $0x58] sm:$0xff] }
0x1507   :  { %v14179_v19 = vpop.f32.mrb[38].mxu1 }
0x1508   :  { %v5667_v47 = vsel %vm14768_vm14, %v14179_v19, 0.0  ;;  %v5747_v60 = vmul.f32 %v14179_v19, %v14179_v19  ;;  %v10536_v31 = vpop.f32.mrb[39].mxu1 }
0x1509   :  { %v5668_v61 = vrot.slane %v5667_v47, 4 }
0x150a   :  { %v5748_v12 = vsel %vm14769_vm3, %v5747_v60, 0.0  ;;  %v6008_v60 = vld [vmem:[%s14680_s7 + $0x38] sm:$0xff] }
0x150b   :  { %v5669_v4 = vadd.f32 %v5668_v61, %v5667_v47  ;;  %v5749_v18 = vrot.slane %v5748_v12, 4  ;;  %v6007_v47 = vld [vmem:[%s14680_s7 + $0x30] sm:$0xff]  ;;  %v8203_v61 = vld [vmem:[%s14680_s7 + $0x80] sm:$0xff] }
0x150c   :  { %v11956_v31 = vpack.c.bf16 %v6008_v60, %v6007_v47  ;;  %v6419_v60 = vand.u32 31, %v12480_v25 }
0x150d   :  { %v5670_v40 = vrot.slane %v5669_v4, 2  ;;  %v5750_v20 = vadd.f32 %v5749_v18, %v5748_v12  ;;  %v8206_v18 = vld [vmem:[%s14680_s7 + $0x98] sm:$0xff] }
0x150e   :  { %vm6423_vm14 = vcmp.eq.s32.totalorder %v6419_v60, %v12485_v28 }
0x150f   :  { %v5671_v8 = vadd.f32 %v5670_v40, %v5669_v4  ;;  %v5751_v58 = vrot.slane %v5750_v20, 2  ;;  %v8204_v4 = vld [vmem:[%s14680_s7 + $0x88] sm:$0xff]  ;;  %v6000_v40 = vld [vmem:[#allocation8] sm:$0x3] }
0x1510   :  { %v11959_v12 = vpack.c.bf16 %v8204_v4, %v8203_v61 }
0x1511   :  { %v5672_v27 = vrot.slane %v5671_v8, 1  ;;  %v5752_v6 = vadd.f32 %v5751_v58, %v5750_v20  ;;  %v8208_v20 = vld [vmem:[%s14680_s7 + $0xa8] sm:$0xff] }
0x1513   :  { %v5673_v23 = vadd.f32 %v5672_v27, %v5671_v8  ;;  %v5753_v22 = vrot.slane %v5752_v6, 1  ;;  %v8205_v8 = vld [vmem:[%s14680_s7 + $0x90] sm:$0xff] }
0x1514   :  { %v11962_v27 = vpack.c.bf16 %v8206_v18, %v8205_v8 }
0x1515   :  { %10554 = vmatmul.mubr.msk.f32.vlgmr.msra.gmra.mrb[36].mxu0 %vm14770_vm1, %v5673_v23  ;;  %v5754_v37 = vadd.f32 %v5753_v22, %v5752_v6  ;;  %v8207_v23 = vld [vmem:[%s14680_s7 + $0xa0] sm:$0xff]  ;;  %v8209_v6 = vld [vmem:[%s14680_s7 + $0xb0] sm:$0xff]  ;;  %v8210_v22 = vld [vmem:[%s14680_s7 + $0xb8] sm:$0xff] }
0x1516   :  { %11918 = vmatpush3.bf16.msk.msra.mxu0 %vm13363_vm6, %v12274_v52  ;;  %10572 = vmatprep.mubr.msk.f32.mxu0 %vm12275_vm5, %v12272_v1  ;;  %vm14771_vm6 = vmmov %vm14760_vm0  ;;  %v11965_v58 = vpack.c.bf16 %v8208_v20, %v8207_v23 }
0x1517   :  { %11919 = vmatprep.subr.bf16.mxu0 %v12273_v2 }
0x151a   :  { %11921 = vmatpush3.bf16.msk.msra.mxu0 %vm13371_vm9, %v12274_v52  ;;  %vm129_vm9 = vcmask 254976  }
0x151b   :  { %11922 = vmatprep.subr.bf16.mxu0 %v12273_v2  ;;  %130 = vst.msk [vmem:[#allocation10] sm:$0x3] %vm129_vm9, %v12272_v1  ;;  %131 = vst.msk [vmem:[#allocation10 + $0x4] sm:$0x3] %vm129_vm9, %v12272_v1 }
0x151e   :  { %11924 = vmatpush3.bf16.msk.msra.mxu0 %vm12528_vm12, %v12274_v52  ;;  %vm14772_vm12 = vmmov %vm14760_vm0 }
0x151f   :  { %11925 = vmatprep.subr.bf16.mxu0 %v12273_v2 }
0x1522   :  { %11927 = vmatpush3.bf16.msk.msra.mxu0 %vm12629_vm8, %v12274_v52  ;;  %vm14773_vm8 = vmmov %vm14760_vm0 }
0x1523   :  { %11931 = vmatprep.subr.bf16.mxu0 %v12273_v2 }
0x1525   :  { %10573 = vmatmul.mubr.msk.f32.vlgmr.msra.gmra.mrb[38].mxu0 %vm14771_vm6, %v5754_v37  ;;  %v11968_v37 = vpack.c.bf16 %v8210_v22, %v8209_v6  ;;  %vm6445_vm6 = vcmask 261120  }
0x1526   :  { %11933 = vmatpush3.bf16.msk.msra.mxu0 %vm13612_vm2, %v12274_v52  ;;  %10586 = vmatprep.mubr.msk.f32.mxu0 %vm12275_vm5, %v12272_v1 }
0x1527   :  { %11994 = vmatprep.subr.bf16.mxu0 %v12273_v2 }
0x15e8   :  { %v5743_v56 = vpop.f32.mrb[36].mxu0 }
0x15e9   :  { %v10555_v38 = vpop.f32.mrb[37].mxu0  ;;  %v5828_v53 = vmul.f32 0.03125, %v5743_v56 }
0x15eb   :  { %v5830_v7 = vmul.f32 %v5828_v53, %v5828_v53 }
0x15f8   :  { %v5824_v63 = vpop.f32.mrb[38].mxu0 }
0x15f9   :  { %v5829_v35 = vmul.f32 0.03125, %v5824_v63  ;;  %v10574_v48 = vpop.f32.mrb[39].mxu0 }
0x15fb   :  { %v5831_v45 = vsub.f32 %v5829_v35, %v5830_v7 }
0x15fd   :  { %v5832_v32 = vmax.f32 %v5831_v45, 0.0 }
0x15ff   :  { %v5835_v0 = vadd.f32 1e-05, %v5832_v32 }
0x1601   :  { %12191 = vrsqrt.f32 %v5835_v0 }
0x160b   :  { %v12192_v13 = vpop.eup %12191 }
0x160c   :  { %v5837_v62 = vmul.f32 %v12192_v13, %v5833_v51  ;;  %v11971_v51 = vpack.c.bf16 %v8213_v55, %v8212_v33  ;;  %v8215_v13 = vld [vmem:[%s14680_s7 + $0xd8] sm:$0xff] }
0x160e   :  { %10580 = vmatmul.mubr.msk.f32.vlgmr.msra.gmra.mrb[40].mxu1 %vm3124_vm7, %v5837_v62  ;;  %v5838_v29 = vmul.f32 %v5837_v62, %v5828_v53 }
0x160f   :  { %11936 = vmatpush3.bf16.msra.mxu1 %v11935_v14  ;;  %10605 = vmatprep.mubr.msk.f32.mxu1 %vm12275_vm5, %v12272_v1 }
0x1610   :  { %v5839_v36 = vsub.f32 %v5834_v50, %v5838_v29  ;;  %11937 = vmatprep.subr.bf16.mxu1 %v12273_v2  ;;  %v11977_v50 = vpack.c.bf16 %v8217_v34, %v8216_v57  ;;  %v8218_v29 = vld [vmem:[%s14680_s7 + $0xf0] sm:$0xff]  ;;  %v6606_v57 = vld [vmem:[%s14689_s16 + $0x1] sm:$0x1] }
0x1612   :  { %10587 = vmatmul.mubr.msk.f32.vlgmr.msra.gmra.mrb[40].mxu0 %vm3124_vm7, %v5839_v36  ;;  %vm14774_vm7 = vmmov %vm14760_vm0 }
0x1613   :  { %11939 = vmatpush3.bf16.msra.mxu1 %v11938_v9  ;;  %10692 = vmatprep.mubr.msk.f32.mxu0 %vm12275_vm5, %v12272_v1  ;;  %v8219_v9 = vld [vmem:[%s14680_s7 + $0xf8] sm:$0xff] }
0x1614   :  { %11940 = vmatprep.subr.bf16.mxu1 %v12273_v2  ;;  %v11980_v36 = vpack.c.bf16 %v8219_v9, %v8218_v29  ;;  %v8251_v29 = vld [vmem:[%s14681_s8 + $0x28] sm:$0xff] }
0x1617   :  { %11942 = vmatpush3.bf16.msra.mxu1 %v11941_v39  ;;  %v11983_v39 = vpack.c.bf16 %v8222_v49, %v8221_v41  ;;  %v8253_v41 = vld [vmem:[%s14681_s8 + $0x38] sm:$0xff] }
0x1618   :  { %11943 = vmatprep.subr.bf16.mxu1 %v12273_v2 }
0x161b   :  { %11945 = vmatpush3.bf16.msra.mxu1 %v11944_v43 }
0x161c   :  { %11946 = vmatprep.subr.bf16.mxu1 %v12273_v2 }
0x161e   :  { %10606 = vmatmul.mubr.msk.f32.vlgmr.msra.gmra.mrb[42].mxu1 %vm14772_vm12, %v6009_v44  ;;  %v8226_v44 = vld [vmem:[%s14680_s7 + $0x128] sm:$0xff] }
0x161f   :  { %11948 = vmatpush3.bf16.msra.mxu1 %v11947_v3  ;;  %10624 = vmatprep.mubr.msk.f32.mxu1 %vm12275_vm5, %v12272_v1  ;;  %v11989_v3 = vpack.c.bf16 %v8226_v44, %v8225_v54  ;;  %v6776_v54 = vld [vmem:[%s14681_s8 + $0x18] sm:$0xff] }
0x1620   :  { %11949 = vmatprep.subr.bf16.mxu1 %v12273_v2 }
0x1623   :  { %11951 = vmatpush3.bf16.msra.mxu1 %v11950_v11  ;;  %v11992_v11 = vpack.c.bf16 %v8228_v10, %v8227_v59  ;;  %v8257_v59 = vld [vmem:[%s14681_s8 + $0x48] sm:$0xff] }
0x1624   :  { %11952 = vmatprep.subr.bf16.mxu1 %v12273_v2 }
0x1627   :  { %11954 = vmatpush3.bf16.msra.mxu1 %v11953_v46  ;;  %v6418_v46 = vand.u32 31, %v12476_v21 }
0x1628   :  { %11955 = vmatprep.subr.bf16.mxu1 %v12273_v2 }
0x1629   :  { %vm6422_vm15 = vcmp.eq.s32.totalorder %v6418_v46, %v12485_v28 }
0x162a   :  { %vm14391_vm0 = vmpackc.low %vm6422_vm15, %vm6421_vm10 }
0x162b   :  { %11957 = vmatpush3.bf16.msra.mxu1 %v11956_v31  ;;  %11996 = vmatpush3.bf16.msk.msra.mxu0 %vm14391_vm0, %v12274_v52  ;;  %v6420_v31 = vand.u32 31, %v12483_v26 }
0x162c   :  { %11958 = vmatprep.subr.bf16.mxu1 %v12273_v2  ;;  %11997 = vmatprep.subr.bf16.mxu0 %v12273_v2 }
0x162d   :  { %vm6424_vm3 = vcmp.eq.s32.totalorder %v6420_v31, %v12485_v28 }
0x162e   :  { %10625 = vmatmul.mubr.msk.f32.vlgmr.msra.gmra.mrb[42].mxu1 %vm14773_vm8, %v6000_v40  ;;  %vm14407_vm1 = vmpackc.low %vm6424_vm3, %vm6423_vm14 }
0x162f   :  { %11960 = vmatpush3.bf16.msra.mxu1 %v11959_v12  ;;  %10643 = vmatprep.mubr.msk.f32.mxu1 %vm12275_vm5, %v12272_v1 }
0x1630   :  { %11961 = vmatprep.subr.bf16.mxu1 %v12273_v2  ;;  %11999 = vmatpush3.bf16.msk.msra.mxu0 %vm14407_vm1, %v12274_v52 }
0x1631   :  { %12000 = vmatprep.subr.bf16.mxu0 %v12273_v2 }
0x1633   :  { %11963 = vmatpush3.bf16.msra.mxu1 %v11962_v27 }
0x1634   :  { %11964 = vmatprep.subr.bf16.mxu1 %v12273_v2 }
0x1637   :  { %11966 = vmatpush3.bf16.msra.mxu1 %v11965_v58 }
0x1638   :  { %11967 = vmatprep.subr.bf16.mxu1 %v12273_v2 }
0x163b   :  { %11969 = vmatpush3.bf16.msra.mxu1 %v11968_v37 }
0x163c   :  { %11970 = vmatprep.subr.bf16.mxu1 %v12273_v2 }
0x16e1   :  { %v5909_v56 = vpop.f32.mrb[40].mxu1 }
0x16e2   :  { %v5989_v38 = vrot.slane %v5909_v56, %v12833_v30  ;;  %v10581_v53 = vpop.f32.mrb[41].mxu1 }
0x16e4   :  { %v5990_v63 = vmul.f32 %v5989_v38, %v14179_v19  ;;  %v8214_v19 = vld [vmem:[%s14680_s7 + $0xd0] sm:$0xff] }
0x16e5   :  { %v5982_v7 = vpop.f32.mrb[40].mxu0  ;;  %v11974_v62 = vpack.c.bf16 %v8215_v13, %v8214_v19  ;;  %v6605_v19 = vld [vmem:[%s14689_s16] sm:$0x1] }
0x16e6   :  { %v5994_v35 = vrot.slane %v5982_v7, %v12833_v30  ;;  %v10588_v48 = vpop.f32.mrb[41].mxu0 }
0x16e8   :  { %v5995_v45 = vadd.f32 %v5994_v35, %v5990_v63  ;;  %v6429_v35 = vand.u32 31, %v12485_v28 }
0x16ea   :  { %vm5996_vm2 = vcmp.gt.f32.partialorder %v5995_v45, 0.0  ;;  %v5997_v32 = vmul.f32 0.2, %v5995_v45  ;;  %vm6430_vm12 = vcmp.eq.s32.totalorder %v6429_v35, %v12468_v16  ;;  %vm6431_vm8 = vcmp.eq.s32.totalorder %v6429_v35, %v12476_v21 }
0x16ec   :  { %v5998_v0 = vsel %vm5996_vm2, %v5995_v45, %v5997_v32  ;;  %vm6432_vm2 = vcmp.eq.s32.totalorder %v6429_v35, %v12480_v25 }
0x16ed   :  { %5999 = vst.msk [vmem:[#allocation8 + $0x4] sm:$0xff] %vm14774_vm7, %v5998_v0  ;;  %vm6433_vm7 = vcmp.eq.s32.totalorder %v6429_v35, %v12483_v26 }
0x16f4   :  { %v6165_v14 = vld [vmem:[#allocation8 + $0x4] sm:$0x3]  ;;  %v6249_v43 = vld [vmem:[#allocation8 + $0x6] sm:$0x3]  ;;  %v6333_v5 = vld [vmem:[#allocation8 + $0x8] sm:$0x3] }
0x16f5   :  { %10644 = vmatmul.mubr.msk.f32.vlgmr.msra.gmra.mrb[42].mxu1 %vm14775_vm13, %v6165_v14  ;;  %vm14445_vm13 = vmpackc.low %vm6431_vm8, %vm6430_vm12 }
0x16f6   :  { %11972 = vmatpush3.bf16.msra.mxu1 %v11971_v51  ;;  %10662 = vmatprep.mubr.msk.f32.mxu1 %vm12275_vm5, %v12272_v1 }
0x16f7   :  { %11973 = vmatprep.subr.bf16.mxu1 %v12273_v2 }
0x16fa   :  { %11975 = vmatpush3.bf16.msra.mxu1 %v11974_v62 }
0x16fb   :  { %11976 = vmatprep.subr.bf16.mxu1 %v12273_v2 }
0x16fe   :  { %11978 = vmatpush3.bf16.msra.mxu1 %v11977_v50  ;;  %v8250_v50 = vld [vmem:[%s14681_s8 + $0x20] sm:$0xff] }
0x16ff   :  { %11979 = vmatprep.subr.bf16.mxu1 %v12273_v2  ;;  %v12019_v9 = vpack.c.bf16 %v8251_v29, %v8250_v50 }
0x1702   :  { %11981 = vmatpush3.bf16.msra.mxu1 %v11980_v36  ;;  %v8252_v36 = vld [vmem:[%s14681_s8 + $0x30] sm:$0xff] }
0x1703   :  { %11982 = vmatprep.subr.bf16.mxu1 %v12273_v2  ;;  %v12022_v49 = vpack.c.bf16 %v8253_v41, %v8252_v36 }
0x1705   :  { %10663 = vmatmul.mubr.msk.f32.vlgmr.msra.gmra.mrb[42].mxu1 %vm14776_vm4, %v6249_v43  ;;  %vm14453_vm4 = vmpackc.low %vm6433_vm7, %vm6432_vm2 }
0x1706   :  { %11984 = vmatpush3.bf16.msra.mxu1 %v11983_v39  ;;  %10681 = vmatprep.mubr.msk.f32.mxu1 %vm12275_vm5, %v12272_v1  ;;  %v6773_v39 = vld [vmem:[%s14681_s8] sm:$0xff] }
0x1707   :  { %11985 = vmatprep.subr.bf16.mxu1 %v12273_v2  ;;  %v12025_v43 = vpack.c.bf16 %v6774_v42, %v6773_v39 }
0x170a   :  { %11987 = vmatpush3.bf16.msra.mxu1 %v11986_v24  ;;  %v6775_v24 = vld [vmem:[%s14681_s8 + $0x10] sm:$0xff] }
0x170b   :  { %11988 = vmatprep.subr.bf16.mxu1 %v12273_v2  ;;  %v12028_v44 = vpack.c.bf16 %v6776_v54, %v6775_v24 }
0x170e   :  { %11990 = vmatpush3.bf16.msra.mxu1 %v11989_v3  ;;  %v8256_v3 = vld [vmem:[%s14681_s8 + $0x40] sm:$0xff] }
0x170f   :  { %11991 = vmatprep.subr.bf16.mxu1 %v12273_v2 }
0x1712   :  { %11993 = vmatpush3.bf16.msra.mxu1 %v11992_v11  ;;  %v12031_v11 = vpack.c.bf16 %v8257_v59, %v8256_v3  ;;  %v7335_v3 = vld [vmem:[%s14690_s17] sm:$0x1] }
0x1713   :  { %12054 = vmatprep.subr.bf16.mxu1 %v12273_v2 }
0x1715   :  { %10682 = vmatmul.mubr.msk.f32.vlgmr.msra.gmra.mrb[42].mxu1 %vm14777_vm11, %v6333_v5  ;;  %vm126_vm11 = vcmask 257024   ;;  %v8258_v5 = vld [vmem:[%s14681_s8 + $0x50] sm:$0xff] }
0x1716   :  { %10802 = vmatprep.mubr.msk.f32.mxu1 %vm12275_vm5, %v12272_v1  ;;  %12056 = vmatpush3.bf16.msk.msra.mxu1 %vm14391_vm0, %v12274_v52  ;;  %127 = vst.msk [vmem:[#allocation9] sm:$0xf] %vm126_vm11, %v12272_v1  ;;  %128 = vst.msk [vmem:[#allocation9 + $0x6] sm:$0xf] %vm126_vm11, %v12272_v1  ;;  %v12034_v46 = vpack.c.bf16 %v8259_v17, %v8258_v5  ;;  %v8291_v5 = vld [vmem:[%s14682_s9 + $0x20] sm:$0xff]  ;;  %v8292_v17 = vld [vmem:[%s14682_s9 + $0x28] sm:$0xff] }
0x1717   :  { %12057 = vmatprep.subr.bf16.mxu1 %v12273_v2 }
0x171a   :  { %12059 = vmatpush3.bf16.msk.msra.mxu1 %vm14407_vm1, %v12274_v52 }
0x171b   :  { %12066 = vmatprep.subr.bf16.mxu1 %v12273_v2 }
0x171d   :  { %v6777_v15 = vld [vmem:[#allocation9 + $0x2] sm:$0x3]  ;;  %v6772_v10 = vld [vmem:[#allocation9] sm:$0x3]  ;;  %v7009_v35 = vld [vmem:[#allocation9 + $0x6] sm:$0x3] }
0x17e8   :  { %v14419_v4 = vpop.f32.mrb[42].mxu1 }
0x17e9   :  { %v6438_v12 = vsel %vm129_vm9, %v14419_v4, 0.0  ;;  %v6519_v40 = vmul.f32 %v14419_v4, %v14419_v4  ;;  %v10683_v8 = vpop.f32.mrb[43].mxu1 }
0x17ea   :  { %v6439_v18 = vrot.slane %v6438_v12, 4 }
0x17eb   :  { %v6520_v27 = vsel %vm129_vm9, %v6519_v40, 0.0 }
0x17ec   :  { %v6440_v23 = vadd.f32 %v6439_v18, %v6438_v12  ;;  %v6521_v20 = vrot.slane %v6520_v27, 4 }
0x17ee   :  { %v6441_v58 = vrot.slane %v6440_v23, 2  ;;  %v6522_v6 = vadd.f32 %v6521_v20, %v6520_v27 }
0x17f0   :  { %v6442_v22 = vadd.f32 %v6441_v58, %v6440_v23  ;;  %v6523_v37 = vrot.slane %v6522_v6, 2 }
0x17f2   :  { %v6443_v56 = vrot.slane %v6442_v22, 1  ;;  %v6524_v53 = vadd.f32 %v6523_v37, %v6522_v6  ;;  %v8261_v6 = vld [vmem:[%s14681_s8 + $0x60] sm:$0xff] }
0x17f4   :  { %v6444_v38 = vadd.f32 %v6443_v56, %v6442_v22  ;;  %v6525_v63 = vrot.slane %v6524_v53, 1  ;;  %v8262_v22 = vld [vmem:[%s14681_s8 + $0x68] sm:$0xff]  ;;  %v8264_v56 = vld [vmem:[%s14681_s8 + $0x78] sm:$0xff] }
0x17f5   :  { %v12037_v37 = vpack.c.bf16 %v8262_v22, %v8261_v6 }
0x17f6   :  { %10693 = vmatmul.mubr.msk.f32.vlgmr.msra.gmra.mrb[42].mxu0 %vm6445_vm6, %v6444_v38  ;;  %v6526_v7 = vadd.f32 %v6525_v63, %v6524_v53  ;;  %v8266_v63 = vld [vmem:[%s14681_s8 + $0x80] sm:$0xff] }
0x17f7   :  { %12002 = vmatpush3.bf16.msk.msra.mxu0 %vm14391_vm0, %v12274_v52  ;;  %10703 = vmatprep.mubr.msk.f32.mxu0 %vm12275_vm5, %v12272_v1 }
0x17f8   :  { %12003 = vmatprep.subr.bf16.mxu0 %v12273_v2 }
0x17fb   :  { %12005 = vmatpush3.bf16.msk.msra.mxu0 %vm14407_vm1, %v12274_v52 }
0x17fc   :  { %12006 = vmatprep.subr.bf16.mxu0 %v12273_v2 }
0x17fe   :  { %10704 = vmatmul.mubr.msk.f32.vlgmr.msra.gmra.mrb[44].mxu0 %vm6445_vm6, %v6526_v7  ;;  %v8267_v7 = vld [vmem:[%s14681_s8 + $0x88] sm:$0xff] }
0x17ff   :  { %10714 = vmatprep.mubr.msk.f32.mxu0 %vm12275_vm5, %v12272_v1  ;;  %12008 = vmatpush3.bf16.msk.msra.mxu0 %vm14445_vm13, %v12274_v52 }
0x1800   :  { %12009 = vmatprep.subr.bf16.mxu0 %v12273_v2 }
0x1803   :  { %12011 = vmatpush3.bf16.msk.msra.mxu0 %vm14453_vm4, %v12274_v52 }
0x1804   :  { %12012 = vmatprep.subr.bf16.mxu0 %v12273_v2 }
0x18c9   :  { %v6515_v16 = vpop.f32.mrb[42].mxu0 }
0x18ca   :  { %v10694_v21 = vpop.f32.mrb[43].mxu0  ;;  %v6600_v25 = vmul.f32 0.5, %v6515_v16  ;;  %v12043_v16 = vpack.c.bf16 %v8267_v7, %v8266_v63 }
0x18cb   :  { %v8268_v21 = vld [vmem:[%s14681_s8 + $0x90] sm:$0xff] }
0x18cc   :  { %v6602_v45 = vmul.f32 %v6600_v25, %v6600_v25 }
0x18d1   :  { %v6596_v26 = vpop.f32.mrb[44].mxu0 }
0x18d2   :  { %v6601_v32 = vmul.f32 0.5, %v6596_v26  ;;  %v10705_v0 = vpop.f32.mrb[45].mxu0 }
0x18d4   :  { %v6603_v33 = vsub.f32 %v6601_v32, %v6602_v45  ;;  %v7089_v45 = vld [vmem:[#allocation9 + $0x8] sm:$0x3] }
0x18d6   :  { %v6604_v55 = vmax.f32 %v6603_v33, 0.0 }
0x18d8   :  { %v6607_v51 = vadd.f32 1e-05, %v6604_v55 }
0x18da   :  { %12193 = vrsqrt.f32 %v6607_v51 }
0x18e4   :  { %v12194_v13 = vpop.eup %12193 }
0x18e5   :  { %v6609_v14 = vmul.f32 %v12194_v13, %v6605_v19 }
0x18e7   :  { %10715 = vmatmul.mubr.msk.f32.vlgmr.msra.gmra.mrb[46].mxu0 %vm6445_vm6, %v6609_v14  ;;  %v6610_v62 = vmul.f32 %v6609_v14, %v6600_v25  ;;  %v8269_v25 = vld [vmem:[%s14681_s8 + $0x98] sm:$0xff] }
0x18e8   :  { %12014 = vmatpush3.bf16.msk.msra.mxu0 %vm14445_vm13, %v12274_v52  ;;  %10725 = vmatprep.mubr.msk.f32.mxu0 %vm12275_vm5, %v12272_v1  ;;  %v12046_v26 = vpack.c.bf16 %v8269_v25, %v8268_v21  ;;  %v8298_v21 = vld [vmem:[%s14682_s9 + $0x48] sm:$0xff] }
0x18e9   :  { %12015 = vmatprep.subr.bf16.mxu0 %v12273_v2  ;;  %v6611_v34 = vsub.f32 %v6606_v57, %v6610_v62 }
0x18ec   :  { %12017 = vmatpush3.bf16.msk.msra.mxu0 %vm14453_vm4, %v12274_v52 }
0x18ed   :  { %12018 = vmatprep.subr.bf16.mxu0 %v12273_v2 }
0x18ef   :  { %10726 = vmatmul.mubr.msk.f32.vlgmr.msra.gmra.mrb[48].mxu0 %vm6445_vm6, %v6611_v34 }
0x18f0   :  { %10736 = vmatprep.mubr.msk.f32.mxu0 %vm12275_vm5, %v12272_v1  ;;  %12020 = vmatpush3.bf16.msra.mxu0 %v12019_v9 }
0x18f1   :  { %12021 = vmatprep.subr.bf16.mxu0 %v12273_v2 }
0x18f4   :  { %12023 = vmatpush3.bf16.msra.mxu0 %v12022_v49 }
0x18f5   :  { %12024 = vmatprep.subr.bf16.mxu0 %v12273_v2 }
0x18f7   :  { %10737 = vmatmul.mubr.msk.f32.vlgmr.msra.gmra.mrb[50].mxu0 %vm6445_vm6, %v6777_v15 }
0x18f8   :  { %12026 = vmatpush3.bf16.msra.mxu0 %v12025_v43  ;;  %10747 = vmatprep.mubr.msk.f32.mxu0 %vm12275_vm5, %v12272_v1 }
0x18f9   :  { %12027 = vmatprep.subr.bf16.mxu0 %v12273_v2 }
0x18fc   :  { %12029 = vmatpush3.bf16.msra.mxu0 %v12028_v44 }
0x18fd   :  { %12030 = vmatprep.subr.bf16.mxu0 %v12273_v2 }
0x18ff   :  { %10748 = vmatmul.mubr.msk.f32.vlgmr.msra.gmra.mrb[50].mxu0 %vm6445_vm6, %v6772_v10 }
0x1900   :  { %12032 = vmatpush3.bf16.msra.mxu0 %v12031_v11  ;;  %10758 = vmatprep.mubr.msk.f32.mxu0 %vm12275_vm5, %v12272_v1 }
0x1901   :  { %12033 = vmatprep.subr.bf16.mxu0 %v12273_v2 }
0x1904   :  { %12035 = vmatpush3.bf16.msra.mxu0 %v12034_v46  ;;  %v12073_v46 = vpack.c.bf16 %v8292_v17, %v8291_v5 }
0x1905   :  { %12036 = vmatprep.subr.bf16.mxu0 %v12273_v2 }
0x19ba   :  { %v6681_v60 = vpop.f32.mrb[46].mxu0 }
0x19bb   :  { %v6761_v31 = vrot.slane %v6681_v60, %v12833_v30  ;;  %v10716_v12 = vpop.f32.mrb[47].mxu0  ;;  %v7503_v60 = vld [vmem:[%s14682_s9] sm:$0xff] }
0x19bd   :  { %v6762_v40 = vmul.f32 %v6761_v31, %v14419_v4  ;;  %v8263_v4 = vld [vmem:[%s14681_s8 + $0x70] sm:$0xff]  ;;  %v7504_v31 = vld [vmem:[%s14682_s9 + $0x8] sm:$0xff] }
0x19be   :  { %v12040_v53 = vpack.c.bf16 %v8264_v56, %v8263_v4  ;;  %v12079_v12 = vpack.c.bf16 %v7504_v31, %v7503_v60 }
0x19c2   :  { %v6754_v8 = vpop.f32.mrb[48].mxu0 }
0x19c3   :  { %v6766_v18 = vrot.slane %v6754_v8, %v12833_v30  ;;  %v10727_v27 = vpop.f32.mrb[49].mxu0  ;;  %v8294_v8 = vld [vmem:[%s14682_s9 + $0x38] sm:$0xff] }
0x19c5   :  { %v6767_v23 = vadd.f32 %v6766_v18, %v6762_v40  ;;  %v8293_v40 = vld [vmem:[%s14682_s9 + $0x30] sm:$0xff] }
0x19c6   :  { %v7505_v18 = vld [vmem:[%s14682_s9 + $0x10] sm:$0xff]  ;;  %v12076_v27 = vpack.c.bf16 %v8294_v8, %v8293_v40 }
0x19c7   :  { %vm6768_vm10 = vcmp.gt.f32.partialorder %v6767_v23, 0.0  ;;  %v6769_v20 = vmul.f32 0.2, %v6767_v23 }
0x19c9   :  { %v6770_v58 = vsel %vm6768_vm10, %v6767_v23, %v6769_v20  ;;  %v7506_v23 = vld [vmem:[%s14682_s9 + $0x18] sm:$0xff] }
0x19ca   :  { %6771 = vst.msk [vmem:[#allocation9 + $0x4] sm:$0x3] %vm129_vm9, %v6770_v58  ;;  %v12082_v20 = vpack.c.bf16 %v7506_v23, %v7505_v18  ;;  %v7502_v58 = vld [vmem:[#allocation10] sm:$0x3] }
0x19d1   :  { %v6929_v38 = vld [vmem:[#allocation9 + $0x4] sm:$0x3] }
0x19d2   :  { %10759 = vmatmul.mubr.msk.f32.vlgmr.msra.gmra.mrb[50].mxu0 %vm6445_vm6, %v6929_v38 }
0x19d3   :  { %12038 = vmatpush3.bf16.msra.mxu0 %v12037_v37  ;;  %10769 = vmatprep.mubr.msk.f32.mxu0 %vm12275_vm5, %v12272_v1 }
0x19d4   :  { %12039 = vmatprep.subr.bf16.mxu0 %v12273_v2 }
0x19d7   :  { %12041 = vmatpush3.bf16.msra.mxu0 %v12040_v53 }
0x19d8   :  { %12042 = vmatprep.subr.bf16.mxu0 %v12273_v2 }
0x19da   :  { %10770 = vmatmul.mubr.msk.f32.vlgmr.msra.gmra.mrb[50].mxu0 %vm6445_vm6, %v7009_v35 }
0x19db   :  { %12044 = vmatpush3.bf16.msra.mxu0 %v12043_v16  ;;  %10780 = vmatprep.mubr.msk.f32.mxu0 %vm12275_vm5, %v12272_v1  ;;  %v8297_v16 = vld [vmem:[%s14682_s9 + $0x40] sm:$0xff] }
0x19dc   :  { %12045 = vmatprep.subr.bf16.mxu0 %v12273_v2  ;;  %v12085_v25 = vpack.c.bf16 %v8298_v21, %v8297_v16 }
0x19df   :  { %12047 = vmatpush3.bf16.msra.mxu0 %v12046_v26  ;;  %v8300_v26 = vld [vmem:[%s14682_s9 + $0x58] sm:$0xff] }
0x19e0   :  { %12048 = vmatprep.subr.bf16.mxu0 %v12273_v2 }
0x19e2   :  { %10781 = vmatmul.mubr.msk.f32.vlgmr.msra.gmra.mrb[50].mxu0 %vm6445_vm6, %v7089_v45 }
0x19e3   :  { %12050 = vmatpush3.bf16.msk.msra.mxu0 %vm14391_vm0, %v12274_v52  ;;  %10791 = vmatprep.mubr.msk.f32.mxu0 %vm12275_vm5, %v12272_v1 }
0x19e4   :  { %12051 = vmatprep.subr.bf16.mxu0 %v12273_v2 }
0x19e7   :  { %12053 = vmatpush3.bf16.msk.msra.mxu0 %vm14407_vm1, %v12274_v52 }
0x19e8   :  { %12060 = vmatprep.subr.bf16.mxu0 %v12273_v2 }
0x1ab5   :  { %v14580_v32 = vpop.f32.mrb[50].mxu0 }
0x1ab6   :  { %v7169_v0 = vsel %vm129_vm9, %v14580_v32, 0.0  ;;  %v7249_v47 = vmul.f32 %v14580_v32, %v14580_v32  ;;  %v10782_v33 = vpop.f32.mrb[51].mxu0 }
0x1ab7   :  { %v7170_v55 = vrot.slane %v7169_v0, 4 }
0x1ab8   :  { %v7250_v51 = vsel %vm129_vm9, %v7249_v47, 0.0 }
0x1ab9   :  { %v7171_v19 = vadd.f32 %v7170_v55, %v7169_v0  ;;  %v7251_v13 = vrot.slane %v7250_v51, 4  ;;  %v7659_v0 = vld [vmem:[#allocation10 + $0x4] sm:$0x3] }
0x1abb   :  { %v7172_v14 = vrot.slane %v7171_v19, 2  ;;  %v7252_v62 = vadd.f32 %v7251_v13, %v7250_v51 }
0x1abd   :  { %v7173_v61 = vadd.f32 %v7172_v14, %v7171_v19  ;;  %v7253_v57 = vrot.slane %v7252_v62, 2  ;;  %v8302_v14 = vld [vmem:[#allocation11] ss:$0 sm:$0xff] }
0x1abf   :  { %v7174_v34 = vrot.slane %v7173_v61, 1  ;;  %v7254_v50 = vadd.f32 %v7253_v57, %v7252_v62 }
0x1ac1   :  { %v7175_v29 = vadd.f32 %v7174_v34, %v7173_v61  ;;  %v7255_v9 = vrot.slane %v7254_v50, 1 }
0x1ac3   :  { %v7256_v36 = vadd.f32 %v7255_v9, %v7254_v50  ;;  %10792 = vmatmul.mubr.msk.f32.vlgmr.msra.gmra.mrb[52].mxu0 %vm6445_vm6, %v7175_v29 }
0x1ac4   :  { %12062 = vmatpush3.bf16.msk.msra.mxu0 %vm14445_vm13, %v12274_v52  ;;  %10813 = vmatprep.mubr.msk.f32.mxu0 %vm12275_vm5, %v12272_v1 }
0x1ac5   :  { %10803 = vmatmul.mubr.msk.f32.vlgmr.msra.gmra.mrb[44].mxu1 %vm6445_vm6, %v7256_v36  ;;  %12063 = vmatprep.subr.bf16.mxu0 %v12273_v2 }
0x1ac6   :  { %12068 = vmatpush3.bf16.msk.msra.mxu1 %vm14445_vm13, %v12274_v52  ;;  %10824 = vmatprep.mubr.msk.f32.mxu1 %vm12275_vm5, %v12272_v1 }
0x1ac7   :  { %12069 = vmatprep.subr.bf16.mxu1 %v12273_v2 }
0x1ac8   :  { %12065 = vmatpush3.bf16.msk.msra.mxu0 %vm14453_vm4, %v12274_v52 }
0x1ac9   :  { %12072 = vmatprep.subr.bf16.mxu0 %v12273_v2 }
0x1aca   :  { %12071 = vmatpush3.bf16.msk.msra.mxu1 %vm14453_vm4, %v12274_v52  ;;  %v7336_v52 = vld [vmem:[%s14690_s17 + $0x1] sm:$0x1] }
0x1acb   :  { %12078 = vmatprep.subr.bf16.mxu1 %v12273_v2 }
0x1b96   :  { %v7245_v41 = vpop.f32.mrb[52].mxu0 }
0x1b97   :  { %v7330_v48 = vmul.f32 0.5, %v7245_v41  ;;  %v10793_v49 = vpop.f32.mrb[53].mxu0 }
0x1b98   :  { %v7326_v39 = vpop.f32.mrb[44].mxu1 }
0x1b99   :  { %v7332_v42 = vmul.f32 %v7330_v48, %v7330_v48  ;;  %v7331_v15 = vmul.f32 0.5, %v7326_v39  ;;  %v10804_v43 = vpop.f32.mrb[45].mxu1 }
0x1b9b   :  { %v7333_v24 = vsub.f32 %v7331_v15, %v7332_v42 }
0x1b9d   :  { %v7334_v54 = vmax.f32 %v7333_v24, 0.0 }
0x1b9f   :  { %v7337_v44 = vadd.f32 1e-05, %v7334_v54 }
0x1ba1   :  { %12195 = vrsqrt.f32 %v7337_v44 }
0x1bab   :  { %v12196_v59 = vpop.eup %12195 }
0x1bac   :  { %v7339_v28 = vmul.f32 %v12196_v59, %v7335_v3 }
0x1bae   :  { %10814 = vmatmul.mubr.msk.f32.vlgmr.msra.gmra.mrb[54].mxu0 %vm6445_vm6, %v7339_v28  ;;  %v7340_v10 = vmul.f32 %v7339_v28, %v7330_v48 }
0x1baf   :  { %10835 = vmatprep.mubr.msk.f32.mxu0 %vm12275_vm5, %v12272_v1  ;;  %12074 = vmatpush3.bf16.msra.mxu0 %v12073_v46 }
0x1bb0   :  { %v7341_v11 = vsub.f32 %v7336_v52, %v7340_v10  ;;  %12075 = vmatprep.subr.bf16.mxu0 %v12273_v2 }
0x1bb2   :  { %10825 = vmatmul.mubr.msk.f32.vlgmr.msra.gmra.mrb[46].mxu1 %vm6445_vm6, %v7341_v11 }
0x1bb3   :  { %10846 = vmatprep.mubr.msk.f32.mxu1 %vm12275_vm5, %v12272_v1  ;;  %12080 = vmatpush3.bf16.msra.mxu1 %v12079_v12 }
0x1bb4   :  { %12081 = vmatprep.subr.bf16.mxu1 %v12273_v2  ;;  %12077 = vmatpush3.bf16.msra.mxu0 %v12076_v27 }
0x1bb5   :  { %12084 = vmatprep.subr.bf16.mxu0 %v12273_v2 }
0x1bb7   :  { %12083 = vmatpush3.bf16.msra.mxu1 %v12082_v20 }
0x1bba   :  { %10847 = vmatmul.mubr.msk.f32.vlgmr.msra.gmra.mrb[48].mxu1 %vm6445_vm6, %v7502_v58 }
0x1c81   :  { %v7411_v6 = vpop.f32.mrb[54].mxu0 }
0x1c82   :  { %v7491_v22 = vrot.slane %v7411_v6, %v12833_v30  ;;  %v10815_v37 = vpop.f32.mrb[55].mxu0 }
0x1c84   :  { %v7492_v4 = vmul.f32 %v7491_v22, %v14580_v32 }
0x1c85   :  { %v7484_v56 = vpop.f32.mrb[46].mxu1 }
0x1c86   :  { %v7496_v38 = vrot.slane %v7484_v56, %v12833_v30  ;;  %v10826_v53 = vpop.f32.mrb[47].mxu1  ;;  %v8299_v30 = vld [vmem:[%s14682_s9 + $0x50] sm:$0xff] }
0x1c87   :  { %v12088_v32 = vpack.c.bf16 %v8300_v26, %v8299_v30 }
0x1c88   :  { %v7497_v63 = vadd.f32 %v7496_v38, %v7492_v4 }
0x1c8a   :  { %vm7498_vm15 = vcmp.gt.f32.partialorder %v7497_v63, 0.0  ;;  %v7499_v7 = vmul.f32 0.2, %v7497_v63 }
0x1c8c   :  { %v7500_v35 = vsel %vm7498_vm15, %v7497_v63, %v7499_v7 }
0x1c8d   :  { %7501 = vst.msk [vmem:[#allocation10 + $0x2] sm:$0x3] %vm129_vm9, %v7500_v35  ;;  %v7655_v47 = vpop.f32.mrb[48].mxu1  ;;  %vm7747_vm9 = vcmask 1024  }
0x1c8e   :  { %v10848_v33 = vpop.f32.mrb[49].mxu1 }
0x1c94   :  { %v7507_v45 = vld [vmem:[#allocation10 + $0x2] sm:$0x3] }
0x1c95   :  { %10836 = vmatmul.mubr.msk.f32.vlgmr.msra.gmra.mrb[56].mxu0 %vm6445_vm6, %v7507_v45 }
0x1c96   :  { %12086 = vmatpush3.bf16.msra.mxu0 %v12085_v25  ;;  %10857 = vmatprep.mubr.msk.f32.mxu0 %vm12275_vm5, %v12272_v1 }
0x1c97   :  { %12087 = vmatprep.subr.bf16.mxu0 %v12273_v2 }
0x1c9a   :  { %12089 = vmatpush3.bf16.msra.mxu0 %v12088_v32 }
0x1c9d   :  { %10858 = vmatmul.mubr.msk.f32.vlgmr.msra.gmra.mrb[58].mxu0 %vm6445_vm6, %v7659_v0 }
0x1d68   :  { %v7582_v55 = vpop.f32.mrb[56].mxu0 }
0x1d69   :  { %v7656_v51 = vadd.f32 %v7655_v47, %v7582_v55  ;;  %v10837_v19 = vpop.f32.mrb[57].mxu0 }
0x1d70   :  { %v7734_v13 = vpop.f32.mrb[58].mxu0 }
0x1d71   :  { %v7738_v62 = vadd.f32 %v7734_v13, %v7656_v51  ;;  %v10859_v61 = vpop.f32.mrb[59].mxu0 }
0x1d73   :  { %v7746_v57 = vadd.f32 %v8302_v14, %v7738_v62 }
0x1d75   :  { %7748 = vst.msk [vmem:[%s14694_s21] sm:$0x3] %vm7747_vm9, %v7746_v57 }
0x1d76   :  { %7753 = vsyncpa [#allocation13], 1 }
0x1d77   :  { %7754 = vsyncpa [#allocation15], 1 }

</bundles_post_ra>
